<compile_context>
chip_gen: v7x
topology: tpu7x:2x2x1
jax: 0.10.0
libtpu: 0.0.40
codegen_flags: <defaults>
</compile_context>

<pallas_src>
import jax
import jax.numpy as jnp
from jax import lax
from jax.experimental import pallas as pl
from jax.experimental.pallas import tpu as pltpu

# ---- constants hardcoded in LSTMModel.__init__ ----
H_IN   = 22     # input height (cnn2 kernel (22,1) collapses it to 1)
K1     = 51     # cnn1 kernel width
C1     = 40     # cnn1 out channels
C2     = 40     # cnn2 out channels  (== LSTM n_inputs)
POOL_K = 135    # AvgPool2d kernel width
POOL_S = 5      # AvgPool2d stride
BN_EPS = 1e-5


def _round_up(x, m):
    return (x + m - 1) // m * m


def make_kernel(B, W, n_neurons, n_outputs):
    W1   = W - K1 + 1                         # width after cnn1 (cnn2 keeps it)
    SEQ  = (W1 - POOL_K) // POOL_S + 1        # pooled width == LSTM time steps
    HID  = n_neurons
    W1P  = _round_up(W1, 16)                  # conv rows, bf16 sublane aligned
    KC   = K1 * H_IN                          # dense (tap, height) contraction
    KF   = _round_up(KC + 1, 128)             # + bias lane, padded to 128 lanes
    MROW = B * W1P                            # stacked conv rows in the scratch

    def kernel(cols_ref, wf_ref, gamma_ref, beta_ref, pool_ref,
               wihT_ref, whhT_ref, bls_ref, fcwT_ref, fcb_ref,
               out_ref, conv_ref):
        i = pl.program_id(0)

        # ---- per-batch fused cnn1+cnn2 (bias folded into the "ones" lane) ----
        # bf16 x bf16 -> f32 accumulate on the MXU.  Padded rows of the im2col
        # tile are all-zero (including the bias lane), so they produce exact
        # zeros in the scratch and never perturb the BN statistics.
        conv_tile = jnp.dot(cols_ref[0], wf_ref[...],
                            preferred_element_type=jnp.float32)        # (W1P, C2)
        r0 = pl.multiple_of(i * W1P, 8)
        conv_ref[pl.ds(r0, W1P), :] = conv_tile

        # ---- epilogue on the last grid step: BN -> ReLU -> pool -> LSTM -> FC
        @pl.when(i == pl.num_programs(0) - 1)
        def _epilogue():
            conv = conv_ref[...]                                        # (MROW, C2) f32
            n_valid = float(B * W1)
            n_pad = float(MROW - B * W1)
            inv_n = 1.0 / n_valid

            # BatchNorm (training-mode batch stats), centered variance.
            # Pad rows are exact zeros; each contributes mean^2 to sum(d*d),
            # which is subtracted back out -> exact masked centered variance.
            mean = jnp.sum(conv, axis=0, keepdims=True) * inv_n         # (1, C2)
            d = conv - mean
            var = (jnp.sum(d * d, axis=0, keepdims=True)
                   - n_pad * mean * mean) * inv_n
            scale = gamma_ref[...] * lax.rsqrt(var + BN_EPS)
            shift = beta_ref[...] - mean * scale
            relu = jnp.maximum(conv * scale + shift, 0.0)               # (MROW, C2)

            # AvgPool (1/135 folded in) + time-major restack: one small matmul.
            # The pool matrix never selects a padded row (asserted host-side).
            pooled = jnp.dot(pool_ref[...], relu.astype(jnp.bfloat16),
                             preferred_element_type=jnp.float32)        # (SEQ*B, C2)
            # dropout p=0 -> identity

            # LSTM: input projection hoisted out of the recurrence.
            gx = jnp.dot(pooled.astype(jnp.bfloat16), wihT_ref[...],
                         preferred_element_type=jnp.float32) + bls_ref[...]  # (SEQ*B, 4H)
            whhT = whhT_ref[...]                                        # (HID, 4H) bf16

            def lstm_pass(h, c):
                # SEQ is tiny (4 at demo shapes) -> static unroll is fine;
                # switch to lax.fori_loop with gx[pl.ds(t*B, B)] if SEQ grows.
                for t in range(SEQ):
                    gates = gx[t * B:(t + 1) * B, :] + jnp.dot(
                        h.astype(jnp.bfloat16), whhT,
                        preferred_element_type=jnp.float32)             # (B,4H) i,f,g,o
                    sg = jax.nn.sigmoid(gates)       # one packed 4H-lane EUP sweep
                    ig = sg[:, 0 * HID:1 * HID]
                    fg = sg[:, 1 * HID:2 * HID]
                    og = sg[:, 3 * HID:4 * HID]
                    gg = jnp.tanh(gates[:, 2 * HID:3 * HID])   # tanh on g slice only
                    c = fg * c + ig * gg
                    h = og * jnp.tanh(c)
                return h, c

            zeros = jnp.zeros((B, HID), jnp.float32)
            h1, _ = lstm_pass(zeros, zeros)
            # Second pass seeded with (h1, h1): the module builds cellstate_out
            # from self.hidden (upstream bug) -- reproduced faithfully.
            h2, _ = lstm_pass(h1, h1)

            out_ref[...] = jnp.dot(h2, fcwT_ref[...],
                                   preferred_element_type=jnp.float32) + fcb_ref[...]

    return kernel, W1, SEQ, W1P, KC, KF, MROW


def init_params(key, n_neurons, n_outputs):
    """Deterministic parameter init mirroring LSTMModel.__init__ shapes."""
    HID = n_neurons
    ks = jax.random.split(key, 6)
    # cnn1: Conv2d(1, 40, (1, 51)), xavier_uniform
    fan1_in, fan1_out = 1 * 1 * K1, C1 * 1 * K1
    bnd1 = (6.0 / (fan1_in + fan1_out)) ** 0.5
    w1 = jax.random.uniform(ks[0], (C1, 1, 1, K1), jnp.float32, -bnd1, bnd1)
    b1 = jax.random.uniform(ks[1], (C1,), jnp.float32,
                            -fan1_in ** -0.5, fan1_in ** -0.5)
    # cnn2: Conv2d(40, 40, (22, 1)), xavier_uniform
    fan2_in, fan2_out = C1 * H_IN * 1, C2 * H_IN * 1
    bnd2 = (6.0 / (fan2_in + fan2_out)) ** 0.5
    w2 = jax.random.uniform(ks[2], (C2, C1, H_IN, 1), jnp.float32, -bnd2, bnd2)
    b2 = jax.random.uniform(ks[3], (C2,), jnp.float32,
                            -fan2_in ** -0.5, fan2_in ** -0.5)
    # BatchNorm2d(40) default affine params
    gamma = jnp.ones((C2,), jnp.float32)
    beta  = jnp.zeros((C2,), jnp.float32)
    # LSTM layer 0: identity weights, zero biases (exactly as in __init__)
    wih = jnp.eye(4 * HID, C2,  dtype=jnp.float32)   # weight_ih_l0
    whh = jnp.eye(4 * HID, HID, dtype=jnp.float32)   # weight_hh_l0
    blstm = jnp.zeros((1, 4 * HID), jnp.float32)     # bias_ih_l0 + bias_hh_l0 = 0
    # FC: Linear(n_neurons, n_outputs)
    bndf = HID ** -0.5
    fcw = jax.random.uniform(ks[4], (n_outputs, HID), jnp.float32, -bndf, bndf)
    fcb = jax.random.uniform(ks[5], (1, n_outputs), jnp.float32, -bndf, bndf)
    return dict(w1=w1, b1=b1, w2=w2, b2=b2, gamma=gamma, beta=beta,
                wih=wih, whh=whh, blstm=blstm, fcw=fcw, fcb=fcb)


def lstm_model_forward(x, params, n_neurons, n_outputs):
    """x: NCHW (B, 1, 22, W) float32, exactly like the PyTorch module."""
    B, c_in, h_in, W = x.shape
    assert c_in == 1 and h_in == H_IN and W >= K1
    kernel, W1, SEQ, W1P, KC, KF, MROW = make_kernel(B, W, n_neurons, n_outputs)
    assert W1 >= POOL_K and SEQ >= 1
    # Invariant: pooling windows must never reach the padded conv rows [W1, W1P).
    assert (SEQ - 1) * POOL_S + POOL_K <= W1

    # ---------- layout glue / constant folding (plain JAX, outside the kernel) ----
    # Host-side im2col: cols[b, w', k*H_IN + h] = X[b, 0, h, w'+k], densely
    # packed over (tap, height) and cast to bf16.  Lane KC carries 1.0 on valid
    # rows so the fused conv bias rides inside the single MXU matmul and padded
    # rows come out exactly zero.
    x2 = x[:, 0, :, :]                                                # (B, 22, W)
    tap_idx = jnp.arange(W1)[:, None] + jnp.arange(K1)[None, :]       # (W1, K1)
    patches = jnp.transpose(x2[:, :, tap_idx], (0, 2, 3, 1))          # (B, W1, K1, 22)
    cols = jnp.zeros((B, W1P, KF), jnp.float32)
    cols = cols.at[:, :W1, :KC].set(patches.reshape(B, W1, KC))
    cols = cols.at[:, :W1, KC].set(1.0)                               # bias lane
    cols = cols.astype(jnp.bfloat16)

    # fused cnn1+cnn2 weight: Wf[k*H_IN + h, c2] = sum_c w2[c2,c,h] * w1[c,k];
    # fused bias lives in row KC.
    w1m = params["w1"][:, 0, 0, :]                                    # (C1, K1)
    w2m = params["w2"][:, :, :, 0]                                    # (C2, C1, H_IN)
    wf = jnp.einsum("ck,dch->khd", w1m, w2m).reshape(KC, C2)          # (KC, C2)
    bf = params["b2"] + jnp.einsum("dch,c->d", w2m, params["b1"])     # (C2,)
    wf_full = (jnp.zeros((KF, C2), jnp.float32)
               .at[:KC, :].set(wf).at[KC, :].set(bf)).astype(jnp.bfloat16)

    gamma = params["gamma"][None, :]
    beta  = params["beta"][None, :]

    # AvgPool window matrix with 1/135 folded in, block-diagonal over batch and
    # arranged time-major: row t*B + b == LSTM input (t, b).
    # TODO(synk): at large batch the block-diagonal form wastes MXU K-depth on
    # zeros; switch to a per-batch (SEQ, W1P) pool applied batch-wise.
    widx = jnp.arange(W1P)[None, :]
    starts = (jnp.arange(SEQ) * POOL_S)[:, None]
    pm = ((widx >= starts) & (widx < starts + POOL_K)).astype(jnp.float32) / POOL_K
    pool_mat = jnp.einsum("tw,bc->tbcw", pm,
                          jnp.eye(B, dtype=jnp.float32)).reshape(SEQ * B, MROW)
    pool_mat = pool_mat.astype(jnp.bfloat16)

    wihT = params["wih"].T.astype(jnp.bfloat16)                       # (C2, 4H)
    whhT = params["whh"].T.astype(jnp.bfloat16)                       # (HID, 4H)
    fcwT = params["fcw"].T                                            # (HID, n_out) f32

    args = (cols, wf_full, gamma, beta, pool_mat,
            wihT, whhT, params["blstm"], fcwT, params["fcb"])

    def const_spec(a):
        return pl.BlockSpec(a.shape, lambda i, _n=a.ndim: (0,) * _n)

    in_specs = ([pl.BlockSpec((1, W1P, KF), lambda i: (i, 0, 0))]
                + [const_spec(a) for a in args[1:]])

    grid_spec = pltpu.PrefetchScalarGridSpec(
        num_scalar_prefetch=0,
        grid=(B,),   # one conv-row tile (batch element) per step; BN couples
                     # the batch -> reduction axis ("arbitrary") with the
                     # BN/pool/LSTM/FC epilogue on the last step.
        in_specs=in_specs,
        out_specs=pl.BlockSpec((B, n_outputs), lambda i: (0, 0)),
        scratch_shapes=[pltpu.VMEM((MROW, C2), jnp.float32)])         # conv output

    out = pl.pallas_call(
        kernel,
        out_shape=jax.ShapeDtypeStruct((B, n_outputs), jnp.float32),
        grid_spec=grid_spec,
        compiler_params=pltpu.CompilerParams(
            dimension_semantics=("arbitrary",),
            vmem_limit_bytes=16 * 1024 * 1024),   # right-sized (v7x: 64 MiB phys)
    )(*args)
    return out


if __name__ == "__main__":
    # Small shapes consistent with the module's hardcoded kernels:
    #   W=200 -> conv width 150 -> pooled seq len (150-135)//5+1 = 4
    B, W = 2, 200
    n_neurons, n_outputs = 32, 4

    key = jax.random.PRNGKey(0)
    kx, kp = jax.random.split(key)
    x = jax.random.normal(kx, (B, 1, H_IN, W), jnp.float32)
    params = init_params(kp, n_neurons, n_outputs)

    out = jax.block_until_ready(lstm_model_forward(x, params, n_neurons, n_outputs))
    assert out.shape == (B, n_outputs), out.shape
    assert bool(jnp.all(jnp.isfinite(out)))
    print("KERNEL_OK")
</pallas_src>

<mosaic_0001>
module attributes {stable_mosaic.version = 11 : i64} {
  func.func @kernel(%arg0: i32, %arg1: memref<1x160x1152xbf16, #tpu.memory_space<vmem>>, %arg2: memref<1152x40xbf16, #tpu.memory_space<vmem>>, %arg3: memref<1x40xf32, #tpu.memory_space<vmem>>, %arg4: memref<1x40xf32, #tpu.memory_space<vmem>>, %arg5: memref<8x320xbf16, #tpu.memory_space<vmem>>, %arg6: memref<40x128xbf16, #tpu.memory_space<vmem>>, %arg7: memref<32x128xbf16, #tpu.memory_space<vmem>>, %arg8: memref<1x128xf32, #tpu.memory_space<vmem>>, %arg9: memref<32x4xf32, #tpu.memory_space<vmem>>, %arg10: memref<1x4xf32, #tpu.memory_space<vmem>>, %arg11: memref<2x4xf32, #tpu.memory_space<vmem>>, %arg12: memref<320x40xf32, #tpu.memory_space<vmem>>) attributes {dimension_semantics = [#tpu.dimension_semantics<arbitrary>], iteration_bounds = array<i64: 2>, scalar_prefetch = 0 : i64, scratch_operands = 1 : i64, tpu.core_type = #tpu.core_type<tc>, window_params = [{transform_indices = @transform_0, window_bounds = array<i64: 1, 160, 1152>}, {pipeline_mode = #tpu.pipeline_mode<synchronous>, transform_indices = @transform_1, window_bounds = array<i64: 1152, 40>}, {pipeline_mode = #tpu.pipeline_mode<synchronous>, transform_indices = @transform_2, window_bounds = array<i64: 1, 40>}, {pipeline_mode = #tpu.pipeline_mode<synchronous>, transform_indices = @transform_3, window_bounds = array<i64: 1, 40>}, {pipeline_mode = #tpu.pipeline_mode<synchronous>, transform_indices = @transform_4, window_bounds = array<i64: 8, 320>}, {pipeline_mode = #tpu.pipeline_mode<synchronous>, transform_indices = @transform_5, window_bounds = array<i64: 40, 128>}, {pipeline_mode = #tpu.pipeline_mode<synchronous>, transform_indices = @transform_6, window_bounds = array<i64: 32, 128>}, {pipeline_mode = #tpu.pipeline_mode<synchronous>, transform_indices = @transform_7, window_bounds = array<i64: 1, 128>}, {pipeline_mode = #tpu.pipeline_mode<synchronous>, transform_indices = @transform_8, window_bounds = array<i64: 32, 4>}, {pipeline_mode = #tpu.pipeline_mode<synchronous>, transform_indices = @transform_9, window_bounds = array<i64: 1, 4>}, {pipeline_mode = #tpu.pipeline_mode<synchronous>, transform_indices = @transform_10, window_bounds = array<i64: 2, 4>}]} {
    %c0 = arith.constant 0 : index
    %c0_0 = arith.constant 0 : index
    %c0_1 = arith.constant 0 : index
    %0 = vector.load %arg1[%c0, %c0_0, %c0_1] : memref<1x160x1152xbf16, #tpu.memory_space<vmem>>, vector<1x160x1152xbf16>
    %1 = vector.shape_cast %0 : vector<1x160x1152xbf16> to vector<160x1152xbf16>
    %c0_2 = arith.constant 0 : index
    %c0_3 = arith.constant 0 : index
    %2 = vector.load %arg2[%c0_2, %c0_3] : memref<1152x40xbf16, #tpu.memory_space<vmem>>, vector<1152x40xbf16>
    %cst = arith.constant dense<0.000000e+00> : vector<160x40xf32>
    %3 = tpu.matmul %1, %2, %cst {dimension_numbers = #tpu.dot_dimension_numbers<[1], [0], [0], [1], [0, 0, 1, 1], [], []>} : vector<160x1152xbf16>, vector<1152x40xbf16>, vector<160x40xf32> -> vector<160x40xf32>
    %c160_i32 = arith.constant 160 : i32
    %4 = arith.muli %arg0, %c160_i32 : i32
    %5 = tpu.assume_multiple %4, 8 : i32
    %6 = arith.index_cast %5 : i32 to index
    %c0_4 = arith.constant 0 : index
    %7 = vector.load %arg12[%6, %c0_4] : memref<320x40xf32, #tpu.memory_space<vmem>>, vector<160x40xf32>
    tpu.vector_store %arg12[%6, %c0_4], %3 {strides = array<i32>} : memref<320x40xf32, #tpu.memory_space<vmem>>, vector<160x40xf32>,
    %c1_i32 = arith.constant 1 : i32
    %8 = arith.cmpi eq, %arg0, %c1_i32 : i32
    %9 = arith.extui %8 : i1 to i32
    %c0_i32 = arith.constant 0 : i32
    %10 = arith.cmpi ne, %9, %c0_i32 : i32
    scf.if %10 {
      %c0_5 = arith.constant 0 : index
      %c0_6 = arith.constant 0 : index
      %11 = vector.load %arg12[%c0_5, %c0_6] : memref<320x40xf32, #tpu.memory_space<vmem>>, vector<320x40xf32>
      %cst_7 = arith.constant dense<0.000000e+00> : vector<40xf32>
      %12 = vector.multi_reduction <add>, %11, %cst_7 [0] : vector<320x40xf32> to vector<40xf32>
      %13 = vector.shape_cast %12 : vector<40xf32> to vector<1x40xf32>
      %cst_8 = arith.constant 0.00333333341 : f32
      %14 = vector.broadcast %cst_8 : f32 to vector<1x40xf32>
      %15 = arith.mulf %13, %14 : vector<1x40xf32>
      %16 = vector.broadcast %15 : vector<1x40xf32> to vector<320x40xf32>
      %17 = arith.subf %11, %16 : vector<320x40xf32>
      %18 = arith.mulf %17, %17 : vector<320x40xf32>
      %cst_9 = arith.constant dense<0.000000e+00> : vector<40xf32>
      %19 = vector.multi_reduction <add>, %18, %cst_9 [0] : vector<320x40xf32> to vector<40xf32>
      %20 = vector.shape_cast %19 : vector<40xf32> to vector<1x40xf32>
      %cst_10 = arith.constant 2.000000e+01 : f32
      %21 = vector.broadcast %cst_10 : f32 to vector<1x40xf32>
      %22 = arith.mulf %21, %15 : vector<1x40xf32>
      %23 = arith.mulf %22, %15 : vector<1x40xf32>
      %24 = arith.subf %20, %23 : vector<1x40xf32>
      %cst_11 = arith.constant 0.00333333341 : f32
      %25 = vector.broadcast %cst_11 : f32 to vector<1x40xf32>
      %26 = arith.mulf %24, %25 : vector<1x40xf32>
      %c0_12 = arith.constant 0 : index
      %c0_13 = arith.constant 0 : index
      %27 = vector.load %arg3[%c0_12, %c0_13] : memref<1x40xf32, #tpu.memory_space<vmem>>, vector<1x40xf32>
      %cst_14 = arith.constant 9.99999974E-6 : f32
      %28 = vector.broadcast %cst_14 : f32 to vector<1x40xf32>
      %29 = arith.addf %26, %28 : vector<1x40xf32>
      %30 = math.rsqrt %29 : vector<1x40xf32>
      %31 = arith.mulf %27, %30 : vector<1x40xf32>
      %c0_15 = arith.constant 0 : index
      %c0_16 = arith.constant 0 : index
      %32 = vector.load %arg4[%c0_15, %c0_16] : memref<1x40xf32, #tpu.memory_space<vmem>>, vector<1x40xf32>
      %33 = arith.mulf %15, %31 : vector<1x40xf32>
      %34 = arith.subf %32, %33 : vector<1x40xf32>
      %35 = vector.broadcast %31 : vector<1x40xf32> to vector<320x40xf32>
      %36 = arith.mulf %11, %35 : vector<320x40xf32>
      %37 = vector.broadcast %34 : vector<1x40xf32> to vector<320x40xf32>
      %38 = arith.addf %36, %37 : vector<320x40xf32>
      %cst_17 = arith.constant 0.000000e+00 : f32
      %39 = vector.broadcast %cst_17 : f32 to vector<320x40xf32>
      %40 = arith.maximumf %38, %39 : vector<320x40xf32>
      %c0_18 = arith.constant 0 : index
      %c0_19 = arith.constant 0 : index
      %41 = vector.load %arg5[%c0_18, %c0_19] : memref<8x320xbf16, #tpu.memory_space<vmem>>, vector<8x320xbf16>
      %42 = arith.truncf %40 : vector<320x40xf32> to vector<320x40xbf16>
      %cst_20 = arith.constant dense<0.000000e+00> : vector<8x40xf32>
      %43 = tpu.matmul %41, %42, %cst_20 {dimension_numbers = #tpu.dot_dimension_numbers<[1], [0], [0], [1], [0, 0, 1, 1], [], []>} : vector<8x320xbf16>, vector<320x40xbf16>, vector<8x40xf32> -> vector<8x40xf32>
      %44 = arith.truncf %43 : vector<8x40xf32> to vector<8x40xbf16>
      %c0_21 = arith.constant 0 : index
      %c0_22 = arith.constant 0 : index
      %45 = vector.load %arg6[%c0_21, %c0_22] : memref<40x128xbf16, #tpu.memory_space<vmem>>, vector<40x128xbf16>
      %cst_23 = arith.constant dense<0.000000e+00> : vector<8x128xf32>
      %46 = tpu.matmul %44, %45, %cst_23 {dimension_numbers = #tpu.dot_dimension_numbers<[1], [0], [0], [1], [0, 0, 1, 1], [], []>} : vector<8x40xbf16>, vector<40x128xbf16>, vector<8x128xf32> -> vector<8x128xf32>
      %c0_24 = arith.constant 0 : index
      %c0_25 = arith.constant 0 : index
      %47 = vector.load %arg8[%c0_24, %c0_25] : memref<1x128xf32, #tpu.memory_space<vmem>>, vector<1x128xf32>
      %48 = vector.broadcast %47 : vector<1x128xf32> to vector<8x128xf32>
      %49 = arith.addf %46, %48 : vector<8x128xf32>
      %c0_26 = arith.constant 0 : index
      %c0_27 = arith.constant 0 : index
      %50 = vector.load %arg7[%c0_26, %c0_27] : memref<32x128xbf16, #tpu.memory_space<vmem>>, vector<32x128xbf16>
      %cst_28 = arith.constant 0.000000e+00 : f32
      %51 = vector.broadcast %cst_28 : f32 to vector<2x32xf32>
      %52 = vector.extract_strided_slice %49 {offsets = [0, 0], sizes = [2, 128], strides = [1, 1]} : vector<8x128xf32> to vector<2x128xf32>
      %53 = arith.truncf %51 : vector<2x32xf32> to vector<2x32xbf16>
      %cst_29 = arith.constant dense<0.000000e+00> : vector<2x128xf32>
      %54 = tpu.matmul %53, %50, %cst_29 {dimension_numbers = #tpu.dot_dimension_numbers<[1], [0], [0], [1], [0, 0, 1, 1], [], []>} : vector<2x32xbf16>, vector<32x128xbf16>, vector<2x128xf32> -> vector<2x128xf32>
      %55 = arith.addf %52, %54 : vector<2x128xf32>
      %56 = arith.negf %55 : vector<2x128xf32>
      %57 = math.exp %56 : vector<2x128xf32>
      %cst_30 = arith.constant 1.000000e+00 : f32
      %58 = vector.broadcast %cst_30 : f32 to vector<2x128xf32>
      %59 = arith.addf %58, %57 : vector<2x128xf32>
      %60 = arith.divf %58, %59 : vector<2x128xf32>
      %61 = vector.extract_strided_slice %60 {offsets = [0, 0], sizes = [2, 32], strides = [1, 1]} : vector<2x128xf32> to vector<2x32xf32>
      %62 = vector.extract_strided_slice %60 {offsets = [0, 32], sizes = [2, 32], strides = [1, 1]} : vector<2x128xf32> to vector<2x32xf32>
      %63 = vector.extract_strided_slice %60 {offsets = [0, 96], sizes = [2, 32], strides = [1, 1]} : vector<2x128xf32> to vector<2x32xf32>
      %64 = vector.extract_strided_slice %55 {offsets = [0, 64], sizes = [2, 32], strides = [1, 1]} : vector<2x128xf32> to vector<2x32xf32>
      %65 = math.tanh %64 : vector<2x32xf32>
      %66 = arith.mulf %62, %51 : vector<2x32xf32>
      %67 = arith.mulf %61, %65 : vector<2x32xf32>
      %68 = arith.addf %66, %67 : vector<2x32xf32>
      %69 = math.tanh %68 : vector<2x32xf32>
      %70 = arith.mulf %63, %69 : vector<2x32xf32>
      %71 = vector.extract_strided_slice %49 {offsets = [2, 0], sizes = [2, 128], strides = [1, 1]} : vector<8x128xf32> to vector<2x128xf32>
      %72 = arith.truncf %70 : vector<2x32xf32> to vector<2x32xbf16>
      %cst_31 = arith.constant dense<0.000000e+00> : vector<2x128xf32>
      %73 = tpu.matmul %72, %50, %cst_31 {dimension_numbers = #tpu.dot_dimension_numbers<[1], [0], [0], [1], [0, 0, 1, 1], [], []>} : vector<2x32xbf16>, vector<32x128xbf16>, vector<2x128xf32> -> vector<2x128xf32>
      %74 = arith.addf %71, %73 : vector<2x128xf32>
      %75 = arith.negf %74 : vector<2x128xf32>
      %76 = math.exp %75 : vector<2x128xf32>
      %cst_32 = arith.constant 1.000000e+00 : f32
      %77 = vector.broadcast %cst_32 : f32 to vector<2x128xf32>
      %78 = arith.addf %77, %76 : vector<2x128xf32>
      %79 = arith.divf %77, %78 : vector<2x128xf32>
      %80 = vector.extract_strided_slice %79 {offsets = [0, 0], sizes = [2, 32], strides = [1, 1]} : vector<2x128xf32> to vector<2x32xf32>
      %81 = vector.extract_strided_slice %79 {offsets = [0, 32], sizes = [2, 32], strides = [1, 1]} : vector<2x128xf32> to vector<2x32xf32>
      %82 = vector.extract_strided_slice %79 {offsets = [0, 96], sizes = [2, 32], strides = [1, 1]} : vector<2x128xf32> to vector<2x32xf32>
      %83 = vector.extract_strided_slice %74 {offsets = [0, 64], sizes = [2, 32], strides = [1, 1]} : vector<2x128xf32> to vector<2x32xf32>
      %84 = math.tanh %83 : vector<2x32xf32>
      %85 = arith.mulf %81, %68 : vector<2x32xf32>
      %86 = arith.mulf %80, %84 : vector<2x32xf32>
      %87 = arith.addf %85, %86 : vector<2x32xf32>
      %88 = math.tanh %87 : vector<2x32xf32>
      %89 = arith.mulf %82, %88 : vector<2x32xf32>
      %90 = vector.extract_strided_slice %49 {offsets = [4, 0], sizes = [2, 128], strides = [1, 1]} : vector<8x128xf32> to vector<2x128xf32>
      %91 = arith.truncf %89 : vector<2x32xf32> to vector<2x32xbf16>
      %cst_33 = arith.constant dense<0.000000e+00> : vector<2x128xf32>
      %92 = tpu.matmul %91, %50, %cst_33 {dimension_numbers = #tpu.dot_dimension_numbers<[1], [0], [0], [1], [0, 0, 1, 1], [], []>} : vector<2x32xbf16>, vector<32x128xbf16>, vector<2x128xf32> -> vector<2x128xf32>
      %93 = arith.addf %90, %92 : vector<2x128xf32>
      %94 = arith.negf %93 : vector<2x128xf32>
      %95 = math.exp %94 : vector<2x128xf32>
      %cst_34 = arith.constant 1.000000e+00 : f32
      %96 = vector.broadcast %cst_34 : f32 to vector<2x128xf32>
      %97 = arith.addf %96, %95 : vector<2x128xf32>
      %98 = arith.divf %96, %97 : vector<2x128xf32>
      %99 = vector.extract_strided_slice %98 {offsets = [0, 0], sizes = [2, 32], strides = [1, 1]} : vector<2x128xf32> to vector<2x32xf32>
      %100 = vector.extract_strided_slice %98 {offsets = [0, 32], sizes = [2, 32], strides = [1, 1]} : vector<2x128xf32> to vector<2x32xf32>
      %101 = vector.extract_strided_slice %98 {offsets = [0, 96], sizes = [2, 32], strides = [1, 1]} : vector<2x128xf32> to vector<2x32xf32>
      %102 = vector.extract_strided_slice %93 {offsets = [0, 64], sizes = [2, 32], strides = [1, 1]} : vector<2x128xf32> to vector<2x32xf32>
      %103 = math.tanh %102 : vector<2x32xf32>
      %104 = arith.mulf %100, %87 : vector<2x32xf32>
      %105 = arith.mulf %99, %103 : vector<2x32xf32>
      %106 = arith.addf %104, %105 : vector<2x32xf32>
      %107 = math.tanh %106 : vector<2x32xf32>
      %108 = arith.mulf %101, %107 : vector<2x32xf32>
      %109 = vector.extract_strided_slice %49 {offsets = [6, 0], sizes = [2, 128], strides = [1, 1]} : vector<8x128xf32> to vector<2x128xf32>
      %110 = arith.truncf %108 : vector<2x32xf32> to vector<2x32xbf16>
      %cst_35 = arith.constant dense<0.000000e+00> : vector<2x128xf32>
      %111 = tpu.matmul %110, %50, %cst_35 {dimension_numbers = #tpu.dot_dimension_numbers<[1], [0], [0], [1], [0, 0, 1, 1], [], []>} : vector<2x32xbf16>, vector<32x128xbf16>, vector<2x128xf32> -> vector<2x128xf32>
      %112 = arith.addf %109, %111 : vector<2x128xf32>
      %113 = arith.negf %112 : vector<2x128xf32>
      %114 = math.exp %113 : vector<2x128xf32>
      %cst_36 = arith.constant 1.000000e+00 : f32
      %115 = vector.broadcast %cst_36 : f32 to vector<2x128xf32>
      %116 = arith.addf %115, %114 : vector<2x128xf32>
      %117 = arith.divf %115, %116 : vector<2x128xf32>
      %118 = vector.extract_strided_slice %117 {offsets = [0, 0], sizes = [2, 32], strides = [1, 1]} : vector<2x128xf32> to vector<2x32xf32>
      %119 = vector.extract_strided_slice %117 {offsets = [0, 32], sizes = [2, 32], strides = [1, 1]} : vector<2x128xf32> to vector<2x32xf32>
      %120 = vector.extract_strided_slice %117 {offsets = [0, 96], sizes = [2, 32], strides = [1, 1]} : vector<2x128xf32> to vector<2x32xf32>
      %121 = vector.extract_strided_slice %112 {offsets = [0, 64], sizes = [2, 32], strides = [1, 1]} : vector<2x128xf32> to vector<2x32xf32>
      %122 = math.tanh %121 : vector<2x32xf32>
      %123 = arith.mulf %119, %106 : vector<2x32xf32>
      %124 = arith.mulf %118, %122 : vector<2x32xf32>
      %125 = arith.addf %123, %124 : vector<2x32xf32>
      %126 = math.tanh %125 : vector<2x32xf32>
      %127 = arith.mulf %120, %126 : vector<2x32xf32>
      %128 = vector.extract_strided_slice %49 {offsets = [0, 0], sizes = [2, 128], strides = [1, 1]} : vector<8x128xf32> to vector<2x128xf32>
      %129 = arith.truncf %127 : vector<2x32xf32> to vector<2x32xbf16>
      %cst_37 = arith.constant dense<0.000000e+00> : vector<2x128xf32>
      %130 = tpu.matmul %129, %50, %cst_37 {dimension_numbers = #tpu.dot_dimension_numbers<[1], [0], [0], [1], [0, 0, 1, 1], [], []>} : vector<2x32xbf16>, vector<32x128xbf16>, vector<2x128xf32> -> vector<2x128xf32>
      %131 = arith.addf %128, %130 : vector<2x128xf32>
      %132 = arith.negf %131 : vector<2x128xf32>
      %133 = math.exp %132 : vector<2x128xf32>
      %cst_38 = arith.constant 1.000000e+00 : f32
      %134 = vector.broadcast %cst_38 : f32 to vector<2x128xf32>
      %135 = arith.addf %134, %133 : vector<2x128xf32>
      %136 = arith.divf %134, %135 : vector<2x128xf32>
      %137 = vector.extract_strided_slice %136 {offsets = [0, 0], sizes = [2, 32], strides = [1, 1]} : vector<2x128xf32> to vector<2x32xf32>
      %138 = vector.extract_strided_slice %136 {offsets = [0, 32], sizes = [2, 32], strides = [1, 1]} : vector<2x128xf32> to vector<2x32xf32>
      %139 = vector.extract_strided_slice %136 {offsets = [0, 96], sizes = [2, 32], strides = [1, 1]} : vector<2x128xf32> to vector<2x32xf32>
      %140 = vector.extract_strided_slice %131 {offsets = [0, 64], sizes = [2, 32], strides = [1, 1]} : vector<2x128xf32> to vector<2x32xf32>
      %141 = math.tanh %140 : vector<2x32xf32>
      %142 = arith.mulf %138, %127 : vector<2x32xf32>
      %143 = arith.mulf %137, %141 : vector<2x32xf32>
      %144 = arith.addf %142, %143 : vector<2x32xf32>
      %145 = math.tanh %144 : vector<2x32xf32>
      %146 = arith.mulf %139, %145 : vector<2x32xf32>
      %147 = vector.extract_strided_slice %49 {offsets = [2, 0], sizes = [2, 128], strides = [1, 1]} : vector<8x128xf32> to vector<2x128xf32>
      %148 = arith.truncf %146 : vector<2x32xf32> to vector<2x32xbf16>
      %cst_39 = arith.constant dense<0.000000e+00> : vector<2x128xf32>
      %149 = tpu.matmul %148, %50, %cst_39 {dimension_numbers = #tpu.dot_dimension_numbers<[1], [0], [0], [1], [0, 0, 1, 1], [], []>} : vector<2x32xbf16>, vector<32x128xbf16>, vector<2x128xf32> -> vector<2x128xf32>
      %150 = arith.addf %147, %149 : vector<2x128xf32>
      %151 = arith.negf %150 : vector<2x128xf32>
      %152 = math.exp %151 : vector<2x128xf32>
      %cst_40 = arith.constant 1.000000e+00 : f32
      %153 = vector.broadcast %cst_40 : f32 to vector<2x128xf32>
      %154 = arith.addf %153, %152 : vector<2x128xf32>
      %155 = arith.divf %153, %154 : vector<2x128xf32>
      %156 = vector.extract_strided_slice %155 {offsets = [0, 0], sizes = [2, 32], strides = [1, 1]} : vector<2x128xf32> to vector<2x32xf32>
      %157 = vector.extract_strided_slice %155 {offsets = [0, 32], sizes = [2, 32], strides = [1, 1]} : vector<2x128xf32> to vector<2x32xf32>
      %158 = vector.extract_strided_slice %155 {offsets = [0, 96], sizes = [2, 32], strides = [1, 1]} : vector<2x128xf32> to vector<2x32xf32>
      %159 = vector.extract_strided_slice %150 {offsets = [0, 64], sizes = [2, 32], strides = [1, 1]} : vector<2x128xf32> to vector<2x32xf32>
      %160 = math.tanh %159 : vector<2x32xf32>
      %161 = arith.mulf %157, %144 : vector<2x32xf32>
      %162 = arith.mulf %156, %160 : vector<2x32xf32>
      %163 = arith.addf %161, %162 : vector<2x32xf32>
      %164 = math.tanh %163 : vector<2x32xf32>
      %165 = arith.mulf %158, %164 : vector<2x32xf32>
      %166 = vector.extract_strided_slice %49 {offsets = [4, 0], sizes = [2, 128], strides = [1, 1]} : vector<8x128xf32> to vector<2x128xf32>
      %167 = arith.truncf %165 : vector<2x32xf32> to vector<2x32xbf16>
      %cst_41 = arith.constant dense<0.000000e+00> : vector<2x128xf32>
      %168 = tpu.matmul %167, %50, %cst_41 {dimension_numbers = #tpu.dot_dimension_numbers<[1], [0], [0], [1], [0, 0, 1, 1], [], []>} : vector<2x32xbf16>, vector<32x128xbf16>, vector<2x128xf32> -> vector<2x128xf32>
      %169 = arith.addf %166, %168 : vector<2x128xf32>
      %170 = arith.negf %169 : vector<2x128xf32>
      %171 = math.exp %170 : vector<2x128xf32>
      %cst_42 = arith.constant 1.000000e+00 : f32
      %172 = vector.broadcast %cst_42 : f32 to vector<2x128xf32>
      %173 = arith.addf %172, %171 : vector<2x128xf32>
      %174 = arith.divf %172, %173 : vector<2x128xf32>
      %175 = vector.extract_strided_slice %174 {offsets = [0, 0], sizes = [2, 32], strides = [1, 1]} : vector<2x128xf32> to vector<2x32xf32>
      %176 = vector.extract_strided_slice %174 {offsets = [0, 32], sizes = [2, 32], strides = [1, 1]} : vector<2x128xf32> to vector<2x32xf32>
      %177 = vector.extract_strided_slice %174 {offsets = [0, 96], sizes = [2, 32], strides = [1, 1]} : vector<2x128xf32> to vector<2x32xf32>
      %178 = vector.extract_strided_slice %169 {offsets = [0, 64], sizes = [2, 32], strides = [1, 1]} : vector<2x128xf32> to vector<2x32xf32>
      %179 = math.tanh %178 : vector<2x32xf32>
      %180 = arith.mulf %176, %163 : vector<2x32xf32>
      %181 = arith.mulf %175, %179 : vector<2x32xf32>
      %182 = arith.addf %180, %181 : vector<2x32xf32>
      %183 = math.tanh %182 : vector<2x32xf32>
      %184 = arith.mulf %177, %183 : vector<2x32xf32>
      %185 = vector.extract_strided_slice %49 {offsets = [6, 0], sizes = [2, 128], strides = [1, 1]} : vector<8x128xf32> to vector<2x128xf32>
      %186 = arith.truncf %184 : vector<2x32xf32> to vector<2x32xbf16>
      %cst_43 = arith.constant dense<0.000000e+00> : vector<2x128xf32>
      %187 = tpu.matmul %186, %50, %cst_43 {dimension_numbers = #tpu.dot_dimension_numbers<[1], [0], [0], [1], [0, 0, 1, 1], [], []>} : vector<2x32xbf16>, vector<32x128xbf16>, vector<2x128xf32> -> vector<2x128xf32>
      %188 = arith.addf %185, %187 : vector<2x128xf32>
      %189 = arith.negf %188 : vector<2x128xf32>
      %190 = math.exp %189 : vector<2x128xf32>
      %cst_44 = arith.constant 1.000000e+00 : f32
      %191 = vector.broadcast %cst_44 : f32 to vector<2x128xf32>
      %192 = arith.addf %191, %190 : vector<2x128xf32>
      %193 = arith.divf %191, %192 : vector<2x128xf32>
      %194 = vector.extract_strided_slice %193 {offsets = [0, 0], sizes = [2, 32], strides = [1, 1]} : vector<2x128xf32> to vector<2x32xf32>
      %195 = vector.extract_strided_slice %193 {offsets = [0, 32], sizes = [2, 32], strides = [1, 1]} : vector<2x128xf32> to vector<2x32xf32>
      %196 = vector.extract_strided_slice %193 {offsets = [0, 96], sizes = [2, 32], strides = [1, 1]} : vector<2x128xf32> to vector<2x32xf32>
      %197 = vector.extract_strided_slice %188 {offsets = [0, 64], sizes = [2, 32], strides = [1, 1]} : vector<2x128xf32> to vector<2x32xf32>
      %198 = math.tanh %197 : vector<2x32xf32>
      %199 = arith.mulf %195, %182 : vector<2x32xf32>
      %200 = arith.mulf %194, %198 : vector<2x32xf32>
      %201 = arith.addf %199, %200 : vector<2x32xf32>
      %202 = math.tanh %201 : vector<2x32xf32>
      %203 = arith.mulf %196, %202 : vector<2x32xf32>
      %c0_45 = arith.constant 0 : index
      %c0_46 = arith.constant 0 : index
      %204 = vector.load %arg9[%c0_45, %c0_46] : memref<32x4xf32, #tpu.memory_space<vmem>>, vector<32x4xf32>
      %cst_47 = arith.constant dense<0.000000e+00> : vector<2x4xf32>
      %205 = tpu.matmul %203, %204, %cst_47 {dimension_numbers = #tpu.dot_dimension_numbers<[1], [0], [0], [1], [0, 0, 1, 1], [], []>} : vector<2x32xf32>, vector<32x4xf32>, vector<2x4xf32> -> vector<2x4xf32>
      %c0_48 = arith.constant 0 : index
      %c0_49 = arith.constant 0 : index
      %206 = vector.load %arg10[%c0_48, %c0_49] : memref<1x4xf32, #tpu.memory_space<vmem>>, vector<1x4xf32>
      %207 = vector.broadcast %206 : vector<1x4xf32> to vector<2x4xf32>
      %208 = arith.addf %205, %207 : vector<2x4xf32>
      %c0_50 = arith.constant 0 : index
      %c0_51 = arith.constant 0 : index
      %209 = vector.load %arg11[%c0_50, %c0_51] : memref<2x4xf32, #tpu.memory_space<vmem>>, vector<2x4xf32>
      tpu.vector_store %arg11[%c0_50, %c0_51], %208 {strides = array<i32>} : memref<2x4xf32, #tpu.memory_space<vmem>>, vector<2x4xf32>,
    } else {
    }
    return
  }
  func.func @transform_0(%arg0: i32) -> (i32, i32, i32) {
    %c0_i32 = arith.constant 0 : i32
    %c0_i32_0 = arith.constant 0 : i32
    %c0_i32_1 = arith.constant 0 : i32
    return %arg0, %c0_i32, %c0_i32_0 : i32, i32, i32
  }
  func.func @transform_1(%arg0: i32) -> (i32, i32) {
    %c0_i32 = arith.constant 0 : i32
    %c0_i32_0 = arith.constant 0 : i32
    %c0_i32_1 = arith.constant 0 : i32
    return %c0_i32, %c0_i32_0 : i32, i32
  }
  func.func @transform_2(%arg0: i32) -> (i32, i32) {
    %c0_i32 = arith.constant 0 : i32
    %c0_i32_0 = arith.constant 0 : i32
    %c0_i32_1 = arith.constant 0 : i32
    return %c0_i32, %c0_i32_0 : i32, i32
  }
  func.func @transform_3(%arg0: i32) -> (i32, i32) {
    %c0_i32 = arith.constant 0 : i32
    %c0_i32_0 = arith.constant 0 : i32
    %c0_i32_1 = arith.constant 0 : i32
    return %c0_i32, %c0_i32_0 : i32, i32
  }
  func.func @transform_4(%arg0: i32) -> (i32, i32) {
    %c0_i32 = arith.constant 0 : i32
    %c0_i32_0 = arith.constant 0 : i32
    %c0_i32_1 = arith.constant 0 : i32
    return %c0_i32, %c0_i32_0 : i32, i32
  }
  func.func @transform_5(%arg0: i32) -> (i32, i32) {
    %c0_i32 = arith.constant 0 : i32
    %c0_i32_0 = arith.constant 0 : i32
    %c0_i32_1 = arith.constant 0 : i32
    return %c0_i32, %c0_i32_0 : i32, i32
  }
  func.func @transform_6(%arg0: i32) -> (i32, i32) {
    %c0_i32 = arith.constant 0 : i32
    %c0_i32_0 = arith.constant 0 : i32
    %c0_i32_1 = arith.constant 0 : i32
    return %c0_i32, %c0_i32_0 : i32, i32
  }
  func.func @transform_7(%arg0: i32) -> (i32, i32) {
    %c0_i32 = arith.constant 0 : i32
    %c0_i32_0 = arith.constant 0 : i32
    %c0_i32_1 = arith.constant 0 : i32
    return %c0_i32, %c0_i32_0 : i32, i32
  }
  func.func @transform_8(%arg0: i32) -> (i32, i32) {
    %c0_i32 = arith.constant 0 : i32
    %c0_i32_0 = arith.constant 0 : i32
    %c0_i32_1 = arith.constant 0 : i32
    return %c0_i32, %c0_i32_0 : i32, i32
  }
  func.func @transform_9(%arg0: i32) -> (i32, i32) {
    %c0_i32 = arith.constant 0 : i32
    %c0_i32_0 = arith.constant 0 : i32
    %c0_i32_1 = arith.constant 0 : i32
    return %c0_i32, %c0_i32_0 : i32, i32
  }
  func.func @transform_10(%arg0: i32) -> (i32, i32) {
    %c0_i32 = arith.constant 0 : i32
    %c0_i32_0 = arith.constant 0 : i32
    %c0_i32_1 = arith.constant 0 : i32
    return %c0_i32, %c0_i32_0 : i32, i32
  }
}

</mosaic_0001>

<bundles_post_ra>
// kernel: tpu_custom_call.1
= control target key start
LH: loop header
LB: loop body
LE: loop exit
PB: predicated region body
PF: predicated region fallthrough
CT: control target
= control target key end

     0   :  { %15 = vsyncpa [#allocation4], 0  ;;  %s5891_s0 = inlined_call_operand.hbm [shape: bf16[2,160,1152], index: 0, kind: input, shape index: {}]   ;;  %s5892_s1 = inlined_call_operand.vmem [shape: bf16[1152,40], index: 1, kind: input, shape index: {}]   ;;  %s5893_s2 = inlined_call_operand.vmem [shape: f32[1,40], index: 2, kind: input, shape index: {}]   ;;  %s5894_s3 = inlined_call_operand.vmem [shape: f32[1,40], index: 3, kind: input, shape index: {}]   ;;  %s5895_s4 = inlined_call_operand.vmem [shape: bf16[8,320], index: 4, kind: input, shape index: {}]   ;;  %s5896_s5 = inlined_call_operand.vmem [shape: bf16[40,128], index: 5, kind: input, shape index: {}]   ;;  %s5897_s6 = inlined_call_operand.vmem [shape: bf16[32,128], index: 6, kind: input, shape index: {}]   ;;  %s5898_s7 = inlined_call_operand.vmem [shape: f32[1,128], index: 7, kind: input, shape index: {}]   ;;  %s5899_s8 = inlined_call_operand.vmem [shape: f32[32,4], index: 8, kind: input, shape index: {}]   ;;  %s5900_s9 = inlined_call_operand.vmem [shape: f32[1,4], index: 9, kind: input, shape index: {}]   ;;  %s5901_s10 = inlined_call_operand.hbm [shape: f32[2,4], index: 10, kind: output, shape index: {}]  }
   0x1   :  { %17 = vsyncpa [#allocation4 + $0x1], 0 }
   0x2   :  { %18 = vsyncpa [#allocation5], 0  ;;  %s4734_s13 = smov 0   ;;  %s4736_s14 = smov 0  }
   0x3   :  { %s4738_s15 = smov 0   ;;  %s4740_s16 = smov 0  }
   0x4 LB: > { %s4753_s17 = sadd.s32 4294967295, %s4667_s16   ;;  %s4756_s18 = sadd.s32 1, %s4667_s16   ;;  %s4667_s16 = sphi %s4740_s16, %s5914_s16   ;;  %s4663_s15 = sphi %s4738_s15, %s5913_s15   ;;  %s4659_s14 = sphi %s4736_s14, %s5912_s14   ;;  %s4655_s13 = sphi %s4734_s13, %s5911_s13  }
   0x5   : > { %s28_s19 = ssub.s32 %s4667_s16, %s4756_s18  ;;  %s31_s20 = sadd.s32 1, %s4663_s15 }
   0x6   : > { %p29_p0 = scmp.eq.s32.totalorder %s28_s19, 0  ;;  %p38_p1 = scmp.ne.s32.totalorder %s4663_s15, %s4659_s14 }
   0x7   : > { %p39_p2 = scmp.eq.s32.totalorder %s4667_s16, 0  ;;  %p44_p3 = scmp.ne.s32.totalorder %s4659_s14, %s4655_s13 }
   0x8   : > { %s4766_s21 = scalar_select %p29_p0, %s4663_s15, %s31_s20  }
   0x9   : > { %p40_p4 = por %p39_p2, %p38_p1  ;;  %p45_p5 = scmp.eq.s32.totalorder %s4753_s17, 0 }
   0xa   : > { %p4253_p6 = scmp.lt.s32.totalorder %s4667_s16, 2  ;;  %s305_s23 = sand.u32 1, %s4663_s15  }
   0xb   : > { %p4770_p7 = por %p45_p5, %p44_p3  ;;  %s4240_s24 = smul.u32 720, %s305_s23 }
   0xc   : > { %s4241_s25 = smul.u32 11520, %s4667_s16  ;;  %p4776_p8 = pnand %p4253_p6, %p40_p4 }
   0xd   : > { %s309_s30 = scalar_lea.vmem [#allocation3], %s4240_s24  ;;  %s4788_s12 = scalar_lea.sflag [#allocation4], %s305_s23 }
   0xe   : > { %s4783_s29 = scalar_lea.hbm %s5891_s0, %s4241_s25  ;;  %s316_s11 = sshll.u32 %s309_s30, 4  ;;  %s4785_s11 = int_to_ptr.vmem [resolvable:$true] %s316_s11 }
   0xf   : > { %s4573_s13 = scalar_lea.hbm %s4783_s29, 11520  ;;  %p4575_p11 = pneg %p4776_p8 }
  0x10   : > { %p4574_p10 = scmp.ne.s32.totalorder %s4783_s29, %s4573_s13  ;;  %s4578_s25 = scalar_lea.hbm %s5891_s0, 23040 }
  0x11   : > { %p4579_p0 = scmp.lt.u32.totalorder %s4783_s29, %s5891_s0  ;;  %p4580_p1 = scmp.lt.u32.totalorder %s4578_s25, %s4573_s13 }
  0x12   : > { %p4576_p12 = pnand %p4575_p11, %p4574_p10  ;;  %p4582_p3 = scmp.lt.u32.totalorder %s4573_s13, %s4783_s29 }
  0x13   : > { %p4581_p2 = por %p4580_p1, %p4579_p0 }
  0x14   : > { %p4577_p13 = pneg %p4576_p12 }
  0x15   : > { %p4583_p4 = por %p4582_p3, %p4581_p2 }
  0x17   : > { %p4584_p5 = pnand %p4583_p4, %p4577_p13 }
  0x19   : > { %4587 = shalt.err (!%p4584_p5)
}
  0x1a   : > { %s4588_s23 = scalar_lea.vmem %s4785_s11, 11520  ;;  %s4669_s28 = smov [#allocation3]  }
  0x1b   : > { %p4589_p6 = scmp.ne.s32.totalorder %s4785_s11, %s4588_s23  ;;  %s4593_s30 = sshll.u32 %s4669_s28, 4  ;;  %s4594_s30 = int_to_ptr.vmem [resolvable:$false] %s4593_s30 }
  0x1c   : > { %s4595_s19 = scalar_lea.vmem %s4594_s30, 23040  ;;  %p4596_p9 = scmp.lt.s32.totalorder %s4785_s11, %s4594_s30 }
  0x1d   : > { %p4591_p10 = pnand %p4589_p6, %p4575_p11  ;;  %p4597_p0 = scmp.lt.s32.totalorder %s4595_s19, %s4588_s23 }
  0x1f   : > { %p4592_p12 = pneg %p4591_p10  ;;  %p4598_p1 = por %p4597_p0, %p4596_p9 }
  0x21   : > { %p4599_p2 = pnand %p4598_p1, %p4592_p12 }
  0x23   : > { %4602 = shalt.err (!%p4599_p2)
}
  0x24   : > { %s4670_s13 = smov 576   ;;  %s4671_s20 = smov 36  }
  0x25   : > { %4252 = dma.hbm_to_vmem [thread:$0]  (!%p4776_p8), %s4783_s29, 11520, %s4785_s11, %s4788_s12, %s4670_s13, %s4670_s13, %s4671_s20  }
  0x26   : > { %p324_p11 = scmp.lt.s32.totalorder %s4667_s16, 3  ;;  %p5907_p13 = scmp.ge.s32.totalorder %s4667_s16, 1 }
  0x28   : > { %p325_p3 = pnand %p5907_p13, %p324_p11 }
  0x29   : > { %s330_s25 = sand.u32 (!%p325_p3), 1, %s4659_s14  }
  0x2a   : > { %328 = sbr.rel (%p325_p3) target bundleno = 6857 (0x1ac9), region = 60  ;;  %s331_s24 = scalar_lea.sflag (!%p325_p3), [#allocation4], %s330_s25 }
  0x2b   : > { %s4242_s27 = smul.u32 (!%p325_p3), 720, %s330_s25 }
  0x2d   : > { %s4820_s23 = scalar_lea.vmem (!%p325_p3), [#allocation3], %s4242_s27 }
  0x31   : > { %4646 = dma.done.wait (%p4770_p7), %s331_s24, 11520  }
  0x32   : > { %4648 = vsyncadd (%p4770_p7), %s331_s24, 4294955776  ;;  %v4297_v0 = vld [vmem:[%s5892_s1 + $0x40] sm:$0xff]   ;;  %v4301_v4 = vld [vmem:[%s5892_s1 + $0x48] sm:$0xff]   ;;  %vm2070_vm0 = vcmask 326656   ;;  %p3670_p7 = scmp.ne.s32.totalorder %s4753_s17, 1 }
  0x33   : > { %v4298_v1 = vld [vmem:[%s5892_s1 + $0xc0] sm:$0xff]   ;;  %3703 = vmatprep.subr.bf16.mxu0 %v4297_v0  ;;  %v4302_v5 = vld [vmem:[%s5892_s1 + $0xc8] sm:$0xff]   ;;  %v4305_v8 = vld [vmem:[%s5892_s1 + $0x50] sm:$0xff]  }
  0x34   : > { %v4299_v2 = vld [vmem:[%s5892_s1] sm:$0xff]   ;;  %3779 = vmatprep.subr.bf16.mxu1 %v4298_v1  ;;  %v4303_v6 = vld [vmem:[%s5892_s1 + $0x8] sm:$0xff]   ;;  %v4306_v9 = vld [vmem:[%s5892_s1 + $0xd0] sm:$0xff]  }
  0x35   : > { %v4300_v3 = vld [vmem:[%s5892_s1 + $0x80] sm:$0xff]   ;;  %3704 = vmatpush3.bf16.msra.mxu0 %v4299_v2  ;;  %v4304_v7 = vld [vmem:[%s5892_s1 + $0x88] sm:$0xff]   ;;  %v4307_v10 = vld [vmem:[%s5892_s1 + $0x10] sm:$0xff]  }
  0x36   : > { %3780 = vmatpush3.bf16.msra.mxu1 %v4300_v3  ;;  %3705 = vmatprep.subr.bf16.mxu0 %v4301_v4  ;;  %v4308_v11 = vld [vmem:[%s5892_s1 + $0x90] sm:$0xff]   ;;  %v4309_v12 = vld [vmem:[%s5892_s1 + $0x58] sm:$0xff]   ;;  %v4313_v16 = vld [vmem:[%s5892_s1 + $0x60] sm:$0xff]  }
  0x37   : > { %3781 = vmatprep.subr.bf16.mxu1 %v4302_v5  ;;  %v4310_v13 = vld [vmem:[%s5892_s1 + $0xd8] sm:$0xff]   ;;  %v4314_v17 = vld [vmem:[%s5892_s1 + $0xe0] sm:$0xff]   ;;  %v4317_v20 = vld [vmem:[%s5892_s1 + $0x68] sm:$0xff]  }
  0x38   : > { %v4311_v14 = vld [vmem:[%s5892_s1 + $0x18] sm:$0xff]   ;;  %v4315_v18 = vld [vmem:[%s5892_s1 + $0x20] sm:$0xff]   ;;  %v4318_v21 = vld [vmem:[%s5892_s1 + $0xe8] sm:$0xff]  }
  0x39   : > { %3706 = vmatpush3.bf16.msra.mxu0 %v4303_v6  ;;  %v4312_v15 = vld [vmem:[%s5892_s1 + $0x98] sm:$0xff]   ;;  %v4316_v19 = vld [vmem:[%s5892_s1 + $0xa0] sm:$0xff]   ;;  %v4319_v22 = vld [vmem:[%s5892_s1 + $0x28] sm:$0xff]  }
  0x3a   : > { %3782 = vmatpush3.bf16.msra.mxu1 %v4304_v7  ;;  %3707 = vmatprep.subr.bf16.mxu0 %v4305_v8  ;;  %v4320_v23 = vld [vmem:[%s5892_s1 + $0xa8] sm:$0xff]   ;;  %v4321_v24 = vld [vmem:[%s5892_s1 + $0x70] sm:$0xff]   ;;  %v4325_v28 = vld [vmem:[%s5892_s1 + $0x78] sm:$0xff]  }
  0x3b   : > { %3783 = vmatprep.subr.bf16.mxu1 %v4306_v9  ;;  %v4322_v25 = vld [vmem:[%s5892_s1 + $0xf0] sm:$0xff]   ;;  %v4326_v29 = vld [vmem:[%s5892_s1 + $0xf8] sm:$0xff]   ;;  %v4335_v36 = vld [vmem:[%s5892_s1 + $0x140] sm:$0xff]  }
  0x3c   : > { %v4323_v26 = vld [vmem:[%s5892_s1 + $0x30] sm:$0xff]   ;;  %v4327_v30 = vld [vmem:[%s5892_s1 + $0x38] sm:$0xff]   ;;  %v4336_v37 = vld [vmem:[%s5892_s1 + $0x100] sm:$0xff]  }
  0x3d   : > { %3708 = vmatpush3.bf16.msra.mxu0 %v4307_v10  ;;  %v4324_v27 = vld [vmem:[%s5892_s1 + $0xb0] sm:$0xff]   ;;  %v4328_v31 = vld [vmem:[%s5892_s1 + $0xb8] sm:$0xff]   ;;  %v4343_v42 = vld [vmem:[%s5892_s1 + $0x1c0] sm:$0xff]  }
  0x3e   : > { %3784 = vmatpush3.bf16.msra.mxu1 %v4308_v11  ;;  %3709 = vmatprep.subr.bf16.mxu0 %v4309_v12  ;;  %v4329_v32 = vld [vmem:[%s4820_s23] ss:$36 sps:$4 sm:$0xff]   ;;  %v4332_v34 = vld [vmem:[%s4820_s23 + $0x8] ss:$36 sps:$4 sm:$0xff]   ;;  %v4339_v39 = vld [vmem:[%s4820_s23 + $0x54] ss:$36 sps:$4 sm:$0xff]  }
  0x3f   : > { %3785 = vmatprep.subr.bf16.mxu1 %v4310_v13  ;;  %v4331_v33 = vld [vmem:[%s4820_s23 + $0x4] ss:$36 sps:$4 sm:$0xff]   ;;  %v4334_v35 = vld [vmem:[%s4820_s23 + $0xc] ss:$36 sps:$4 sm:$0xff]   ;;  %v4347_v46 = vld [vmem:[%s4820_s23 + $0x94] ss:$36 sps:$4 sm:$0xff]  }
  0x40   : > { %1535 = vmatprep.mubr.bf16.mxu0 %v4331_v33  ;;  %1648 = vmatprep.mubr.bf16.mxu1 %v4334_v35  ;;  %v4337_v38 = vld [vmem:[%s4820_s23 + $0x4c] ss:$36 sps:$4 sm:$0xff]   ;;  %v4349_v47 = vld [vmem:[%s4820_s23 + $0x9c] ss:$36 sps:$4 sm:$0xff]   ;;  %v4359_v55 = vld [vmem:[%s4820_s23 + $0xe4] ss:$36 sps:$4 sm:$0xff]  }
  0x41   : > { %3710 = vmatpush3.bf16.msra.mxu0 %v4311_v14  ;;  %v4341_v40 = vld [vmem:[%s4820_s23 + $0x48] ss:$36 sps:$4 sm:$0xff]   ;;  %v4342_v41 = vld [vmem:[%s4820_s23 + $0x50] ss:$36 sps:$4 sm:$0xff]   ;;  %v4352_v50 = vld [vmem:[%s4820_s23 + $0x98] ss:$36 sps:$4 sm:$0xff]  }
  0x42   : > { %3786 = vmatpush3.bf16.msra.mxu1 %v4312_v15  ;;  %3711 = vmatprep.subr.bf16.mxu0 %v4313_v16  ;;  %v4344_v43 = vld [vmem:[%s5892_s1 + $0x180] sm:$0xff]   ;;  %v4345_v44 = vld [vmem:[%s5892_s1 + $0x148] sm:$0xff]   ;;  %v4355_v52 = vld [vmem:[%s5892_s1 + $0x150] sm:$0xff]  }
  0x43   : > { %3787 = vmatprep.subr.bf16.mxu1 %v4314_v17  ;;  %v4346_v45 = vld [vmem:[%s5892_s1 + $0x108] sm:$0xff]   ;;  %v4351_v48 = vld [vmem:[%s4820_s23 + $0x90] ss:$36 sps:$4 sm:$0xff]   ;;  %v4365_v59 = vld [vmem:[%s5892_s1 + $0x158] sm:$0xff]  }
  0x44   : > { %v4353_v49 = vld [vmem:[%s5892_s1 + $0x1c8] sm:$0xff]   ;;  %v4356_v53 = vld [vmem:[%s5892_s1 + $0x110] sm:$0xff]   ;;  %v4370_v63 = vld [vmem:[%s5892_s1 + $0x118] sm:$0xff]  }
  0x45   : > { %3712 = vmatpush3.bf16.msra.mxu0 %v4315_v18  ;;  %v4354_v51 = vld [vmem:[%s5892_s1 + $0x188] sm:$0xff]   ;;  %v4363_v56 = vld [vmem:[%s5892_s1 + $0x1d0] sm:$0xff]   ;;  %v4373_v0 = vld [vmem:[%s5892_s1 + $0x1d8] sm:$0xff]  }
  0x46   : > { %3788 = vmatpush3.bf16.msra.mxu1 %v4316_v19  ;;  %3713 = vmatprep.subr.bf16.mxu0 %v4317_v20  ;;  %v4357_v54 = vld [vmem:[%s4820_s23 + $0xdc] ss:$36 sps:$4 sm:$0xff]   ;;  %v4366_v61 = vld [vmem:[%s4820_s23 + $0x124] ss:$36 sps:$4 sm:$0xff]   ;;  %v4368_v62 = vld [vmem:[%s4820_s23 + $0x12c] ss:$36 sps:$4 sm:$0xff]  }
  0x47   : > { %3789 = vmatprep.subr.bf16.mxu1 %v4318_v21  ;;  %v4361_v57 = vld [vmem:[%s4820_s23 + $0xd8] ss:$36 sps:$4 sm:$0xff]   ;;  %v4364_v58 = vld [vmem:[%s5892_s1 + $0x190] sm:$0xff]   ;;  %v4372_v2 = vld [vmem:[%s4820_s23 + $0x128] ss:$36 sps:$4 sm:$0xff]  }
  0x48   : > { %v4362_v60 = vld [vmem:[%s4820_s23 + $0xe0] ss:$36 sps:$4 sm:$0xff]   ;;  %v4374_v3 = vld [vmem:[%s4820_s23 + $0x16c] ss:$36 sps:$4 sm:$0xff]   ;;  %v4376_v7 = vld [vmem:[%s4820_s23 + $0x174] ss:$36 sps:$4 sm:$0xff]  }
  0x49   : > { %3714 = vmatpush3.bf16.msra.mxu0 %v4319_v22  ;;  %v4371_v1 = vld [vmem:[%s4820_s23 + $0x120] ss:$36 sps:$4 sm:$0xff]   ;;  %v4378_v4 = vld [vmem:[%s5892_s1 + $0x198] sm:$0xff]   ;;  %v4380_v11 = vld [vmem:[%s4820_s23 + $0x170] ss:$36 sps:$4 sm:$0xff]  }
  0x4a   : > { %3790 = vmatpush3.bf16.msra.mxu1 %v4320_v23  ;;  %3715 = vmatprep.subr.bf16.mxu0 %v4321_v24  ;;  %v4381_v5 = vld [vmem:[%s5892_s1 + $0x160] sm:$0xff]   ;;  %v4379_v9 = vld [vmem:[%s4820_s23 + $0x168] ss:$36 sps:$4 sm:$0xff]   ;;  %v4401_v18 = vld [vmem:[%s5892_s1 + $0x170] sm:$0xff]  }
  0x4b   : > { %3791 = vmatprep.subr.bf16.mxu1 %v4322_v25  ;;  %v4382_v6 = vld [vmem:[%s5892_s1 + $0x120] sm:$0xff]   ;;  %v4391_v12 = vld [vmem:[%s5892_s1 + $0x168] sm:$0xff]   ;;  %v4402_v19 = vld [vmem:[%s5892_s1 + $0x130] sm:$0xff]  }
  0x4c   : > { %v4389_v8 = vld [vmem:[%s5892_s1 + $0x1e0] sm:$0xff]   ;;  %v4392_v13 = vld [vmem:[%s5892_s1 + $0x128] sm:$0xff]   ;;  %v4409_v24 = vld [vmem:[%s5892_s1 + $0x1f0] sm:$0xff]  }
  0x4d   : > { %3716 = vmatpush3.bf16.msra.mxu0 %v4323_v26  ;;  %v4390_v10 = vld [vmem:[%s5892_s1 + $0x1a0] sm:$0xff]   ;;  %v4399_v16 = vld [vmem:[%s5892_s1 + $0x1e8] sm:$0xff]   ;;  %v4410_v25 = vld [vmem:[%s5892_s1 + $0x1b0] sm:$0xff]  }
  0x4e   : > { %3792 = vmatpush3.bf16.msra.mxu1 %v4324_v27  ;;  %3717 = vmatprep.subr.bf16.mxu0 %v4325_v28  ;;  %v4383_v14 = vld [vmem:[%s4820_s23 + $0x1b4] ss:$36 sps:$4 sm:$0xff]   ;;  %v4385_v15 = vld [vmem:[%s4820_s23 + $0x1bc] ss:$36 sps:$4 sm:$0xff]   ;;  %v4395_v23 = vld [vmem:[%s4820_s23 + $0x204] ss:$36 sps:$4 sm:$0xff]  }
  0x4f   : > { %3793 = vmatprep.subr.bf16.mxu1 %v4326_v29  ;;  %v4400_v17 = vld [vmem:[%s5892_s1 + $0x1a8] sm:$0xff]   ;;  %v4387_v20 = vld [vmem:[%s4820_s23 + $0x1b0] ss:$36 sps:$4 sm:$0xff]   ;;  %v4411_v26 = vld [vmem:[%s5892_s1 + $0x178] sm:$0xff]  }
  0x50   : > { %v4388_v21 = vld [vmem:[%s4820_s23 + $0x1b8] ss:$36 sps:$4 sm:$0xff]   ;;  %v4398_v28 = vld [vmem:[%s4820_s23 + $0x200] ss:$36 sps:$4 sm:$0xff]  }
  0x51   : > { %3718 = vmatpush3.bf16.msra.mxu0 %v4327_v30  ;;  %v4393_v22 = vld [vmem:[%s4820_s23 + $0x1fc] ss:$36 sps:$4 sm:$0xff]   ;;  %v4403_v30 = vld [vmem:[%s4820_s23 + $0x244] ss:$36 sps:$4 sm:$0xff]  }
  0x52   : > { %3794 = vmatpush3.bf16.msra.mxu1 %v4328_v31  ;;  %3855 = vmatprep.subr.bf16.mxu0 %v4335_v36  ;;  %v4397_v27 = vld [vmem:[%s4820_s23 + $0x1f8] ss:$36 sps:$4 sm:$0xff]   ;;  %v4405_v31 = vld [vmem:[%s4820_s23 + $0x24c] ss:$36 sps:$4 sm:$0xff]   ;;  %v4407_v35 = vld [vmem:[%s4820_s23 + $0x240] ss:$36 sps:$4 sm:$0xff]  }
  0x53   : > { %3931 = vmatprep.subr.bf16.mxu1 %v4343_v42  ;;  %v4416_v29 = vld [vmem:[%s5892_s1 + $0x138] sm:$0xff]  }
  0x54   : > { %1536 = vmatmul.mubr.bf16.vlgmr.msra.gmra.mrb[0].mxu0 %v4329_v32  ;;  %v4419_v32 = vld [vmem:[%s5892_s1 + $0x1f8] sm:$0xff]  }
  0x55   : > { %1649 = vmatmul.mubr.bf16.vlgmr.msra.gmra.mrb[0].mxu1 %v4332_v34  ;;  %3856 = vmatpush3.bf16.msra.mxu0 %v4336_v37  ;;  %v4420_v33 = vld [vmem:[%s5892_s1 + $0x1b8] sm:$0xff]   ;;  %v4427_v34 = vld [vmem:[%s5892_s1 + $0x200] sm:$0xff]  }
  0x56   : > { %1543 = vmatprep.mubr.bf16.mxu0 %v4337_v38  ;;  %1656 = vmatprep.mubr.bf16.mxu1 %v4339_v39  ;;  %v4408_v36 = vld [vmem:[%s4820_s23 + $0x248] ss:$36 sps:$4 sm:$0xff]   ;;  %v4414_v38 = vld [vmem:[%s4820_s23 + $0x294] ss:$36 sps:$4 sm:$0xff]   ;;  %v4426_v42 = vld [vmem:[%s4820_s23 + $0x1c] ss:$36 sps:$4 sm:$0xff]  }
  0x57   : > { %3932 = vmatpush3.bf16.msra.mxu1 %v4344_v43  ;;  %3857 = vmatprep.subr.bf16.mxu0 %v4345_v44  ;;  %v4412_v37 = vld [vmem:[%s4820_s23 + $0x28c] ss:$36 sps:$4 sm:$0xff]   ;;  %v4424_v44 = vld [vmem:[%s4820_s23 + $0x18] ss:$36 sps:$4 sm:$0xff]  }
  0x58   : > { %3933 = vmatprep.subr.bf16.mxu1 %v4353_v49  ;;  %v4417_v39 = vld [vmem:[%s4820_s23 + $0x288] ss:$36 sps:$4 sm:$0xff]   ;;  %v4421_v43 = vld [vmem:[%s4820_s23 + $0x10] ss:$36 sps:$4 sm:$0xff]   ;;  %v4432_v49 = vld [vmem:[%s4820_s23 + $0x58] ss:$36 sps:$4 sm:$0xff]  }
  0x59   : > { %3858 = vmatpush3.bf16.msra.mxu0 %v4346_v45  ;;  %v4428_v45 = vld [vmem:[%s4820_s23 + $0x5c] ss:$36 sps:$4 sm:$0xff]  }
  0x5a   : > { %3859 = vmatprep.subr.bf16.mxu0 %v4355_v52  ;;  %v4437_v52 = vld [vmem:[%s4820_s23 + $0xac] ss:$36 sps:$4 sm:$0xff]  }
  0x5b   : > { %3934 = vmatpush3.bf16.msra.mxu1 %v4354_v51  ;;  %v4435_v51 = vld [vmem:[%s4820_s23 + $0xa4] ss:$36 sps:$4 sm:$0xff]  }
  0x5c   : > { %1544 = vmatmul.mubr.bf16.gmra.mrb[4].mxu0 %v4341_v40  ;;  %3935 = vmatprep.subr.bf16.mxu1 %v4363_v56  ;;  %v4418_v40 = vld [vmem:[%s4820_s23 + $0x290] ss:$36 sps:$4 sm:$0xff]   ;;  %v4440_v56 = vld [vmem:[%s4820_s23 + $0xa8] ss:$36 sps:$4 sm:$0xff]  }
  0x5d   : > { %1657 = vmatmul.mubr.bf16.gmra.mrb[4].mxu1 %v4342_v41  ;;  %1551 = vmatprep.mubr.bf16.mxu0 %v4347_v46  ;;  %v4423_v41 = vld [vmem:[%s4820_s23 + $0x14] ss:$36 sps:$4 sm:$0xff]   ;;  %v4430_v46 = vld [vmem:[%s4820_s23 + $0x64] ss:$36 sps:$4 sm:$0xff]  }
  0x5e   : > { %1664 = vmatprep.mubr.bf16.mxu1 %v4349_v47  ;;  %3860 = vmatpush3.bf16.msra.mxu0 %v4356_v53  ;;  %v4434_v47 = vld [vmem:[%s5892_s1 + $0x208] sm:$0xff]   ;;  %v4448_v53 = vld [vmem:[%s5892_s1 + $0x218] sm:$0xff]  }
  0x5f   : > { %3936 = vmatpush3.bf16.msra.mxu1 %v4364_v58  ;;  %3861 = vmatprep.subr.bf16.mxu0 %v4365_v59  ;;  %v4444_v58 = vld [vmem:[%s4820_s23 + $0xf4] ss:$36 sps:$4 sm:$0xff]  }
  0x60   : > { %3937 = vmatprep.subr.bf16.mxu1 %v4373_v0  ;;  %v4468_v59 = vld [vmem:[%s5892_s1 + $0x228] sm:$0xff]  }
  0x61   : > { %v4451_v0 = vld [vmem:[%s4820_s23 + $0x13c] ss:$36 sps:$4 sm:$0xff]  }
  0x62   : > { %3862 = vmatpush3.bf16.msra.mxu0 %v4370_v63  ;;  %v4449_v63 = vld [vmem:[%s4820_s23 + $0x134] ss:$36 sps:$4 sm:$0xff]  }
  0x63   : > { %3938 = vmatpush3.bf16.msra.mxu1 %v4378_v4  ;;  %3863 = vmatprep.subr.bf16.mxu0 %v4381_v5  ;;  %v4455_v4 = vld [vmem:[%s4820_s23 + $0x17c] ss:$36 sps:$4 sm:$0xff]   ;;  %v4457_v5 = vld [vmem:[%s4820_s23 + $0x184] ss:$36 sps:$4 sm:$0xff]  }
  0x64   : > { %1552 = vmatmul.mubr.bf16.gmra.mrb[8].mxu0 %v4351_v48  ;;  %3939 = vmatprep.subr.bf16.mxu1 %v4389_v8  ;;  %v4441_v48 = vld [vmem:[%s5892_s1 + $0x210] sm:$0xff]  }
  0x65   : > { %1665 = vmatmul.mubr.bf16.gmra.mrb[8].mxu1 %v4352_v50  ;;  %1559 = vmatprep.mubr.bf16.mxu0 %v4357_v54  ;;  %v4433_v50 = vld [vmem:[%s4820_s23 + $0x60] ss:$36 sps:$4 sm:$0xff]  }
  0x66   : > { %1672 = vmatprep.mubr.bf16.mxu1 %v4359_v55  ;;  %3864 = vmatpush3.bf16.msra.mxu0 %v4382_v6  ;;  %v4439_v54 = vld [vmem:[%s4820_s23 + $0xa0] ss:$36 sps:$4 sm:$0xff]   ;;  %v4459_v6 = vld [vmem:[%s4820_s23 + $0x178] ss:$36 sps:$4 sm:$0xff]  }
  0x67   : > { %3940 = vmatpush3.bf16.msra.mxu1 %v4390_v10  ;;  %3865 = vmatprep.subr.bf16.mxu0 %v4391_v12  ;;  %v4461_v55 = vld [vmem:[%s5892_s1 + $0x220] sm:$0xff]  }
  0x68   : > { %3941 = vmatprep.subr.bf16.mxu1 %v4399_v16  ;;  %v4462_v8 = vld [vmem:[%s4820_s23 + $0x1c4] ss:$36 sps:$4 sm:$0xff]   ;;  %v4469_v12 = vld [vmem:[%s4820_s23 + $0x20c] ss:$36 sps:$4 sm:$0xff]   ;;  %v4476_v16 = vld [vmem:[%s4820_s23 + $0x254] ss:$36 sps:$4 sm:$0xff]  }
  0x69   : > { %v4466_v10 = vld [vmem:[%s4820_s23 + $0x1c0] ss:$36 sps:$4 sm:$0xff]  }
  0x6a   : > { %3866 = vmatpush3.bf16.msra.mxu0 %v4392_v13  ;;  %v4471_v13 = vld [vmem:[%s4820_s23 + $0x214] ss:$36 sps:$4 sm:$0xff]  }
  0x6b   : > { %3942 = vmatpush3.bf16.msra.mxu1 %v4400_v17  ;;  %3867 = vmatprep.subr.bf16.mxu0 %v4401_v18  ;;  %v4478_v17 = vld [vmem:[%s4820_s23 + $0x25c] ss:$36 sps:$4 sm:$0xff]   ;;  %v4480_v18 = vld [vmem:[%s4820_s23 + $0x250] ss:$36 sps:$4 sm:$0xff]  }
  0x6c   : > { %1560 = vmatmul.mubr.bf16.gmra.mrb[12].mxu0 %v4361_v57  ;;  %3943 = vmatprep.subr.bf16.mxu1 %v4409_v24  ;;  %v4442_v57 = vld [vmem:[%s4820_s23 + $0xec] ss:$36 sps:$4 sm:$0xff]   ;;  %v4489_v24 = vld [vmem:[%s4820_s23 + $0x20] ss:$36 sps:$4 sm:$0xff]  }
  0x6d   : > { %1673 = vmatmul.mubr.bf16.gmra.mrb[12].mxu1 %v4362_v60  ;;  %1567 = vmatprep.mubr.bf16.mxu0 %v4366_v61  ;;  %v4475_v60 = vld [vmem:[%s5892_s1 + $0x230] sm:$0xff]   ;;  %v4446_v61 = vld [vmem:[%s4820_s23 + $0xe8] ss:$36 sps:$4 sm:$0xff]  }
  0x6e   : > { %1680 = vmatprep.mubr.bf16.mxu1 %v4368_v62  ;;  %3868 = vmatpush3.bf16.msra.mxu0 %v4402_v19  ;;  %v4447_v62 = vld [vmem:[%s4820_s23 + $0xf0] ss:$36 sps:$4 sm:$0xff]   ;;  %v4481_v19 = vld [vmem:[%s4820_s23 + $0x258] ss:$36 sps:$4 sm:$0xff]  }
  0x6f   : > { %3944 = vmatpush3.bf16.msra.mxu1 %v4410_v25  ;;  %3869 = vmatprep.subr.bf16.mxu0 %v4411_v26  ;;  %v4490_v25 = vld [vmem:[%s4820_s23 + $0x1d0] ss:$36 sps:$4 sm:$0xff]   ;;  %v4491_v26 = vld [vmem:[%s4820_s23 + $0x68] ss:$36 sps:$4 sm:$0xff]  }
  0x70   : > { %3945 = vmatprep.subr.bf16.mxu1 %v4419_v32  ;;  %v4497_v32 = vld [vmem:[%s4820_s23 + $0x140] ss:$36 sps:$4 sm:$0xff]  }
  0x72   : > { %3870 = vmatpush3.bf16.msra.mxu0 %v4416_v29  ;;  %v4494_v29 = vld [vmem:[%s4820_s23 + $0x260] ss:$36 sps:$4 sm:$0xff]  }
  0x73   : > { %3946 = vmatpush3.bf16.msra.mxu1 %v4420_v33  ;;  %4085 = vmatprep.subr.bf16.mxu0 %v4427_v34  ;;  %v4498_v33 = vld [vmem:[%s4820_s23 + $0x188] ss:$36 sps:$4 sm:$0xff]  }
  0x74   : > { %1568 = vmatmul.mubr.bf16.gmra.mrb[16].mxu0 %v4371_v1  ;;  %4224 = vmatprep.subr.bf16.mxu1 %v4427_v34  ;;  %v4482_v1 = vld [vmem:[%s5892_s1 + $0x238] sm:$0xff]  }
  0x75   : > { %1681 = vmatmul.mubr.bf16.gmra.mrb[16].mxu1 %v4372_v2  ;;  %1575 = vmatprep.mubr.bf16.mxu0 %v4374_v3  ;;  %v4453_v2 = vld [vmem:[%s4820_s23 + $0x130] ss:$36 sps:$4 sm:$0xff]   ;;  %v4454_v3 = vld [vmem:[%s4820_s23 + $0x138] ss:$36 sps:$4 sm:$0xff]  }
  0x76   : > { %1688 = vmatprep.mubr.bf16.mxu1 %v4376_v7  ;;  %v4460_v7 = vld [vmem:[%s4820_s23 + $0x180] ss:$36 sps:$4 sm:$0xff]  }
  0x7c   : > { %1576 = vmatmul.mubr.bf16.gmra.mrb[20].mxu0 %v4379_v9  ;;  %v4464_v9 = vld [vmem:[%s4820_s23 + $0x1cc] ss:$36 sps:$4 sm:$0xff]  }
  0x7d   : > { %1689 = vmatmul.mubr.bf16.gmra.mrb[20].mxu1 %v4380_v11  ;;  %1583 = vmatprep.mubr.bf16.mxu0 %v4383_v14  ;;  %v4467_v11 = vld [vmem:[%s4820_s23 + $0x1c8] ss:$36 sps:$4 sm:$0xff]  }
  0x7e   : > { %1696 = vmatprep.mubr.bf16.mxu1 %v4385_v15  ;;  %v4473_v14 = vld [vmem:[%s4820_s23 + $0x208] ss:$36 sps:$4 sm:$0xff]   ;;  %v4474_v15 = vld [vmem:[%s4820_s23 + $0x210] ss:$36 sps:$4 sm:$0xff]  }
  0x84   : > { %1584 = vmatmul.mubr.bf16.gmra.mrb[24].mxu0 %v4387_v20  ;;  %v4483_v20 = vld [vmem:[%s4820_s23 + $0x29c] ss:$36 sps:$4 sm:$0xff]  }
  0x85   : > { %1697 = vmatmul.mubr.bf16.gmra.mrb[24].mxu1 %v4388_v21  ;;  %1591 = vmatprep.mubr.bf16.mxu0 %v4393_v22  ;;  %v4485_v21 = vld [vmem:[%s4820_s23 + $0x2a4] ss:$36 sps:$4 sm:$0xff]   ;;  %v4487_v22 = vld [vmem:[%s4820_s23 + $0x298] ss:$36 sps:$4 sm:$0xff]  }
  0x86   : > { %1704 = vmatprep.mubr.bf16.mxu1 %v4395_v23  ;;  %v4488_v23 = vld [vmem:[%s4820_s23 + $0x2a0] ss:$36 sps:$4 sm:$0xff]  }
  0x8c   : > { %1592 = vmatmul.mubr.bf16.gmra.mrb[28].mxu0 %v4397_v27  ;;  %v4492_v27 = vld [vmem:[%s4820_s23 + $0x218] ss:$36 sps:$4 sm:$0xff]  }
  0x8d   : > { %1705 = vmatmul.mubr.bf16.gmra.mrb[28].mxu1 %v4398_v28  ;;  %1599 = vmatprep.mubr.bf16.mxu0 %v4403_v30  ;;  %v4493_v28 = vld [vmem:[%s4820_s23 + $0xb0] ss:$36 sps:$4 sm:$0xff]   ;;  %v4495_v30 = vld [vmem:[%s4820_s23 + $0xf8] ss:$36 sps:$4 sm:$0xff]  }
  0x8e   : > { %1712 = vmatprep.mubr.bf16.mxu1 %v4405_v31  ;;  %v4496_v31 = vld [vmem:[%s4820_s23 + $0x2a8] ss:$36 sps:$4 sm:$0xff]   ;;  %s2068_s23 = smul.u32 160, %s4753_s17 }
  0x90   : > { %s5223_s29 = scalar_lea.vmem [#allocation2], %s2068_s23 }
  0x94   : > { %1600 = vmatmul.mubr.bf16.gmra.mrb[32].mxu0 %v4407_v35 }
  0x95   : > { %1713 = vmatmul.mubr.bf16.gmra.mrb[32].mxu1 %v4408_v36  ;;  %1607 = vmatprep.mubr.bf16.mxu0 %v4412_v37 }
  0x96   : > { %1720 = vmatprep.mubr.bf16.mxu1 %v4414_v38 }
  0x9c   : > { %1608 = vmatmul.mubr.bf16.gmra.mrb[36].mxu0 %v4417_v39 }
  0x9d   : > { %1721 = vmatmul.mubr.bf16.gmra.mrb[36].mxu1 %v4418_v40  ;;  %1761 = vmatprep.mubr.bf16.mxu0 %v4423_v41 }
  0x9e   : > { %1874 = vmatprep.mubr.bf16.mxu1 %v4426_v42 }
  0xa4   : > { %1762 = vmatmul.mubr.bf16.vlgmr.msra.gmra.mrb[40].mxu0 %v4421_v43 }
  0xa5   : > { %1875 = vmatmul.mubr.bf16.vlgmr.msra.gmra.mrb[40].mxu1 %v4424_v44  ;;  %4086 = vmatpush3.bf16.msra.mxu0 %v4427_v34 }
  0xa6   : > { %1769 = vmatprep.mubr.bf16.mxu0 %v4428_v45  ;;  %1882 = vmatprep.mubr.bf16.mxu1 %v4430_v46 }
  0xa7   : > { %4232 = vmatpush3.bf16.msra.mxu1 %v4427_v34  ;;  %4087 = vmatprep.subr.bf16.mxu0 %v4434_v47 }
  0xa8   : > { %4225 = vmatprep.subr.bf16.mxu1 %v4434_v47 }
  0xa9   : > { %4088 = vmatpush3.bf16.msra.mxu0 %v4434_v47 }
  0xaa   : > { %4089 = vmatprep.subr.bf16.mxu0 %v4441_v48 }
  0xab   : > { %4233 = vmatpush3.bf16.msra.mxu1 %v4434_v47 }
  0xac   : > { %1770 = vmatmul.mubr.bf16.gmra.mrb[44].mxu0 %v4432_v49  ;;  %4226 = vmatprep.subr.bf16.mxu1 %v4441_v48 }
  0xad   : > { %1883 = vmatmul.mubr.bf16.gmra.mrb[44].mxu1 %v4433_v50  ;;  %1777 = vmatprep.mubr.bf16.mxu0 %v4435_v51 }
  0xae   : > { %1890 = vmatprep.mubr.bf16.mxu1 %v4437_v52  ;;  %4090 = vmatpush3.bf16.msra.mxu0 %v4441_v48 }
  0xaf   : > { %4234 = vmatpush3.bf16.msra.mxu1 %v4441_v48  ;;  %4091 = vmatprep.subr.bf16.mxu0 %v4448_v53 }
  0xb0   : > { %4227 = vmatprep.subr.bf16.mxu1 %v4448_v53 }
  0xb2   : > { %4092 = vmatpush3.bf16.msra.mxu0 %v4448_v53 }
  0xb3   : > { %4235 = vmatpush3.bf16.msra.mxu1 %v4448_v53  ;;  %4093 = vmatprep.subr.bf16.mxu0 %v4461_v55 }
  0xb4   : > { %1778 = vmatmul.mubr.bf16.gmra.mrb[48].mxu0 %v4439_v54  ;;  %4228 = vmatprep.subr.bf16.mxu1 %v4461_v55 }
  0xb5   : > { %1891 = vmatmul.mubr.bf16.gmra.mrb[48].mxu1 %v4440_v56  ;;  %1785 = vmatprep.mubr.bf16.mxu0 %v4442_v57 }
  0xb6   : > { %1898 = vmatprep.mubr.bf16.mxu1 %v4444_v58  ;;  %4094 = vmatpush3.bf16.msra.mxu0 %v4461_v55 }
  0xb7   : > { %4236 = vmatpush3.bf16.msra.mxu1 %v4461_v55  ;;  %4095 = vmatprep.subr.bf16.mxu0 %v4468_v59 }
  0xb8   : > { %4229 = vmatprep.subr.bf16.mxu1 %v4468_v59 }
  0xba   : > { %4096 = vmatpush3.bf16.msra.mxu0 %v4468_v59 }
  0xbb   : > { %4237 = vmatpush3.bf16.msra.mxu1 %v4468_v59  ;;  %4097 = vmatprep.subr.bf16.mxu0 %v4475_v60 }
  0xbc   : > { %1786 = vmatmul.mubr.bf16.gmra.mrb[52].mxu0 %v4446_v61  ;;  %4230 = vmatprep.subr.bf16.mxu1 %v4475_v60 }
  0xbd   : > { %1899 = vmatmul.mubr.bf16.gmra.mrb[52].mxu1 %v4447_v62  ;;  %1793 = vmatprep.mubr.bf16.mxu0 %v4449_v63 }
  0xbe   : > { %1906 = vmatprep.mubr.bf16.mxu1 %v4451_v0  ;;  %4098 = vmatpush3.bf16.msra.mxu0 %v4475_v60 }
  0xbf   : > { %4238 = vmatpush3.bf16.msra.mxu1 %v4475_v60  ;;  %4099 = vmatprep.subr.bf16.mxu0 %v4482_v1 }
  0xc0   : > { %4231 = vmatprep.subr.bf16.mxu1 %v4482_v1 }
  0xc2   : > { %4100 = vmatpush3.bf16.msra.mxu0 %v4482_v1 }
  0xc3   : > { %4239 = vmatpush3.bf16.msra.mxu1 %v4482_v1 }
  0xc4   : > { %1794 = vmatmul.mubr.bf16.gmra.mrb[56].mxu0 %v4453_v2 }
  0xc5   : > { %1907 = vmatmul.mubr.bf16.gmra.mrb[56].mxu1 %v4454_v3  ;;  %1801 = vmatprep.mubr.bf16.mxu0 %v4455_v4 }
  0xc6   : > { %1914 = vmatprep.mubr.bf16.mxu1 %v4457_v5 }
  0xcc   : > { %1802 = vmatmul.mubr.bf16.gmra.mrb[60].mxu0 %v4459_v6 }
  0xcd   : > { %1915 = vmatmul.mubr.bf16.gmra.mrb[60].mxu1 %v4460_v7  ;;  %1809 = vmatprep.mubr.bf16.mxu0 %v4462_v8 }
  0xce   : > { %1922 = vmatprep.mubr.bf16.mxu1 %v4464_v9 }
  0xd4   : > { %1810 = vmatmul.mubr.bf16.gmra.mrb[64].mxu0 %v4466_v10 }
  0xd5   : > { %1923 = vmatmul.mubr.bf16.gmra.mrb[64].mxu1 %v4467_v11  ;;  %1817 = vmatprep.mubr.bf16.mxu0 %v4469_v12 }
  0xd6   : > { %1930 = vmatprep.mubr.bf16.mxu1 %v4471_v13 }
  0xdc   : > { %1818 = vmatmul.mubr.bf16.gmra.mrb[68].mxu0 %v4473_v14 }
  0xdd   : > { %1931 = vmatmul.mubr.bf16.gmra.mrb[68].mxu1 %v4474_v15  ;;  %1825 = vmatprep.mubr.bf16.mxu0 %v4476_v16 }
  0xde   : > { %1938 = vmatprep.mubr.bf16.mxu1 %v4478_v17 }
  0xe4   : > { %1826 = vmatmul.mubr.bf16.gmra.mrb[72].mxu0 %v4480_v18 }
  0xe5   : > { %1939 = vmatmul.mubr.bf16.gmra.mrb[72].mxu1 %v4481_v19  ;;  %1833 = vmatprep.mubr.bf16.mxu0 %v4483_v20 }
  0xe6   : > { %1946 = vmatprep.mubr.bf16.mxu1 %v4485_v21 }
  0xec   : > { %1834 = vmatmul.mubr.bf16.gmra.mrb[76].mxu0 %v4487_v22 }
  0xed   : > { %1947 = vmatmul.mubr.bf16.gmra.mrb[76].mxu1 %v4488_v23  ;;  %4101 = vmatprep.mubr.bf16.mxu0 %v4489_v24 }
  0xee   : > { %4113 = vmatprep.mubr.bf16.mxu1 %v4490_v25 }
  0xf4   : > { %4102 = vmatmul.mubr.bf16.vlgmr.msra.gmra.mrb[80].mxu0 %v4491_v26 }
  0xf5   : > { %4114 = vmatmul.mubr.bf16.vlgmr.msra.gmra.mrb[80].mxu1 %v4492_v27  ;;  %4105 = vmatprep.mubr.bf16.mxu0 %v4493_v28 }
  0xf6   : > { %4117 = vmatprep.mubr.bf16.mxu1 %v4494_v29 }
  0xfc   : > { %4106 = vmatmul.mubr.bf16.gmra.mrb[84].mxu0 %v4495_v30 }
  0xfd   : > { %4118 = vmatmul.mubr.bf16.gmra.mrb[84].mxu1 %v4496_v31  ;;  %4109 = vmatprep.mubr.bf16.mxu0 %v4497_v32 }
 0x104   : > { %4110 = vmatmul.mubr.bf16.gmra.mrb[88].mxu0 %v4498_v33 }
 0x127   : > { %v3719_v34 = vpop.f32.mrb[0].mxu0 }
 0x128   : > { %v3795_v35 = vpop.f32.mrb[0].mxu1  ;;  %v3720_v36 = vpop.f32.mrb[1].mxu0 }
 0x129   : > { %v3721_v37 = vadd.f32 %v3720_v36, %v3719_v34  ;;  %v3796_v38 = vpop.f32.mrb[1].mxu1  ;;  %v3722_v39 = vpop.f32.mrb[2].mxu0 }
 0x12a   : > { %v3797_v40 = vadd.f32 %v3796_v38, %v3795_v35  ;;  %v3798_v41 = vpop.f32.mrb[2].mxu1  ;;  %v3723_v42 = vpop.f32.mrb[3].mxu0 }
 0x12b   : > { %v3724_v43 = vadd.f32 %v3723_v42, %v3722_v39  ;;  %v3799_v44 = vpop.f32.mrb[3].mxu1 }
 0x12c   : > { %v5132_v45 = vadd.f32 %v3797_v40, %v3721_v37  ;;  %v3800_v46 = vadd.f32 %v3799_v44, %v3798_v41 }
 0x12e   : > { %v5134_v47 = vadd.f32 %v3800_v46, %v3724_v43 }
 0x12f   : > { %v3725_v48 = vpop.f32.mrb[4].mxu0 }
 0x130   : > { %v3801_v49 = vpop.f32.mrb[4].mxu1  ;;  %v3726_v50 = vpop.f32.mrb[5].mxu0 }
 0x131   : > { %v3727_v51 = vadd.f32 %v3726_v50, %v3725_v48  ;;  %v3802_v52 = vpop.f32.mrb[5].mxu1  ;;  %v3728_v53 = vpop.f32.mrb[6].mxu0 }
 0x132   : > { %v3803_v54 = vadd.f32 %v3802_v52, %v3801_v49  ;;  %v3804_v55 = vpop.f32.mrb[6].mxu1  ;;  %v3729_v56 = vpop.f32.mrb[7].mxu0 }
 0x133   : > { %v3730_v57 = vadd.f32 %v3729_v56, %v3728_v53  ;;  %v3805_v58 = vpop.f32.mrb[7].mxu1 }
 0x134   : > { %v5136_v59 = vadd.f32 %v3803_v54, %v3727_v51  ;;  %v3806_v60 = vadd.f32 %v3805_v58, %v3804_v55 }
 0x136   : > { %v5138_v61 = vadd.f32 %v3806_v60, %v3730_v57 }
 0x137   : > { %v3731_v62 = vpop.f32.mrb[8].mxu0 }
 0x138   : > { %v3807_v63 = vpop.f32.mrb[8].mxu1  ;;  %v3732_v0 = vpop.f32.mrb[9].mxu0 }
 0x139   : > { %v3733_v1 = vadd.f32 %v3732_v0, %v3731_v62  ;;  %v3808_v2 = vpop.f32.mrb[9].mxu1  ;;  %v3734_v3 = vpop.f32.mrb[10].mxu0 }
 0x13a   : > { %v3809_v4 = vadd.f32 %v3808_v2, %v3807_v63  ;;  %v3810_v5 = vpop.f32.mrb[10].mxu1  ;;  %v3735_v6 = vpop.f32.mrb[11].mxu0 }
 0x13b   : > { %v3736_v7 = vadd.f32 %v3735_v6, %v3734_v3  ;;  %v3811_v8 = vpop.f32.mrb[11].mxu1 }
 0x13c   : > { %v5140_v9 = vadd.f32 %v3809_v4, %v3733_v1  ;;  %v3812_v10 = vadd.f32 %v3811_v8, %v3810_v5 }
 0x13e   : > { %v5142_v11 = vadd.f32 %v3812_v10, %v3736_v7 }
 0x13f   : > { %v3737_v12 = vpop.f32.mrb[12].mxu0 }
 0x140   : > { %v3813_v13 = vpop.f32.mrb[12].mxu1  ;;  %v3738_v14 = vpop.f32.mrb[13].mxu0 }
 0x141   : > { %v3739_v15 = vadd.f32 %v3738_v14, %v3737_v12  ;;  %v3814_v16 = vpop.f32.mrb[13].mxu1  ;;  %v3740_v17 = vpop.f32.mrb[14].mxu0 }
 0x142   : > { %v3815_v18 = vadd.f32 %v3814_v16, %v3813_v13  ;;  %v3816_v19 = vpop.f32.mrb[14].mxu1  ;;  %v3741_v20 = vpop.f32.mrb[15].mxu0 }
 0x143   : > { %v3742_v21 = vadd.f32 %v3741_v20, %v3740_v17  ;;  %v3817_v22 = vpop.f32.mrb[15].mxu1 }
 0x144   : > { %v5144_v23 = vadd.f32 %v3815_v18, %v3739_v15  ;;  %v3818_v24 = vadd.f32 %v3817_v22, %v3816_v19 }
 0x146   : > { %v5146_v25 = vadd.f32 %v3818_v24, %v3742_v21 }
 0x147   : > { %v3743_v26 = vpop.f32.mrb[16].mxu0 }
 0x148   : > { %v3819_v27 = vpop.f32.mrb[16].mxu1  ;;  %v3744_v28 = vpop.f32.mrb[17].mxu0 }
 0x149   : > { %v3745_v29 = vadd.f32 %v3744_v28, %v3743_v26  ;;  %v3820_v30 = vpop.f32.mrb[17].mxu1  ;;  %v3746_v31 = vpop.f32.mrb[18].mxu0 }
 0x14a   : > { %v3821_v32 = vadd.f32 %v3820_v30, %v3819_v27  ;;  %v3822_v33 = vpop.f32.mrb[18].mxu1  ;;  %v3747_v34 = vpop.f32.mrb[19].mxu0 }
 0x14b   : > { %v3748_v35 = vadd.f32 %v3747_v34, %v3746_v31  ;;  %v3823_v36 = vpop.f32.mrb[19].mxu1 }
 0x14c   : > { %v5148_v37 = vadd.f32 %v3821_v32, %v3745_v29  ;;  %v3824_v38 = vadd.f32 %v3823_v36, %v3822_v33 }
 0x14e   : > { %v5150_v39 = vadd.f32 %v3824_v38, %v3748_v35 }
 0x14f   : > { %v3749_v40 = vpop.f32.mrb[20].mxu0 }
 0x150   : > { %v3825_v41 = vpop.f32.mrb[20].mxu1  ;;  %v3750_v42 = vpop.f32.mrb[21].mxu0 }
 0x151   : > { %v3751_v43 = vadd.f32 %v3750_v42, %v3749_v40  ;;  %v3826_v44 = vpop.f32.mrb[21].mxu1  ;;  %v3752_v46 = vpop.f32.mrb[22].mxu0 }
 0x152   : > { %v3827_v48 = vadd.f32 %v3826_v44, %v3825_v41  ;;  %v3828_v49 = vpop.f32.mrb[22].mxu1  ;;  %v3753_v50 = vpop.f32.mrb[23].mxu0 }
 0x153   : > { %v3754_v51 = vadd.f32 %v3753_v50, %v3752_v46  ;;  %v3829_v52 = vpop.f32.mrb[23].mxu1 }
 0x154   : > { %v5152_v53 = vadd.f32 %v3827_v48, %v3751_v43  ;;  %v3830_v54 = vadd.f32 %v3829_v52, %v3828_v49 }
 0x156   : > { %v5154_v55 = vadd.f32 %v3830_v54, %v3754_v51 }
 0x157   : > { %v3755_v56 = vpop.f32.mrb[24].mxu0 }
 0x158   : > { %v3831_v57 = vpop.f32.mrb[24].mxu1  ;;  %v3756_v58 = vpop.f32.mrb[25].mxu0 }
 0x159   : > { %v3757_v60 = vadd.f32 %v3756_v58, %v3755_v56  ;;  %v3832_v62 = vpop.f32.mrb[25].mxu1  ;;  %v3758_v63 = vpop.f32.mrb[26].mxu0 }
 0x15a   : > { %v3833_v0 = vadd.f32 %v3832_v62, %v3831_v57  ;;  %v3834_v1 = vpop.f32.mrb[26].mxu1  ;;  %v3759_v2 = vpop.f32.mrb[27].mxu0 }
 0x15b   : > { %v3760_v3 = vadd.f32 %v3759_v2, %v3758_v63  ;;  %v3835_v4 = vpop.f32.mrb[27].mxu1 }
 0x15c   : > { %v5156_v5 = vadd.f32 %v3833_v0, %v3757_v60  ;;  %v3836_v6 = vadd.f32 %v3835_v4, %v3834_v1 }
 0x15e   : > { %v5158_v7 = vadd.f32 %v3836_v6, %v3760_v3 }
 0x15f   : > { %v3761_v8 = vpop.f32.mrb[28].mxu0 }
 0x160   : > { %v3837_v10 = vpop.f32.mrb[28].mxu1  ;;  %v3762_v12 = vpop.f32.mrb[29].mxu0 }
 0x161   : > { %v3763_v13 = vadd.f32 %v3762_v12, %v3761_v8  ;;  %v3838_v14 = vpop.f32.mrb[29].mxu1  ;;  %v3764_v15 = vpop.f32.mrb[30].mxu0 }
 0x162   : > { %v3839_v16 = vadd.f32 %v3838_v14, %v3837_v10  ;;  %v3840_v17 = vpop.f32.mrb[30].mxu1  ;;  %v3765_v18 = vpop.f32.mrb[31].mxu0 }
 0x163   : > { %v3766_v19 = vadd.f32 %v3765_v18, %v3764_v15  ;;  %v3841_v20 = vpop.f32.mrb[31].mxu1 }
 0x164   : > { %v5160_v21 = vadd.f32 %v3839_v16, %v3763_v13  ;;  %v3842_v22 = vadd.f32 %v3841_v20, %v3840_v17 }
 0x166   : > { %v5162_v24 = vadd.f32 %v3842_v22, %v3766_v19 }
 0x167   : > { %v3767_v26 = vpop.f32.mrb[32].mxu0 }
 0x168   : > { %v3843_v27 = vpop.f32.mrb[32].mxu1  ;;  %v3768_v28 = vpop.f32.mrb[33].mxu0 }
 0x169   : > { %v3769_v29 = vadd.f32 %v3768_v28, %v3767_v26  ;;  %v3844_v30 = vpop.f32.mrb[33].mxu1  ;;  %v3770_v31 = vpop.f32.mrb[34].mxu0 }
 0x16a   : > { %v3845_v32 = vadd.f32 %v3844_v30, %v3843_v27  ;;  %v3846_v33 = vpop.f32.mrb[34].mxu1  ;;  %v3771_v34 = vpop.f32.mrb[35].mxu0 }
 0x16b   : > { %v3772_v35 = vadd.f32 %v3771_v34, %v3770_v31  ;;  %v3847_v36 = vpop.f32.mrb[35].mxu1 }
 0x16c   : > { %v5164_v38 = vadd.f32 %v3845_v32, %v3769_v29  ;;  %v3848_v40 = vadd.f32 %v3847_v36, %v3846_v33 }
 0x16e   : > { %v5166_v41 = vadd.f32 %v3848_v40, %v3772_v35 }
 0x16f   : > { %v3773_v42 = vpop.f32.mrb[36].mxu0 }
 0x170   : > { %v3849_v43 = vpop.f32.mrb[36].mxu1  ;;  %v3774_v44 = vpop.f32.mrb[37].mxu0 }
 0x171   : > { %v3775_v46 = vadd.f32 %v3774_v44, %v3773_v42  ;;  %v3850_v48 = vpop.f32.mrb[37].mxu1  ;;  %v3776_v49 = vpop.f32.mrb[38].mxu0 }
 0x172   : > { %v3851_v50 = vadd.f32 %v3850_v48, %v3849_v43  ;;  %v3852_v51 = vpop.f32.mrb[38].mxu1  ;;  %v3777_v52 = vpop.f32.mrb[39].mxu0 }
 0x173   : > { %v3778_v54 = vadd.f32 %v3777_v52, %v3776_v49  ;;  %v3853_v56 = vpop.f32.mrb[39].mxu1 }
 0x174   : > { %v5168_v57 = vadd.f32 %v3851_v50, %v3775_v46  ;;  %v3854_v58 = vadd.f32 %v3853_v56, %v3852_v51 }
 0x176   : > { %v5170_v60 = vadd.f32 %v3854_v58, %v3778_v54 }
 0x177   : > { %v3871_v62 = vpop.f32.mrb[40].mxu0 }
 0x178   : > { %v3872_v63 = vpop.f32.mrb[41].mxu0  ;;  %v3947_v0 = vpop.f32.mrb[40].mxu1 }
 0x179   : > { %v3873_v1 = vadd.f32 %v3872_v63, %v3871_v62  ;;  %v3874_v2 = vpop.f32.mrb[42].mxu0  ;;  %v3948_v3 = vpop.f32.mrb[41].mxu1 }
 0x17a   : > { %v3875_v4 = vpop.f32.mrb[43].mxu0  ;;  %v3949_v6 = vadd.f32 %v3948_v3, %v3947_v0  ;;  %v3950_v8 = vpop.f32.mrb[42].mxu1 }
 0x17b   : > { %v1764_v10 = vadd.f32 %v3873_v1, %v5132_v45  ;;  %v3876_v12 = vadd.f32 %v3875_v4, %v3874_v2  ;;  %v3951_v13 = vpop.f32.mrb[43].mxu1 }
 0x17c   : > { %v3952_v14 = vadd.f32 %v3951_v13, %v3950_v8 }
 0x17d   : > { %v1767_v15 = vadd.f32 %v3876_v12, %v5134_v47  ;;  %v5174_v16 = vadd.f32 %v3949_v6, %v1764_v10 }
 0x17f   : > { %v3877_v17 = vpop.f32.mrb[44].mxu0  ;;  %v5176_v18 = vadd.f32 %v3952_v14, %v1767_v15 }
 0x180   : > { %v3878_v19 = vpop.f32.mrb[45].mxu0  ;;  %v3953_v20 = vpop.f32.mrb[44].mxu1 }
 0x181   : > { %v3879_v22 = vadd.f32 %v3878_v19, %v3877_v17  ;;  %v3880_v26 = vpop.f32.mrb[46].mxu0  ;;  %v3954_v27 = vpop.f32.mrb[45].mxu1 }
 0x182   : > { %v3881_v28 = vpop.f32.mrb[47].mxu0  ;;  %v3955_v29 = vadd.f32 %v3954_v27, %v3953_v20  ;;  %v3956_v30 = vpop.f32.mrb[46].mxu1 }
 0x183   : > { %v1772_v45 = vadd.f32 %v3879_v22, %v5136_v59  ;;  %v3882_v31 = vadd.f32 %v3881_v28, %v3880_v26  ;;  %v3957_v32 = vpop.f32.mrb[47].mxu1 }
 0x184   : > { %v3958_v33 = vadd.f32 %v3957_v32, %v3956_v30 }
 0x185   : > { %v1775_v47 = vadd.f32 %v3882_v31, %v5138_v61  ;;  %v5180_v34 = vadd.f32 %v3955_v29, %v1772_v45 }
 0x187   : > { %v3883_v35 = vpop.f32.mrb[48].mxu0  ;;  %v5182_v36 = vadd.f32 %v3958_v33, %v1775_v47 }
 0x188   : > { %v3884_v40 = vpop.f32.mrb[49].mxu0  ;;  %v3959_v42 = vpop.f32.mrb[48].mxu1 }
 0x189   : > { %v3885_v43 = vadd.f32 %v3884_v40, %v3883_v35  ;;  %v3886_v44 = vpop.f32.mrb[50].mxu0  ;;  %v3960_v46 = vpop.f32.mrb[49].mxu1 }
 0x18a   : > { %v3887_v48 = vpop.f32.mrb[51].mxu0  ;;  %v3961_v49 = vadd.f32 %v3960_v46, %v3959_v42  ;;  %v3962_v50 = vpop.f32.mrb[50].mxu1 }
 0x18b   : > { %v1780_v59 = vadd.f32 %v3885_v43, %v5140_v9  ;;  %v3888_v51 = vadd.f32 %v3887_v48, %v3886_v44  ;;  %v3963_v52 = vpop.f32.mrb[51].mxu1 }
 0x18c   : > { %v3964_v54 = vadd.f32 %v3963_v52, %v3962_v50 }
 0x18d   : > { %v1783_v61 = vadd.f32 %v3888_v51, %v5142_v11  ;;  %v5186_v56 = vadd.f32 %v3961_v49, %v1780_v59 }
 0x18f   : > { %v3889_v58 = vpop.f32.mrb[52].mxu0  ;;  %v5188_v62 = vadd.f32 %v3964_v54, %v1783_v61 }
 0x190   : > { %v3890_v63 = vpop.f32.mrb[53].mxu0  ;;  %v3965_v0 = vpop.f32.mrb[52].mxu1 }
 0x191   : > { %v3891_v1 = vadd.f32 %v3890_v63, %v3889_v58  ;;  %v3892_v2 = vpop.f32.mrb[54].mxu0  ;;  %v3966_v3 = vpop.f32.mrb[53].mxu1 }
 0x192   : > { %v3893_v4 = vpop.f32.mrb[55].mxu0  ;;  %v3967_v6 = vadd.f32 %v3966_v3, %v3965_v0  ;;  %v3968_v8 = vpop.f32.mrb[54].mxu1 }
 0x193   : > { %v1788_v9 = vadd.f32 %v3891_v1, %v5144_v23  ;;  %v3894_v10 = vadd.f32 %v3893_v4, %v3892_v2  ;;  %v3969_v12 = vpop.f32.mrb[55].mxu1 }
 0x194   : > { %v3970_v13 = vadd.f32 %v3969_v12, %v3968_v8 }
 0x195   : > { %v1791_v11 = vadd.f32 %v3894_v10, %v5146_v25  ;;  %v5192_v14 = vadd.f32 %v3967_v6, %v1788_v9 }
 0x197   : > { %v3895_v15 = vpop.f32.mrb[56].mxu0  ;;  %v5194_v17 = vadd.f32 %v3970_v13, %v1791_v11 }
 0x198   : > { %v3896_v19 = vpop.f32.mrb[57].mxu0  ;;  %v3971_v20 = vpop.f32.mrb[56].mxu1 }
 0x199   : > { %v3897_v22 = vadd.f32 %v3896_v19, %v3895_v15  ;;  %v3898_v26 = vpop.f32.mrb[58].mxu0  ;;  %v3972_v27 = vpop.f32.mrb[57].mxu1 }
 0x19a   : > { %v3899_v28 = vpop.f32.mrb[59].mxu0  ;;  %v3973_v29 = vadd.f32 %v3972_v27, %v3971_v20  ;;  %v3974_v30 = vpop.f32.mrb[58].mxu1 }
 0x19b   : > { %v1796_v23 = vadd.f32 %v3897_v22, %v5148_v37  ;;  %v3900_v45 = vadd.f32 %v3899_v28, %v3898_v26  ;;  %v3975_v31 = vpop.f32.mrb[59].mxu1 }
 0x19c   : > { %v3976_v32 = vadd.f32 %v3975_v31, %v3974_v30 }
 0x19d   : > { %v1799_v25 = vadd.f32 %v3900_v45, %v5150_v39  ;;  %v5198_v33 = vadd.f32 %v3973_v29, %v1796_v23 }
 0x19f   : > { %v3901_v47 = vpop.f32.mrb[60].mxu0  ;;  %v5200_v35 = vadd.f32 %v3976_v32, %v1799_v25 }
 0x1a0   : > { %v3902_v40 = vpop.f32.mrb[61].mxu0  ;;  %v3977_v42 = vpop.f32.mrb[60].mxu1 }
 0x1a1   : > { %v3903_v43 = vadd.f32 %v3902_v40, %v3901_v47  ;;  %v3904_v44 = vpop.f32.mrb[62].mxu0  ;;  %v3978_v46 = vpop.f32.mrb[61].mxu1 }
 0x1a2   : > { %v3905_v48 = vpop.f32.mrb[63].mxu0  ;;  %v3979_v49 = vadd.f32 %v3978_v46, %v3977_v42  ;;  %v3980_v50 = vpop.f32.mrb[62].mxu1 }
 0x1a3   : > { %v1804_v37 = vadd.f32 %v3903_v43, %v5152_v53  ;;  %v3906_v59 = vadd.f32 %v3905_v48, %v3904_v44  ;;  %v3981_v51 = vpop.f32.mrb[63].mxu1 }
 0x1a4   : > { %v3982_v52 = vadd.f32 %v3981_v51, %v3980_v50 }
 0x1a5   : > { %v1807_v39 = vadd.f32 %v3906_v59, %v5154_v55  ;;  %v5204_v54 = vadd.f32 %v3979_v49, %v1804_v37 }
 0x1a7   : > { %v3907_v61 = vpop.f32.mrb[64].mxu0  ;;  %v5206_v58 = vadd.f32 %v3982_v52, %v1807_v39 }
 0x1a8   : > { %v3908_v63 = vpop.f32.mrb[65].mxu0  ;;  %v3983_v0 = vpop.f32.mrb[64].mxu1 }
 0x1a9   : > { %v3909_v1 = vadd.f32 %v3908_v63, %v3907_v61  ;;  %v3910_v2 = vpop.f32.mrb[66].mxu0  ;;  %v3984_v3 = vpop.f32.mrb[65].mxu1 }
 0x1aa   : > { %v3911_v4 = vpop.f32.mrb[67].mxu0  ;;  %v3985_v6 = vadd.f32 %v3984_v3, %v3983_v0  ;;  %v3986_v8 = vpop.f32.mrb[66].mxu1 }
 0x1ab   : > { %v1812_v53 = vadd.f32 %v3909_v1, %v5156_v5  ;;  %v3912_v9 = vadd.f32 %v3911_v4, %v3910_v2  ;;  %v3987_v10 = vpop.f32.mrb[67].mxu1 }
 0x1ac   : > { %v3988_v12 = vadd.f32 %v3987_v10, %v3986_v8 }
 0x1ad   : > { %v1815_v55 = vadd.f32 %v3912_v9, %v5158_v7  ;;  %v1925_v13 = vadd.f32 %v3985_v6, %v1812_v53 }
 0x1af   : > { %v3913_v11 = vpop.f32.mrb[68].mxu0  ;;  %v5210_v15 = vadd.f32 %v3988_v12, %v1815_v55 }
 0x1b0   : > { %v3914_v19 = vpop.f32.mrb[69].mxu0  ;;  %v3989_v20 = vpop.f32.mrb[68].mxu1 }
 0x1b1   : > { %v3915_v22 = vadd.f32 %v3914_v19, %v3913_v11  ;;  %v3916_v26 = vpop.f32.mrb[70].mxu0  ;;  %v3990_v27 = vpop.f32.mrb[69].mxu1 }
 0x1b2   : > { %v3917_v28 = vpop.f32.mrb[71].mxu0  ;;  %v3991_v29 = vadd.f32 %v3990_v27, %v3989_v20  ;;  %v3992_v30 = vpop.f32.mrb[70].mxu1 }
 0x1b3   : > { %v1820_v23 = vadd.f32 %v3915_v22, %v5160_v21  ;;  %v3918_v5 = vadd.f32 %v3917_v28, %v3916_v26  ;;  %v3993_v45 = vpop.f32.mrb[71].mxu1 }
 0x1b4   : > { %v3994_v31 = vadd.f32 %v3993_v45, %v3992_v30 }
 0x1b5   : > { %v1823_v32 = vadd.f32 %v3918_v5, %v5162_v24  ;;  %v1933_v7 = vadd.f32 %v3991_v29, %v1820_v23 }
 0x1b7   : > { %v3919_v25 = vpop.f32.mrb[72].mxu0  ;;  %v1936_v47 = vadd.f32 %v3994_v31, %v1823_v32 }
 0x1b8   : > { %v3920_v40 = vpop.f32.mrb[73].mxu0  ;;  %v3995_v42 = vpop.f32.mrb[72].mxu1 }
 0x1b9   : > { %v3921_v43 = vadd.f32 %v3920_v40, %v3919_v25  ;;  %v3922_v44 = vpop.f32.mrb[74].mxu0  ;;  %v3996_v46 = vpop.f32.mrb[73].mxu1 }
 0x1ba   : > { %v3923_v48 = vpop.f32.mrb[75].mxu0  ;;  %v3997_v49 = vadd.f32 %v3996_v46, %v3995_v42  ;;  %v3998_v50 = vpop.f32.mrb[74].mxu1 }
 0x1bb   : > { %v1828_v37 = vadd.f32 %v3921_v43, %v5164_v38  ;;  %v3924_v59 = vadd.f32 %v3923_v48, %v3922_v44  ;;  %v3999_v21 = vpop.f32.mrb[75].mxu1 }
 0x1bc   : > { %v4000_v51 = vadd.f32 %v3999_v21, %v3998_v50 }
 0x1bd   : > { %v1831_v52 = vadd.f32 %v3924_v59, %v5166_v41  ;;  %v1941_v24 = vadd.f32 %v3997_v49, %v1828_v37 }
 0x1bf   : > { %v3925_v39 = vpop.f32.mrb[76].mxu0  ;;  %v5216_v61 = vadd.f32 %v4000_v51, %v1831_v52 }
 0x1c0   : > { %v3926_v63 = vpop.f32.mrb[77].mxu0  ;;  %v4001_v0 = vpop.f32.mrb[76].mxu1 }
 0x1c1   : > { %v3927_v1 = vadd.f32 %v3926_v63, %v3925_v39  ;;  %v3928_v2 = vpop.f32.mrb[78].mxu0  ;;  %v4002_v3 = vpop.f32.mrb[77].mxu1 }
 0x1c2   : > { %v3929_v4 = vpop.f32.mrb[79].mxu0  ;;  %v4003_v6 = vadd.f32 %v4002_v3, %v4001_v0  ;;  %v4004_v8 = vpop.f32.mrb[78].mxu1 }
 0x1c3   : > { %v1836_v38 = vadd.f32 %v3927_v1, %v5168_v57  ;;  %v3930_v53 = vadd.f32 %v3929_v4, %v3928_v2  ;;  %v4005_v9 = vpop.f32.mrb[79].mxu1 }
 0x1c4   : > { %v4006_v10 = vadd.f32 %v4005_v9, %v4004_v8 }
 0x1c5   : > { %v1839_v41 = vadd.f32 %v3930_v53, %v5170_v60  ;;  %v1949_v12 = vadd.f32 %v4003_v6, %v1836_v38 }
 0x1c7   : > { %v4103_v55 = vpop.f32.mrb[80].mxu0  ;;  %v1952_v11 = vadd.f32 %v4006_v10, %v1839_v41 }
 0x1c8   : > { %v1998_v19 = vadd.f32 %v4103_v55, %v5180_v34  ;;  %v4115_v20 = vpop.f32.mrb[80].mxu1  ;;  %v1989_v22 = vpop.f32.mrb[81].mxu0 }
 0x1c9   : > { %v2046_v26 = vadd.f32 %v4115_v20, %v1933_v7  ;;  %v1990_v27 = vadd.f32 %v1989_v22, %v5174_v16  ;;  %v2037_v28 = vpop.f32.mrb[81].mxu1  ;;  %v4104_v29 = vpop.f32.mrb[82].mxu0 }
 0x1ca   : > { %2073 = vst.msk [vmem:[%s5223_s29 + $0x10] sm:$0xff] %vm2070_vm0, %v1998_v19  ;;  %v2038_v57 = vadd.f32 %v2037_v28, %v1925_v13  ;;  %v2001_v60 = vadd.f32 %v4104_v29, %v5182_v36  ;;  %v4116_v34 = vpop.f32.mrb[82].mxu1  ;;  %v1992_v30 = vpop.f32.mrb[83].mxu0 }
 0x1cb   : > { %2085 = vst.msk [vmem:[%s5223_s29 + $0x70] sm:$0xff] %vm2070_vm0, %v2046_v26  ;;  %2071 = vst.msk [vmem:[%s5223_s29] sm:$0xff] %vm2070_vm0, %v1990_v27  ;;  %v2049_v16 = vadd.f32 %v4116_v34, %v1936_v47  ;;  %v1993_v23 = vadd.f32 %v1992_v30, %v5176_v18  ;;  %v2040_v5 = vpop.f32.mrb[83].mxu1 }
 0x1cc   : > { %2083 = vst.msk [vmem:[%s5223_s29 + $0x60] sm:$0xff] %vm2070_vm0, %v2038_v57  ;;  %2074 = vst.msk [vmem:[%s5223_s29 + $0x18] sm:$0xff] %vm2070_vm0, %v2001_v60  ;;  %v2041_v45 = vadd.f32 %v2040_v5, %v5210_v15 }
 0x1cd   : > { %2086 = vst.msk [vmem:[%s5223_s29 + $0x78] sm:$0xff] %vm2070_vm0, %v2049_v16  ;;  %2072 = vst.msk [vmem:[%s5223_s29 + $0x8] sm:$0xff] %vm2070_vm0, %v1993_v23 }
 0x1ce   : > { %2084 = vst.msk [vmem:[%s5223_s29 + $0x68] sm:$0xff] %vm2070_vm0, %v2041_v45 }
 0x1cf   : > { %v4107_v36 = vpop.f32.mrb[84].mxu0 }
 0x1d0   : > { %v2014_v13 = vadd.f32 %v4107_v36, %v5192_v14  ;;  %v4119_v18 = vpop.f32.mrb[84].mxu1  ;;  %v2005_v31 = vpop.f32.mrb[85].mxu0 }
 0x1d1   : > { %v2062_v32 = vadd.f32 %v4119_v18, %v1949_v12  ;;  %v2006_v7 = vadd.f32 %v2005_v31, %v5186_v56  ;;  %v2053_v15 = vpop.f32.mrb[85].mxu1  ;;  %v4108_v25 = vpop.f32.mrb[86].mxu0 }
 0x1d2   : > { %2077 = vst.msk [vmem:[%s5223_s29 + $0x30] sm:$0xff] %vm2070_vm0, %v2014_v13  ;;  %v2054_v47 = vadd.f32 %v2053_v15, %v1941_v24  ;;  %v2017_v40 = vadd.f32 %v4108_v25, %v5194_v17  ;;  %v4120_v42 = vpop.f32.mrb[86].mxu1  ;;  %v2008_v43 = vpop.f32.mrb[87].mxu0 }
 0x1d3   : > { %2089 = vst.msk [vmem:[%s5223_s29 + $0x90] sm:$0xff] %vm2070_vm0, %v2062_v32  ;;  %2075 = vst.msk [vmem:[%s5223_s29 + $0x20] sm:$0xff] %vm2070_vm0, %v2006_v7  ;;  %v2065_v14 = vadd.f32 %v4120_v42, %v1952_v11  ;;  %v2009_v56 = vadd.f32 %v2008_v43, %v5188_v62  ;;  %v2056_v44 = vpop.f32.mrb[87].mxu1 }
 0x1d4   : > { %2087 = vst.msk [vmem:[%s5223_s29 + $0x80] sm:$0xff] %vm2070_vm0, %v2054_v47  ;;  %2078 = vst.msk [vmem:[%s5223_s29 + $0x38] sm:$0xff] %vm2070_vm0, %v2017_v40  ;;  %v2057_v17 = vadd.f32 %v2056_v44, %v5216_v61 }
 0x1d5   : > { %2090 = vst.msk [vmem:[%s5223_s29 + $0x98] sm:$0xff] %vm2070_vm0, %v2065_v14  ;;  %2076 = vst.msk [vmem:[%s5223_s29 + $0x28] sm:$0xff] %vm2070_vm0, %v2009_v56 }
 0x1d6   : > { %2088 = vst.msk [vmem:[%s5223_s29 + $0x88] sm:$0xff] %vm2070_vm0, %v2057_v17 }
 0x1d7   : > { %v4111_v46 = vpop.f32.mrb[88].mxu0  ;;  %2094 = sbr.rel (%p3670_p7) target bundleno = 6832 (0x1ab0), region = 68 }
 0x1d8   : > { %v2030_v48 = vadd.f32 %v4111_v46, %v5204_v54  ;;  %v2021_v62 = vpop.f32.mrb[89].mxu0 }
 0x1d9   : > { %v2022_v49 = vadd.f32 %v2021_v62, %v5198_v33  ;;  %v4112_v50 = vpop.f32.mrb[90].mxu0 }
 0x1da   : > { %2081 = vst.msk [vmem:[%s5223_s29 + $0x50] sm:$0xff] %vm2070_vm0, %v2030_v48  ;;  %v2033_v37 = vadd.f32 %v4112_v50, %v5206_v58  ;;  %v2024_v59 = vpop.f32.mrb[91].mxu0 }
 0x1db   : > { %2079 = vst.msk [vmem:[%s5223_s29 + $0x40] sm:$0xff] %vm2070_vm0, %v2022_v49  ;;  %v2025_v21 = vadd.f32 %v2024_v59, %v5200_v35 }
 0x1dc   : > { %2082 = vst.msk [vmem:[%s5223_s29 + $0x58] sm:$0xff] %vm2070_vm0, %v2033_v37 }
 0x1dd   : > { %2080 = vst.msk [vmem:[%s5223_s29 + $0x48] sm:$0xff] %vm2070_vm0, %v2025_v21 }
 0x1de   : > { %vm4673_vm1 = vmmov 0   ;;  %vm2561_vm2 = vcmask 523264   ;;  %vm2676_vm3 = vcmask 1043456   ;;  %s4675_s20 = smov 64   ;;  %s4676_s25 = smov 32   ;;  %vm2736_vm4 = vcmask 261120  }
 0x1df   : > { %vm3442_vm5 = vcmask 25600  }
 0x1e4   : > { %v5278_v54 = vld [vmem:[#allocation2] sm:$0xff]  ;;  %v5280_v33 = vld [vmem:[#allocation2 + $0x8] sm:$0xff]  ;;  %v5282_v51 = vld [vmem:[#allocation2 + $0x10] sm:$0xff] }
 0x1e5   : > { %v5284_v52 = vld [vmem:[#allocation2 + $0x18] sm:$0xff]  ;;  %v2135_v58 = vsel %vm2070_vm0, %v5278_v54, 0.0  ;;  %v2136_v35 = vsel %vm2070_vm0, %v5280_v33, 0.0  ;;  %v2138_v24 = vsel %vm2070_vm0, %v5282_v51, 0.0  ;;  %v5292_v39 = vld [vmem:[#allocation2 + $0x20] sm:$0xff]  ;;  %v5296_v0 = vld [vmem:[#allocation2 + $0x28] sm:$0xff] }
 0x1e6   : > { %v2137_v61 = vadd.f32 %v2136_v35, %v2135_v58  ;;  %v2140_v63 = vsel %vm2070_vm0, %v5284_v52, 0.0  ;;  %v2142_v2 = vsel %vm2070_vm0, %v5292_v39, 0.0  ;;  %v5300_v3 = vld [vmem:[#allocation2 + $0x30] sm:$0xff]  ;;  %v2144_v6 = vsel %vm2070_vm0, %v5296_v0, 0.0  ;;  %v5304_v8 = vld [vmem:[#allocation2 + $0x38] sm:$0xff]  ;;  %v5308_v9 = vld [vmem:[#allocation2 + $0x40] sm:$0xff] }
 0x1e7   : > { %v2146_v53 = vsel %vm2070_vm0, %v5300_v3, 0.0  ;;  %v5310_v41 = vld [vmem:[#allocation2 + $0x48] sm:$0xff]  ;;  %v2148_v12 = vsel %vm2070_vm0, %v5304_v8, 0.0  ;;  %v5314_v11 = vld [vmem:[#allocation2 + $0x50] sm:$0xff]  ;;  %v2150_v19 = vsel %vm2070_vm0, %v5308_v9, 0.0  ;;  %v5318_v20 = vld [vmem:[#allocation2 + $0x58] sm:$0xff] }
 0x1e8   : > { %v2139_v1 = vadd.f32 %v2138_v24, %v2137_v61  ;;  %v2152_v26 = vsel %vm2070_vm0, %v5310_v41, 0.0  ;;  %v2154_v28 = vsel %vm2070_vm0, %v5314_v11, 0.0  ;;  %v5324_v29 = vld [vmem:[#allocation2 + $0x60] sm:$0xff]  ;;  %v2156_v60 = vsel %vm2070_vm0, %v5318_v20, 0.0  ;;  %v5328_v34 = vld [vmem:[#allocation2 + $0x68] sm:$0xff]  ;;  %v5332_v23 = vld [vmem:[#allocation2 + $0x70] sm:$0xff] }
 0x1e9   : > { %v2158_v16 = vsel %vm2070_vm0, %v5324_v29, 0.0  ;;  %v2160_v45 = vsel %vm2070_vm0, %v5328_v34, 0.0  ;;  %v5336_v36 = vld [vmem:[#allocation2 + $0x78] sm:$0xff]  ;;  %v2162_v18 = vsel %vm2070_vm0, %v5332_v23, 0.0  ;;  %v5340_v31 = vld [vmem:[#allocation2 + $0x80] sm:$0xff]  ;;  %v5344_v15 = vld [vmem:[#allocation2 + $0x88] sm:$0xff] }
 0x1ea   : > { %v2141_v4 = vadd.f32 %v2140_v63, %v2139_v1  ;;  %v2164_v7 = vsel %vm2070_vm0, %v5336_v36, 0.0  ;;  %v2166_v47 = vsel %vm2070_vm0, %v5340_v31, 0.0  ;;  %v5348_v40 = vld [vmem:[#allocation2 + $0x90] sm:$0xff]  ;;  %v2168_v43 = vsel %vm2070_vm0, %v5344_v15, 0.0  ;;  %v5352_v14 = vld [vmem:[#allocation2 + $0x98] sm:$0xff]  ;;  %v5356_v17 = vld [vmem:[#allocation2 + $0xa0] sm:$0xff] }
 0x1eb   : > { %v2170_v44 = vsel %vm2070_vm0, %v5348_v40, 0.0  ;;  %v2172_v48 = vsel %vm2070_vm0, %v5352_v14, 0.0  ;;  %v5360_v62 = vld [vmem:[#allocation2 + $0xa8] sm:$0xff]  ;;  %v2174_v50 = vsel %vm2070_vm0, %v5356_v17, 0.0  ;;  %v5364_v37 = vld [vmem:[#allocation2 + $0xb0] sm:$0xff]  ;;  %v5368_v58 = vld [vmem:[#allocation2 + $0xb8] sm:$0xff] }
 0x1ec   : > { %v2143_v38 = vadd.f32 %v2142_v2, %v2141_v4  ;;  %v2176_v21 = vsel %vm2070_vm0, %v5360_v62, 0.0  ;;  %v2178_v24 = vsel %vm2070_vm0, %v5364_v37, 0.0  ;;  %v5372_v61 = vld [vmem:[#allocation2 + $0xc0] sm:$0xff]  ;;  %v2180_v1 = vsel %vm2070_vm0, %v5368_v58, 0.0  ;;  %v5376_v2 = vld [vmem:[#allocation2 + $0xc8] sm:$0xff] }
 0x1ee   : > { %v2145_v10 = vadd.f32 %v2144_v6, %v2143_v38  ;;  %v2182_v6 = vsel %vm2070_vm0, %v5372_v61, 0.0  ;;  %v5380_v38 = vld [vmem:[#allocation2 + $0xd0] sm:$0xff] }
 0x1f0   : > { %v2147_v55 = vadd.f32 %v2146_v53, %v2145_v10  ;;  %v2184_v10 = vsel %vm2070_vm0, %v5376_v2, 0.0 }
 0x1f2   : > { %v2149_v22 = vadd.f32 %v2148_v12, %v2147_v55  ;;  %v5384_v12 = vld [vmem:[#allocation2 + $0xd8] sm:$0xff] }
 0x1f4   : > { %v2151_v27 = vadd.f32 %v2150_v19, %v2149_v22  ;;  %v2186_v19 = vsel %vm2070_vm0, %v5380_v38, 0.0  ;;  %v5388_v22 = vld [vmem:[#allocation2 + $0xe0] sm:$0xff] }
 0x1f6   : > { %v2153_v57 = vadd.f32 %v2152_v26, %v2151_v27  ;;  %v2188_v27 = vsel %vm2070_vm0, %v5384_v12, 0.0 }
 0x1f8   : > { %v2155_v30 = vadd.f32 %v2154_v28, %v2153_v57  ;;  %v5392_v28 = vld [vmem:[#allocation2 + $0xe8] sm:$0xff] }
 0x1fa   : > { %v2157_v5 = vadd.f32 %v2156_v60, %v2155_v30  ;;  %v2190_v60 = vsel %vm2070_vm0, %v5388_v22, 0.0  ;;  %v5396_v30 = vld [vmem:[#allocation2 + $0xf0] sm:$0xff] }
 0x1fc   : > { %v2159_v13 = vadd.f32 %v2158_v16, %v2157_v5  ;;  %v2192_v5 = vsel %vm2070_vm0, %v5392_v28, 0.0 }
 0x1fe   : > { %v2161_v32 = vadd.f32 %v2160_v45, %v2159_v13  ;;  %v5400_v45 = vld [vmem:[#allocation2 + $0xf8] sm:$0xff] }
 0x200   : > { %v2163_v25 = vadd.f32 %v2162_v18, %v2161_v32  ;;  %v2194_v18 = vsel %vm2070_vm0, %v5396_v30, 0.0  ;;  %v5404_v32 = vld [vmem:[#allocation2 + $0x100] sm:$0xff] }
 0x202   : > { %v2165_v42 = vadd.f32 %v2164_v7, %v2163_v25  ;;  %v2196_v25 = vsel %vm2070_vm0, %v5400_v45, 0.0 }
 0x204   : > { %v2167_v56 = vadd.f32 %v2166_v47, %v2165_v42  ;;  %v5408_v47 = vld [vmem:[#allocation2 + $0x108] sm:$0xff] }
 0x206   : > { %v2169_v46 = vadd.f32 %v2168_v43, %v2167_v56  ;;  %v2198_v43 = vsel %vm2070_vm0, %v5404_v32, 0.0  ;;  %v5412_v56 = vld [vmem:[#allocation2 + $0x110] sm:$0xff] }
 0x208   : > { %v2171_v49 = vadd.f32 %v2170_v44, %v2169_v46  ;;  %v2200_v46 = vsel %vm2070_vm0, %v5408_v47, 0.0 }
 0x20a   : > { %v2173_v59 = vadd.f32 %v2172_v48, %v2171_v49  ;;  %v5416_v48 = vld [vmem:[#allocation2 + $0x118] sm:$0xff] }
 0x20c   : > { %v2175_v35 = vadd.f32 %v2174_v50, %v2173_v59  ;;  %v2202_v50 = vsel %vm2070_vm0, %v5412_v56, 0.0  ;;  %v5420_v59 = vld [vmem:[#allocation2 + $0x120] sm:$0xff] }
 0x20e   : > { %v2177_v63 = vadd.f32 %v2176_v21, %v2175_v35  ;;  %v2204_v35 = vsel %vm2070_vm0, %v5416_v48, 0.0 }
 0x210   : > { %v2179_v4 = vadd.f32 %v2178_v24, %v2177_v63  ;;  %v5424_v24 = vld [vmem:[#allocation2 + $0x128] sm:$0xff] }
 0x212   : > { %v2181_v53 = vadd.f32 %v2180_v1, %v2179_v4  ;;  %v2206_v1 = vsel %vm2070_vm0, %v5420_v59, 0.0  ;;  %v5428_v4 = vld [vmem:[#allocation2 + $0x130] sm:$0xff] }
 0x214   : > { %v2183_v55 = vadd.f32 %v2182_v6, %v2181_v53  ;;  %v2208_v53 = vsel %vm2070_vm0, %v5424_v24, 0.0 }
 0x216   : > { %v2185_v26 = vadd.f32 %v2184_v10, %v2183_v55  ;;  %v5432_v10 = vld [vmem:[#allocation2 + $0x138] sm:$0xff] }
 0x218   : > { %v2187_v57 = vadd.f32 %v2186_v19, %v2185_v26  ;;  %v2210_v19 = vsel %vm2070_vm0, %v5428_v4, 0.0 }
 0x21a   : > { %v2189_v16 = vadd.f32 %v2188_v27, %v2187_v57  ;;  %v2212_v27 = vsel %vm2070_vm0, %v5432_v10, 0.0 }
 0x21c   : > { %v2191_v13 = vadd.f32 %v2190_v60, %v2189_v16 }
 0x21e   : > { %v2193_v7 = vadd.f32 %v2192_v5, %v2191_v13 }
 0x220   : > { %v2195_v42 = vadd.f32 %v2194_v18, %v2193_v7 }
 0x222   : > { %v2197_v44 = vadd.f32 %v2196_v25, %v2195_v42 }
 0x224   : > { %v2199_v49 = vadd.f32 %v2198_v43, %v2197_v44 }
 0x226   : > { %v2201_v21 = vadd.f32 %v2200_v46, %v2199_v49 }
 0x228   : > { %v2203_v63 = vadd.f32 %v2202_v50, %v2201_v21 }
 0x22a   : > { %v2205_v6 = vadd.f32 %v2204_v35, %v2203_v63 }
 0x22c   : > { %v2207_v55 = vadd.f32 %v2206_v1, %v2205_v6 }
 0x22e   : > { %v2209_v26 = vadd.f32 %v2208_v53, %v2207_v55 }
 0x230   : > { %v2211_v57 = vadd.f32 %v2210_v19, %v2209_v26 }
 0x232   : > { %v2213_v60 = vadd.f32 %v2212_v27, %v2211_v57 }
 0x234   : > { %v2214_v16 = vrot.slane %v2213_v60, 4 }
 0x236   : > { %v2215_v5 = vadd.f32 %v2214_v16, %v2213_v60 }
 0x238   : > { %v2216_v13 = vrot.slane %v2215_v5, 2 }
 0x23a   : > { %v2217_v18 = vadd.f32 %v2216_v13, %v2215_v5 }
 0x23c   : > { %v2218_v7 = vrot.slane %v2217_v18, 1 }
 0x23e   : > { %v2219_v25 = vadd.f32 %v2218_v7, %v2217_v18 }
 0x240   : > { %v5438_v42 = vmul.f32 0.0033333334, %v2219_v25 }
 0x242   : > { %v2221_v43 = vsub.f32 %v5278_v54, %v5438_v42  ;;  %v2222_v44 = vsub.f32 %v5280_v33, %v5438_v42  ;;  %v2223_v46 = vsub.f32 %v5282_v51, %v5438_v42  ;;  %v2224_v49 = vsub.f32 %v5284_v52, %v5438_v42 }
 0x243   : > { %v2225_v50 = vsub.f32 %v5292_v39, %v5438_v42  ;;  %v2226_v1 = vsub.f32 %v5296_v0, %v5438_v42  ;;  %v2227_v53 = vsub.f32 %v5300_v3, %v5438_v42  ;;  %v2228_v60 = vsub.f32 %v5304_v8, %v5438_v42 }
 0x244   : > { %v2261_v21 = vmul.f32 %v2221_v43, %v2221_v43  ;;  %v2262_v35 = vmul.f32 %v2222_v44, %v2222_v44  ;;  %v2263_v63 = vmul.f32 %v2223_v46, %v2223_v46  ;;  %v2264_v6 = vmul.f32 %v2224_v49, %v2224_v49 }
 0x245   : > { %v2265_v55 = vmul.f32 %v2225_v50, %v2225_v50  ;;  %v2266_v16 = vmul.f32 %v2226_v1, %v2226_v1  ;;  %v2229_v18 = vsub.f32 %v5308_v9, %v5438_v42  ;;  %v2267_v7 = vmul.f32 %v2227_v53, %v2227_v53 }
 0x246   : > { %v2301_v19 = vsel %vm2070_vm0, %v2261_v21, 0.0  ;;  %v2302_v26 = vsel %vm2070_vm0, %v2262_v35, 0.0  ;;  %v2304_v27 = vsel %vm2070_vm0, %v2263_v63, 0.0  ;;  %v2306_v5 = vsel %vm2070_vm0, %v2264_v6, 0.0 }
 0x247   : > { %v2303_v57 = vadd.f32 %v2302_v26, %v2301_v19  ;;  %v2308_v25 = vsel %vm2070_vm0, %v2265_v55, 0.0  ;;  %v2230_v44 = vsub.f32 %v5310_v41, %v5438_v42  ;;  %v2268_v46 = vmul.f32 %v2228_v60, %v2228_v60 }
 0x248   : > { %v2310_v49 = vsel %vm2070_vm0, %v2266_v16, 0.0  ;;  %v2231_v21 = vsub.f32 %v5314_v11, %v5438_v42  ;;  %v2269_v35 = vmul.f32 %v2229_v18, %v2229_v18  ;;  %v2312_v63 = vsel %vm2070_vm0, %v2267_v7, 0.0 }
 0x249   : > { %v2305_v13 = vadd.f32 %v2304_v27, %v2303_v57  ;;  %v2232_v6 = vsub.f32 %v5318_v20, %v5438_v42  ;;  %v2270_v53 = vmul.f32 %v2230_v44, %v2230_v44  ;;  %v2314_v55 = vsel %vm2070_vm0, %v2268_v46, 0.0 }
 0x24a   : > { %v2233_v26 = vsub.f32 %v5324_v29, %v5438_v42  ;;  %v2271_v27 = vmul.f32 %v2231_v21, %v2231_v21  ;;  %v2316_v57 = vsel %vm2070_vm0, %v2269_v35, 0.0  ;;  %v5902_v16 = vmov 0.0  }
 0x24b   : > { %v2307_v43 = vadd.f32 %v2306_v5, %v2305_v13  ;;  %4121 = vmatprep.subr.bf16.mxu1 %v5902_v16  ;;  %v2234_v5 = vsub.f32 %v5328_v34, %v5438_v42  ;;  %v2272_v13 = vmul.f32 %v2232_v6, %v2232_v6  ;;  %v2318_v18 = vsel %vm2070_vm0, %v2270_v53, 0.0  ;;  %4129 = vmatprep.mubr.msk.bf16.mxu1 %vm4673_vm1, %v5902_v16 }
 0x24c   : > { %v2320_v44 = vsel %vm2070_vm0, %v2271_v27, 0.0  ;;  %v2239_v27 = vsub.f32 %v5348_v40, %v5438_v42 }
 0x24d   : > { %v2309_v50 = vadd.f32 %v2308_v25, %v2307_v43  ;;  %v2235_v25 = vsub.f32 %v5332_v23, %v5438_v42  ;;  %v2273_v43 = vmul.f32 %v2233_v26, %v2233_v26  ;;  %v2322_v21 = vsel %vm2070_vm0, %v2272_v13, 0.0 }
 0x24f   : > { %v2311_v1 = vadd.f32 %v2310_v49, %v2309_v50  ;;  %v2236_v49 = vsub.f32 %v5336_v36, %v5438_v42  ;;  %v2274_v50 = vmul.f32 %v2234_v5, %v2234_v5  ;;  %v2324_v6 = vsel %vm2070_vm0, %v2273_v43, 0.0 }
 0x251   : > { %v2313_v19 = vadd.f32 %v2312_v63, %v2311_v1  ;;  %v2237_v63 = vsub.f32 %v5340_v31, %v5438_v42  ;;  %v2275_v1 = vmul.f32 %v2235_v25, %v2235_v25  ;;  %v2326_v26 = vsel %vm2070_vm0, %v2274_v50, 0.0 }
 0x252   : > { %v2240_v25 = vsub.f32 %v5352_v14, %v5438_v42  ;;  %v2279_v50 = vmul.f32 %v2239_v27, %v2239_v27  ;;  %v2244_v27 = vsub.f32 %v5368_v58, %v5438_v42 }
 0x253   : > { %v2315_v60 = vadd.f32 %v2314_v55, %v2313_v19  ;;  %v2238_v55 = vsub.f32 %v5344_v15, %v5438_v42  ;;  %v2276_v19 = vmul.f32 %v2236_v49, %v2236_v49  ;;  %v2277_v5 = vmul.f32 %v2237_v63, %v2237_v63 }
 0x254   : > { %v2328_v13 = vsel %vm2070_vm0, %v2275_v1, 0.0  ;;  %v2241_v49 = vsub.f32 %v5356_v17, %v5438_v42  ;;  %v2242_v63 = vsub.f32 %v5360_v62, %v5438_v42  ;;  %v2280_v1 = vmul.f32 %v2240_v25, %v2240_v25 }
 0x255   : > { %v2317_v7 = vadd.f32 %v2316_v57, %v2315_v60  ;;  %v5496_v60 = vld [vmem:[%s5895_s4] sm:$0xff]  ;;  %v2278_v43 = vmul.f32 %v2238_v55, %v2238_v55  ;;  %v2243_v55 = vsub.f32 %v5364_v37, %v5438_v42 }
 0x256   : > { %5908 = vst [vmem:[#allocation9_spill] sm:$0xff] %v5496_v60 }
 0x257   : > { %v2319_v46 = vadd.f32 %v2318_v18, %v2317_v7  ;;  %v3672_v18 = vcombine.high %v5496_v60, %v5496_v60  ;;  %v2283_v25 = vmul.f32 %v2243_v55, %v2243_v55 }
 0x259   : > { %v2321_v35 = vadd.f32 %v2320_v44, %v2319_v46  ;;  %v2330_v44 = vsel %vm2070_vm0, %v2276_v19, 0.0  ;;  %2597 = vmatprep.mubr.bf16.mxu0 %v3672_v18  ;;  %v2281_v19 = vmul.f32 %v2241_v49, %v2241_v49  ;;  %v2284_v49 = vmul.f32 %v2244_v27, %v2244_v27 }
 0x25b   : > { %v2323_v53 = vadd.f32 %v2322_v21, %v2321_v35  ;;  %v2332_v21 = vsel %vm2070_vm0, %v2277_v5, 0.0  ;;  %v2338_v5 = vsel %vm2070_vm0, %v2280_v1, 0.0  ;;  %v2344_v1 = vsel %vm2070_vm0, %v2283_v25, 0.0 }
 0x25d   : > { %v2325_v57 = vadd.f32 %v2324_v6, %v2323_v53  ;;  %v2334_v6 = vsel %vm2070_vm0, %v2278_v43, 0.0  ;;  %v2340_v43 = vsel %vm2070_vm0, %v2281_v19, 0.0  ;;  %v2346_v19 = vsel %vm2070_vm0, %v2284_v49, 0.0 }
 0x25f   : > { %v2327_v7 = vadd.f32 %v2326_v26, %v2325_v57  ;;  %v2336_v26 = vsel %vm2070_vm0, %v2279_v50, 0.0 }
 0x261   : > { %v2329_v46 = vadd.f32 %v2328_v13, %v2327_v7  ;;  %v2282_v13 = vmul.f32 %v2242_v63, %v2242_v63  ;;  %v2245_v7 = vsub.f32 %v5372_v61, %v5438_v42 }
 0x263   : > { %v2331_v35 = vadd.f32 %v2330_v44, %v2329_v46  ;;  %v2246_v46 = vsub.f32 %v5376_v2, %v5438_v42  ;;  %v2342_v50 = vsel %vm2070_vm0, %v2282_v13, 0.0  ;;  %v2285_v63 = vmul.f32 %v2245_v7, %v2245_v7 }
 0x265   : > { %v2333_v53 = vadd.f32 %v2332_v21, %v2331_v35  ;;  %v2247_v35 = vsub.f32 %v5380_v38, %v5438_v42  ;;  %v2286_v55 = vmul.f32 %v2246_v46, %v2246_v46  ;;  %v2348_v13 = vsel %vm2070_vm0, %v2285_v63, 0.0 }
 0x267   : > { %v2335_v57 = vadd.f32 %v2334_v6, %v2333_v53  ;;  %v2248_v53 = vsub.f32 %v5384_v12, %v5438_v42  ;;  %v2287_v27 = vmul.f32 %v2247_v35, %v2247_v35  ;;  %v2350_v25 = vsel %vm2070_vm0, %v2286_v55, 0.0 }
 0x269   : > { %v2337_v18 = vadd.f32 %v2336_v26, %v2335_v57  ;;  %v2249_v57 = vsub.f32 %v5388_v22, %v5438_v42  ;;  %v2288_v7 = vmul.f32 %v2248_v53, %v2248_v53  ;;  %v2352_v49 = vsel %vm2070_vm0, %v2287_v27, 0.0 }
 0x26b   : > { %v2339_v44 = vadd.f32 %v2338_v5, %v2337_v18  ;;  %v2250_v18 = vsub.f32 %v5392_v28, %v5438_v42  ;;  %v2289_v46 = vmul.f32 %v2249_v57, %v2249_v57  ;;  %v2354_v63 = vsel %vm2070_vm0, %v2288_v7, 0.0 }
 0x26d   : > { %v2341_v21 = vadd.f32 %v2340_v43, %v2339_v44  ;;  %v2251_v44 = vsub.f32 %v5396_v30, %v5438_v42  ;;  %v2290_v35 = vmul.f32 %v2250_v18, %v2250_v18  ;;  %v2356_v55 = vsel %vm2070_vm0, %v2289_v46, 0.0 }
 0x26f   : > { %v2343_v6 = vadd.f32 %v2342_v50, %v2341_v21  ;;  %v2252_v21 = vsub.f32 %v5400_v45, %v5438_v42  ;;  %v2291_v53 = vmul.f32 %v2251_v44, %v2251_v44  ;;  %v2358_v27 = vsel %vm2070_vm0, %v2290_v35, 0.0 }
 0x271   : > { %v2345_v26 = vadd.f32 %v2344_v1, %v2343_v6  ;;  %v2253_v6 = vsub.f32 %v5404_v32, %v5438_v42  ;;  %v2292_v57 = vmul.f32 %v2252_v21, %v2252_v21  ;;  %v2360_v7 = vsel %vm2070_vm0, %v2291_v53, 0.0 }
 0x273   : > { %v2347_v5 = vadd.f32 %v2346_v19, %v2345_v26  ;;  %v2254_v26 = vsub.f32 %v5408_v47, %v5438_v42  ;;  %v2293_v18 = vmul.f32 %v2253_v6, %v2253_v6  ;;  %v2362_v46 = vsel %vm2070_vm0, %v2292_v57, 0.0 }
 0x275   : > { %v2349_v43 = vadd.f32 %v2348_v13, %v2347_v5  ;;  %v2255_v5 = vsub.f32 %v5412_v56, %v5438_v42  ;;  %v2294_v44 = vmul.f32 %v2254_v26, %v2254_v26  ;;  %v2364_v35 = vsel %vm2070_vm0, %v2293_v18, 0.0 }
 0x277   : > { %v2351_v50 = vadd.f32 %v2350_v25, %v2349_v43  ;;  %v2256_v43 = vsub.f32 %v5416_v48, %v5438_v42  ;;  %v2295_v21 = vmul.f32 %v2255_v5, %v2255_v5  ;;  %v2366_v53 = vsel %vm2070_vm0, %v2294_v44, 0.0 }
 0x279   : > { %v2353_v1 = vadd.f32 %v2352_v49, %v2351_v50  ;;  %v2257_v50 = vsub.f32 %v5420_v59, %v5438_v42  ;;  %v2296_v6 = vmul.f32 %v2256_v43, %v2256_v43  ;;  %v2368_v57 = vsel %vm2070_vm0, %v2295_v21, 0.0 }
 0x27b   : > { %v2355_v19 = vadd.f32 %v2354_v63, %v2353_v1  ;;  %v2258_v1 = vsub.f32 %v5424_v24, %v5438_v42  ;;  %v2297_v26 = vmul.f32 %v2257_v50, %v2257_v50  ;;  %v2370_v18 = vsel %vm2070_vm0, %v2296_v6, 0.0 }
 0x27c   : > { %v2386_v6 = vmul.f32 20.0, %v5438_v42 }
 0x27d   : > { %v2357_v13 = vadd.f32 %v2356_v55, %v2355_v19  ;;  %v2259_v19 = vsub.f32 %v5428_v4, %v5438_v42  ;;  %v2298_v5 = vmul.f32 %v2258_v1, %v2258_v1  ;;  %v2372_v43 = vsel %vm2070_vm0, %v2297_v26, 0.0 }
 0x27e   : > { %v2387_v26 = vmul.f32 %v2386_v6, %v5438_v42 }
 0x27f   : > { %v2359_v25 = vadd.f32 %v2358_v27, %v2357_v13  ;;  %v2260_v13 = vsub.f32 %v5432_v10, %v5438_v42 }
 0x281   : > { %v2361_v49 = vadd.f32 %v2360_v7, %v2359_v25  ;;  %v2299_v25 = vmul.f32 %v2259_v19, %v2259_v19  ;;  %v2300_v44 = vmul.f32 %v2260_v13, %v2260_v13 }
 0x283   : > { %v2363_v63 = vadd.f32 %v2362_v46, %v2361_v49  ;;  %v2374_v49 = vsel %vm2070_vm0, %v2298_v5, 0.0  ;;  %v2376_v50 = vsel %vm2070_vm0, %v2299_v25, 0.0  ;;  %v2378_v21 = vsel %vm2070_vm0, %v2300_v44, 0.0 }
 0x285   : > { %v2365_v55 = vadd.f32 %v2364_v35, %v2363_v63 }
 0x287   : > { %v2367_v27 = vadd.f32 %v2366_v53, %v2365_v55 }
 0x289   : > { %v2369_v7 = vadd.f32 %v2368_v57, %v2367_v27 }
 0x28b   : > { %v2371_v46 = vadd.f32 %v2370_v18, %v2369_v7  ;;  %v2398_v7 = vlaneseq }
 0x28d   : > { %v2373_v35 = vadd.f32 %v2372_v43, %v2371_v46  ;;  %v2399_v25 = vshrl.u32 %v2398_v7, 7  ;;  %v2390_v43 = vld [vmem:[%s5893_s2] sm:$0x1] }
 0x28f   : > { %v2375_v63 = vadd.f32 %v2374_v49, %v2373_v35  ;;  %v2400_v46 = vsub.s32 0, %v2399_v25 }
 0x291   : > { %v2377_v53 = vadd.f32 %v2376_v50, %v2375_v63 }
 0x293   : > { %v2379_v55 = vadd.f32 %v2378_v21, %v2377_v53 }
 0x295   : > { %v2380_v16 = vrot.slane %v2379_v55, 4 }
 0x297   : > { %v2381_v1 = vadd.f32 %v2380_v16, %v2379_v55 }
 0x299   : > { %v2382_v60 = vrot.slane %v2381_v1, 2 }
 0x29b   : > { %v2383_v19 = vadd.f32 %v2382_v60, %v2381_v1  ;;  %v2394_v60 = vld [vmem:[%s5894_s3] sm:$0x1] }
 0x29d   : > { %v2384_v57 = vrot.slane %v2383_v19, 1 }
 0x29f   : > { %v2385_v27 = vadd.f32 %v2384_v57, %v2383_v19 }
 0x2a1   : > { %v2388_v13 = vsub.f32 %v2385_v27, %v2387_v26 }
 0x2a3   : > { %v2389_v5 = vmul.f32 0.0033333334, %v2388_v13 }
 0x2a5   : > { %v2391_v18 = vadd.f32 1e-05, %v2389_v5 }
 0x2a7   : > { %4507 = vrsqrt.f32 %v2391_v18 }
 0x2b1   : > { %v4508_v16 = vpop.eup %4507 }
 0x2b2   : > { %v2393_v44 = vmul.f32 %v4508_v16, %v2390_v43 }
 0x2b4   : > { %v2395_v49 = vmul.f32 %v2393_v44, %v5438_v42  ;;  %v5579_v35 = vrot.slane %v2393_v44, %v2400_v46 }
 0x2b6   : > { %v2396_v50 = vsub.f32 %v2394_v60, %v2395_v49  ;;  %v2419_v63 = vmul.f32 %v5579_v35, %v5340_v31  ;;  %v2420_v21 = vmul.f32 %v5579_v35, %v5344_v15  ;;  %v2403_v53 = vmul.f32 %v5579_v35, %v5278_v54 }
 0x2b7   : > { %v2404_v55 = vmul.f32 %v5579_v35, %v5280_v33  ;;  %v2421_v1 = vmul.f32 %v5579_v35, %v5348_v40  ;;  %v2422_v42 = vmul.f32 %v5579_v35, %v5352_v14  ;;  %v2405_v6 = vmul.f32 %v5579_v35, %v5282_v51 }
 0x2b8   : > { %v5595_v19 = vrot.slane %v2396_v50, %v2400_v46  ;;  %v2406_v31 = vmul.f32 %v5579_v35, %v5284_v52  ;;  %v2423_v54 = vmul.f32 %v5579_v35, %v5356_v17  ;;  %v2424_v33 = vmul.f32 %v5579_v35, %v5360_v62 }
 0x2b9   : > { %v2407_v15 = vmul.f32 %v5579_v35, %v5292_v39  ;;  %v2408_v40 = vmul.f32 %v5579_v35, %v5296_v0  ;;  %v2425_v51 = vmul.f32 %v5579_v35, %v5364_v37  ;;  %v2426_v14 = vmul.f32 %v5579_v35, %v5368_v58 }
 0x2ba   : > { %v2465_v52 = vadd.f32 %v5595_v19, %v2419_v63  ;;  %v2466_v57 = vadd.f32 %v5595_v19, %v2420_v21  ;;  %v2449_v17 = vadd.f32 %v5595_v19, %v2403_v53  ;;  %v2450_v62 = vadd.f32 %v5595_v19, %v2404_v55 }
 0x2bb   : > { %v2467_v26 = vadd.f32 %v5595_v19, %v2421_v1  ;;  %v2468_v39 = vadd.f32 %v5595_v19, %v2422_v42  ;;  %v2451_v0 = vadd.f32 %v5595_v19, %v2405_v6  ;;  %v2452_v27 = vadd.f32 %v5595_v19, %v2406_v31 }
 0x2bc   : > { %v2505_v37 = vmax.f32 %v2465_v52, 0.0  ;;  %v2506_v13 = vmax.f32 %v2466_v57, 0.0  ;;  %v2489_v5 = vmax.f32 %v2449_v17, 0.0  ;;  %v2490_v58 = vmax.f32 %v2450_v62, 0.0 }
 0x2bd   : > { %v2507_v18 = vmax.f32 %v2467_v26, 0.0  ;;  %v2508_v7 = vmax.f32 %v2468_v39, 0.0  ;;  %v2491_v25 = vmax.f32 %v2451_v0, 0.0  ;;  %v2492_v43 = vmax.f32 %v2452_v27, 0.0 }
 0x2be   : > { %v2539_v46 = vpack.c.bf16 %v2506_v13, %v2505_v37  ;;  %v2531_v16 = vpack.c.bf16 %v2490_v58, %v2489_v5  ;;  %v2469_v44 = vadd.f32 %v5595_v19, %v2423_v54  ;;  %v2470_v60 = vadd.f32 %v5595_v19, %v2424_v33 }
 0x2bf   : > { %v2540_v49 = vpack.c.bf16 %v2508_v7, %v2507_v18  ;;  %v2532_v50 = vpack.c.bf16 %v2492_v43, %v2491_v25  ;;  %v2453_v63 = vadd.f32 %v5595_v19, %v2407_v15  ;;  %v2454_v21 = vadd.f32 %v5595_v19, %v2408_v40 }
 0x2c0   : > { %4025 = vmatprep.subr.bf16.mxu0 %v2539_v46  ;;  %v2509_v53 = vmax.f32 %v2469_v44, 0.0  ;;  %v2510_v55 = vmax.f32 %v2470_v60, 0.0  ;;  %v2471_v1 = vadd.f32 %v5595_v19, %v2425_v51  ;;  %v2472_v42 = vadd.f32 %v5595_v19, %v2426_v14 }
 0x2c1   : > { %4026 = vmatpush3.bf16.msra.mxu0 %v2531_v16  ;;  %v2493_v6 = vmax.f32 %v2453_v63, 0.0  ;;  %v2494_v31 = vmax.f32 %v2454_v21, 0.0  ;;  %v2409_v54 = vmul.f32 %v5579_v35, %v5300_v3  ;;  %v2410_v33 = vmul.f32 %v5579_v35, %v5304_v8 }
 0x2c2   : > { %4027 = vmatprep.subr.bf16.mxu0 %v2540_v49  ;;  %v2541_v15 = vpack.c.bf16 %v2510_v55, %v2509_v53  ;;  %v2511_v52 = vmax.f32 %v2471_v1, 0.0  ;;  %v2512_v40 = vmax.f32 %v2472_v42, 0.0  ;;  %v2427_v57 = vmul.f32 %v5579_v35, %v5372_v61 }
 0x2c3   : > { %v2533_v17 = vpack.c.bf16 %v2494_v31, %v2493_v6  ;;  %v2455_v51 = vadd.f32 %v5595_v19, %v2409_v54  ;;  %v2456_v14 = vadd.f32 %v5595_v19, %v2410_v33  ;;  %v2428_v62 = vmul.f32 %v5579_v35, %v5376_v2 }
 0x2c4   : > { %v2542_v26 = vpack.c.bf16 %v2512_v40, %v2511_v52  ;;  %v2473_v3 = vadd.f32 %v5595_v19, %v2427_v57  ;;  %v2411_v8 = vmul.f32 %v5579_v35, %v5308_v9  ;;  %v2412_v39 = vmul.f32 %v5579_v35, %v5310_v41 }
 0x2c5   : > { %4028 = vmatpush3.bf16.msra.mxu0 %v2532_v50  ;;  %v2495_v0 = vmax.f32 %v2455_v51, 0.0  ;;  %v2496_v61 = vmax.f32 %v2456_v14, 0.0  ;;  %v2474_v27 = vadd.f32 %v5595_v19, %v2428_v62  ;;  %v2435_v37 = vmul.f32 %v5579_v35, %v5404_v32 }
 0x2c6   : > { %4029 = vmatprep.subr.bf16.mxu0 %v2541_v15  ;;  %v2513_v13 = vmax.f32 %v2473_v3, 0.0  ;;  %v2457_v2 = vadd.f32 %v5595_v19, %v2411_v8  ;;  %v2458_v5 = vadd.f32 %v5595_v19, %v2412_v39  ;;  %v2436_v9 = vmul.f32 %v5579_v35, %v5408_v47 }
 0x2c7   : > { %v2534_v58 = vpack.c.bf16 %v2496_v61, %v2495_v0  ;;  %v2514_v18 = vmax.f32 %v2474_v27, 0.0  ;;  %v2481_v41 = vadd.f32 %v5595_v19, %v2435_v37  ;;  %v2429_v7 = vmul.f32 %v5579_v35, %v5380_v38 }
 0x2c8   : > { %v2497_v25 = vmax.f32 %v2457_v2, 0.0  ;;  %v2498_v43 = vmax.f32 %v2458_v5, 0.0  ;;  %v2482_v32 = vadd.f32 %v5595_v19, %v2436_v9  ;;  %v2430_v46 = vmul.f32 %v5579_v35, %v5384_v12 }
 0x2c9   : > { %4030 = vmatpush3.bf16.msra.mxu0 %v2533_v17  ;;  %v2543_v16 = vpack.c.bf16 %v2514_v18, %v2513_v13  ;;  %v2521_v44 = vmax.f32 %v2481_v41, 0.0  ;;  %v2475_v60 = vadd.f32 %v5595_v19, %v2429_v7  ;;  %v2413_v47 = vmul.f32 %v5579_v35, %v5314_v11 }
 0x2ca   : > { %4031 = vmatprep.subr.bf16.mxu0 %v2542_v26  ;;  %v2535_v49 = vpack.c.bf16 %v2498_v43, %v2497_v25  ;;  %v2522_v50 = vmax.f32 %v2482_v32, 0.0  ;;  %v2476_v38 = vadd.f32 %v5595_v19, %v2430_v46  ;;  %v2414_v63 = vmul.f32 %v5579_v35, %v5318_v20 }
 0x2cb   : > { %v2515_v21 = vmax.f32 %v2475_v60, 0.0  ;;  %v2459_v53 = vadd.f32 %v5595_v19, %v2413_v47  ;;  %v2437_v12 = vmul.f32 %v5579_v35, %v5412_v56  ;;  %v2438_v55 = vmul.f32 %v5579_v35, %v5416_v48 }
 0x2cc   : > { %v2547_v1 = vpack.c.bf16 %v2522_v50, %v2521_v44  ;;  %v2516_v42 = vmax.f32 %v2476_v38, 0.0  ;;  %v2460_v11 = vadd.f32 %v5595_v19, %v2414_v63  ;;  %v2431_v6 = vmul.f32 %v5579_v35, %v5388_v22  ;;  %v5910_v38 = vld [vmem:[#allocation9_spill] sm:$0xff] }
 0x2cd   : > { %4032 = vmatpush3.bf16.msra.mxu0 %v2534_v58  ;;  %v2499_v31 = vmax.f32 %v2459_v53, 0.0  ;;  %v2483_v20 = vadd.f32 %v5595_v19, %v2437_v12  ;;  %v2484_v54 = vadd.f32 %v5595_v19, %v2438_v55  ;;  %v2432_v33 = vmul.f32 %v5579_v35, %v5392_v28  ;;  %v4503_v63 = vld [vmem:[%s5896_s5 + $0x8] sm:$0xff]   ;;  %v5732_v12 = vld [vmem:[%s5897_s6] sm:$0xff]  }
 0x2ce   : > { %4033 = vmatprep.subr.bf16.mxu0 %v2543_v16  ;;  %4122 = vmatpush3.bf16.msra.mxu1 %v2547_v1  ;;  %v2544_v56 = vpack.c.bf16 %v2516_v42, %v2515_v21  ;;  %v2500_v48 = vmax.f32 %v2460_v11, 0.0  ;;  %v2477_v15 = vadd.f32 %v5595_v19, %v2431_v6  ;;  %v2415_v52 = vmul.f32 %v5579_v35, %v5324_v29  ;;  %v4504_v21 = vld [vmem:[%s5896_s5 + $0x10] ss:$0 sps:$4 sm:$0xff]   ;;  %v5739_v55 = vld [vmem:[%s5897_s6 + $0x8] sm:$0xff]  }
 0x2cf   : > { %v5909_v40 = vmov 0.0   ;;  %v2523_v22 = vmax.f32 %v2483_v20, 0.0  ;;  %v2524_v57 = vmax.f32 %v2484_v54, 0.0  ;;  %v2478_v17 = vadd.f32 %v5595_v19, %v2432_v33 }
 0x2d0   : > { %4123 = vmatprep.subr.bf16.mxu1 %v5909_v40  ;;  %v2416_v51 = vmul.f32 %v5579_v35, %v5328_v34  ;;  %v2536_v14 = vpack.c.bf16 %v2500_v48, %v2499_v31  ;;  %v2517_v28 = vmax.f32 %v2477_v15, 0.0  ;;  %v2461_v62 = vadd.f32 %v5595_v19, %v2415_v52 }
 0x2d1   : > { %v2439_v26 = vmul.f32 %v5579_v35, %v5420_v59  ;;  %4034 = vmatpush3.bf16.msra.mxu0 %v2535_v49  ;;  %v2548_v3 = vpack.c.bf16 %v2524_v57, %v2523_v22  ;;  %v2518_v8 = vmax.f32 %v2478_v17, 0.0  ;;  %v2440_v39 = vmul.f32 %v5579_v35, %v5424_v24 }
 0x2d2   : > { %v2462_v29 = vadd.f32 %v5595_v19, %v2416_v51  ;;  %4035 = vmatprep.subr.bf16.mxu0 %v2544_v56  ;;  %v2501_v0 = vmax.f32 %v2461_v62, 0.0  ;;  %v2433_v34 = vmul.f32 %v5579_v35, %v5396_v30  ;;  %v2434_v27 = vmul.f32 %v5579_v35, %v5400_v45 }
 0x2d3   : > { %v2485_v61 = vadd.f32 %v5595_v19, %v2439_v26  ;;  %4124 = vmatpush3.bf16.msra.mxu1 %v2548_v3  ;;  %v2545_v59 = vpack.c.bf16 %v2518_v8, %v2517_v28  ;;  %v2486_v13 = vadd.f32 %v5595_v19, %v2440_v39  ;;  %v2417_v2 = vmul.f32 %v5579_v35, %v5332_v23 }
 0x2d4   : > { %v2502_v37 = vmax.f32 %v2462_v29, 0.0  ;;  %4125 = vmatprep.subr.bf16.mxu1 %v5909_v40  ;;  %v2479_v5 = vadd.f32 %v5595_v19, %v2433_v34  ;;  %v2480_v9 = vadd.f32 %v5595_v19, %v2434_v27  ;;  %v2418_v30 = vmul.f32 %v5579_v35, %v5336_v36 }
 0x2d5   : > { %v2525_v24 = vmax.f32 %v2485_v61, 0.0  ;;  %4036 = vmatpush3.bf16.msra.mxu0 %v2536_v14  ;;  %v2526_v58 = vmax.f32 %v2486_v13, 0.0  ;;  %v2463_v18 = vadd.f32 %v5595_v19, %v2417_v2  ;;  %v2441_v41 = vmul.f32 %v5579_v35, %v5428_v4  ;;  %v3675_v14 = vld [vmem:[%s5898_s7] ss:$0 sm:$0xff] }
 0x2d6   : > { %v2537_v45 = vpack.c.bf16 %v2502_v37, %v2501_v0  ;;  %4037 = vmatprep.subr.bf16.mxu0 %v2545_v59  ;;  %v2519_v23 = vmax.f32 %v2479_v5, 0.0  ;;  %v2520_v7 = vmax.f32 %v2480_v9, 0.0  ;;  %v2464_v25 = vadd.f32 %v5595_v19, %v2418_v30 }
 0x2d7   : > { %v2442_v43 = vmul.f32 %v5579_v35, %v5432_v10  ;;  %v2549_v32 = vpack.c.bf16 %v2526_v58, %v2525_v24  ;;  %v2503_v46 = vmax.f32 %v2463_v18, 0.0  ;;  %v2487_v36 = vadd.f32 %v5595_v19, %v2441_v41  ;;  %v4501_v35 = vld [vmem:[%s5895_s4 + $0x8] ss:$0 sps:$4 sm:$0xff]  }
 0x2d8   : > { %v2546_v16 = vpack.c.bf16 %v2520_v7, %v2519_v23  ;;  %v2504_v44 = vmax.f32 %v2464_v25, 0.0  ;;  %v3671_v10 = vcombine.low %v5910_v38, %v5910_v38  ;;  %v2678_v53 = vsel %vm2676_vm3, %v4504_v21, 0 }
 0x2d9   : > { %v2488_v60 = vadd.f32 %v5595_v19, %v2442_v43  ;;  %4038 = vmatpush3.bf16.msra.mxu0 %v2537_v45  ;;  %4126 = vmatpush3.bf16.msra.mxu1 %v2549_v32  ;;  %v2527_v47 = vmax.f32 %v2487_v36, 0.0  ;;  %v4502_v19 = vld [vmem:[%s5896_s5] sm:$0xff]   ;;  %v4674_v52 = vmov 0  }
 0x2da   : > { %4039 = vmatprep.subr.bf16.mxu0 %v2546_v16  ;;  %4127 = vmatprep.subr.bf16.mxu1 %v5909_v40  ;;  %v2538_v4 = vpack.c.bf16 %v2504_v44, %v2503_v46 }
 0x2db   : > { %v2528_v49 = vmax.f32 %v2488_v60, 0.0 }
 0x2dd   : > { %v2550_v50 = vpack.c.bf16 %v2528_v49, %v2527_v47  ;;  %4040 = vmatpush3.bf16.msra.mxu0 %v2538_v4 }
 0x2de   : > { %4151 = vmatprep.subr.bf16.mxu0 %v5909_v40 }
 0x2df   : > { %4128 = vmatpush3.bf16.msra.mxu1 %v2550_v50 }
 0x2e0   : > { %4133 = vmatprep.subr.bf16.mxu1 %v5909_v40  ;;  %2598 = vmatmul.mubr.bf16.vlgmr.msra.gmra.mrb[0].mxu0 %v3671_v10 }
 0x2e1   : > { %4155 = vmatprep.mubr.msk.bf16.mxu0 %vm4673_vm1, %v5909_v40  ;;  %4152 = vmatpush3.bf16.msra.mxu0 %v5732_v12 }
 0x2e2   : > { %4130 = vmatmul.mubr.msk.bf16.vlgmr.msra.gmra.mrb[0].mxu1 %vm2561_vm2, %v4501_v35  ;;  %4153 = vmatprep.subr.bf16.mxu0 %v5909_v40 }
 0x2e3   : > { %4134 = vmatpush3.bf16.msra.mxu1 %v4502_v19  ;;  %4139 = vmatprep.mubr.msk.bf16.mxu1 %vm4673_vm1, %v5909_v40 }
 0x2e4   : > { %4135 = vmatprep.subr.bf16.mxu1 %v5909_v40 }
 0x2e5   : > { %4154 = vmatpush3.bf16.msra.mxu0 %v5739_v55 }
 0x2e6   : > { %4167 = vmatprep.subr.bf16.mxu0 %v5909_v40 }
 0x2e7   : > { %4136 = vmatpush3.bf16.msra.mxu1 %v4503_v63 }
 0x2e8   : > { %4137 = vmatprep.subr.bf16.mxu1 %v5909_v40 }
 0x2eb   : > { %4138 = vmatpush3.bf16.msra.mxu1 %v2678_v53 }
 0x2ec   : > { %4143 = vmatprep.subr.bf16.mxu1 %v5909_v40 }
 0x3b3   : > { %v4041_v1 = vpop.f32.mrb[0].mxu0 }
 0x3b4   : > { %v4042_v11 = vpop.f32.mrb[1].mxu0 }
 0x3b5   : > { %v2639_v42 = vpop.f32.mrb[0].mxu1  ;;  %v4043_v6 = vadd.f32 %v4042_v11, %v4041_v1  ;;  %v4044_v20 = vpop.f32.mrb[2].mxu0 }
 0x3b6   : > { %v4131_v31 = vpop.f32.mrb[1].mxu1  ;;  %v4045_v33 = vpop.f32.mrb[3].mxu0 }
 0x3b7   : > { %v2642_v54 = vpop.f32.mrb[2].mxu1  ;;  %v2640_v56 = vadd.f32 %v4043_v6, %v2639_v42 }
 0x3b8   : > { %v4132_v48 = vpop.f32.mrb[3].mxu1 }
 0x3b9   : > { %v2645_v15 = vpack.c.bf16 %v2640_v56, %v2640_v56 }
 0x3bb   : > { %4140 = vmatmul.mubr.msk.bf16.vlgmr.msra.gmra.mrb[4].mxu1 %vm2070_vm0, %v2645_v15 }
 0x3bc   : > { %4144 = vmatpush3.bf16.msra.mxu1 %v5732_v12  ;;  %4147 = vmatprep.mubr.msk.bf16.mxu1 %vm4673_vm1, %v5909_v40 }
 0x3bd   : > { %4145 = vmatprep.subr.bf16.mxu1 %v5909_v40 }
 0x3c0   : > { %4146 = vmatpush3.bf16.msra.mxu1 %v5739_v55 }
 0x3c1   : > { %4159 = vmatprep.subr.bf16.mxu1 %v5909_v40 }
 0x3c3   : > { %4148 = vmatmul.mubr.bf16.vlgmr.msra.gmra.mrb[8].mxu1 %v4674_v52 }
 0x3c4   : > { %4160 = vmatpush3.bf16.msra.mxu1 %v5732_v12  ;;  %4163 = vmatprep.mubr.msk.bf16.mxu1 %vm4673_vm1, %v5909_v40 }
 0x3c5   : > { %4161 = vmatprep.subr.bf16.mxu1 %v5909_v40 }
 0x3c8   : > { %4162 = vmatpush3.bf16.msra.mxu1 %v5739_v55 }
 0x3c9   : > { %4175 = vmatprep.subr.bf16.mxu1 %v5909_v40 }
 0x48e   : > { %v2714_v22 = vpop.f32.mrb[4].mxu1 }
 0x48f   : > { %v4141_v57 = vpop.f32.mrb[5].mxu1  ;;  %v5759_v28 = vadd.f32 %v3675_v14, %v2714_v22 }
 0x490   : > { %v2717_v17 = vpop.f32.mrb[6].mxu1 }
 0x491   : > { %v4142_v51 = vpop.f32.mrb[7].mxu1 }
 0x496   : > { %v2774_v62 = vpop.f32.mrb[8].mxu1 }
 0x497   : > { %v2780_v26 = vadd.f32 %v2774_v62, %v5759_v28  ;;  %v4149_v3 = vpop.f32.mrb[9].mxu1 }
 0x498   : > { %v2777_v8 = vpop.f32.mrb[10].mxu1 }
 0x499   : > { %4509 = vtanh.f32 %v2780_v26  ;;  %v4150_v29 = vpop.f32.mrb[11].mxu1  ;;  %v3682_v0 = vmul.f32 -1.442695, %v2780_v26 }
 0x49b   : > { %4511 = vpow2.f32 %v3682_v0 }
 0x4a3   : > { %v4510_v39 = vpop.eup %4509 }
 0x4a4   : > { %2790 = vrot.lane.b32.xlu0 %v4510_v39, %s4675_s20 }
 0x4a5   : > { %v4512_v61 = vpop.eup %4511 }
 0x4a6   : > { %v2784_v34 = vadd.f32 1.0, %v4512_v61 }
 0x4a8   : > { %4513 = vrcp.f32 %v2784_v34 }
 0x4b2   : > { %v4514_v27 = vpop.eup %4513 }
 0x4b3   : > { %v2788_v13 = vmul.f32 0.0, %v4514_v27 }
 0x516   : > { %v2791_v59 = vpop.permute.xlu0 %2790 }
 0x517   : > { %v2793_v37 = vmul.f32 %v4514_v27, %v2791_v59 }
 0x519   : > { %2795 = vrot.lane.b32.xlu0 %v2793_v37, %s4676_s25 }
 0x58b   : > { %v2796_v2 = vpop.permute.xlu0 %2795 }
 0x58c   : > { %v2798_v24 = vadd.f32 %v2796_v2, %v2788_v13 }
 0x58e   : > { %4515 = vtanh.f32 %v2798_v24  ;;  %v2864_v4 = vrot.slane %v2798_v24, 6 }
 0x598   : > { %v4516_v5 = vpop.eup %4515 }
 0x599   : > { %2801 = vrot.lane.b32.xlu1 %v4516_v5, %s4675_s20 }
 0x60b   : > { %v2802_v9 = vpop.permute.xlu1 %2801 }
 0x60c   : > { %v2804_v30 = vmul.f32 %v4514_v27, %v2802_v9 }
 0x60e   : > { %v2805_v45 = vpack.c.bf16 %v2804_v30, %v2804_v30 }
 0x610   : > { %2807 = vrot.lane.b32.xlu1 %v2805_v45, %s4676_s25 }
 0x682   : > { %v2808_v58 = vpop.permute.xlu1 %2807 }
 0x683   : > { %4156 = vmatmul.mubr.msk.bf16.vlgmr.msra.gmra.mrb[4].mxu0 %vm2736_vm4, %v2808_v58 }
 0x684   : > { %4168 = vmatpush3.bf16.msra.mxu0 %v5732_v12  ;;  %4171 = vmatprep.mubr.msk.bf16.mxu0 %vm4673_vm1, %v5909_v40 }
 0x685   : > { %4169 = vmatprep.subr.bf16.mxu0 %v5909_v40 }
 0x688   : > { %4170 = vmatpush3.bf16.msra.mxu0 %v5739_v55 }
 0x689   : > { %4183 = vmatprep.subr.bf16.mxu0 %v5909_v40 }
 0x756   : > { %v2846_v18 = vpop.f32.mrb[4].mxu0 }
 0x757   : > { %v2853_v41 = vrot.slane %v2846_v18, 6  ;;  %v4157_v23 = vpop.f32.mrb[5].mxu0 }
 0x758   : > { %v2849_v7 = vpop.f32.mrb[6].mxu0 }
 0x759   : > { %v2855_v25 = vadd.f32 %v2853_v41, %v5759_v28  ;;  %v4158_v43 = vpop.f32.mrb[7].mxu0 }
 0x75b   : > { %4517 = vtanh.f32 %v2855_v25  ;;  %v3684_v46 = vmul.f32 -1.442695, %v2855_v25 }
 0x75d   : > { %4519 = vpow2.f32 %v3684_v46 }
 0x765   : > { %v4518_v32 = vpop.eup %4517 }
 0x766   : > { %2868 = vrot.lane.b32.xlu0 %v4518_v32, %s4675_s20 }
 0x767   : > { %v4520_v36 = vpop.eup %4519 }
 0x768   : > { %v2859_v16 = vadd.f32 1.0, %v4520_v36 }
 0x76a   : > { %4521 = vrcp.f32 %v2859_v16 }
 0x774   : > { %v4522_v44 = vpop.eup %4521 }
 0x775   : > { %v2866_v49 = vmul.f32 %v4522_v44, %v2864_v4 }
 0x7d8   : > { %v2869_v60 = vpop.permute.xlu0 %2868 }
 0x7d9   : > { %v2871_v47 = vmul.f32 %v4522_v44, %v2869_v60 }
 0x7db   : > { %2873 = vrot.lane.b32.xlu1 %v2871_v47, %s4676_s25 }
 0x84d   : > { %v2874_v50 = vpop.permute.xlu1 %2873 }
 0x84e   : > { %v2876_v38 = vadd.f32 %v2874_v50, %v2866_v49 }
 0x850   : > { %4523 = vtanh.f32 %v2876_v38  ;;  %v2943_v57 = vrot.slane %v2876_v38, 6 }
 0x85a   : > { %v4524_v10 = vpop.eup %4523 }
 0x85b   : > { %2879 = vrot.lane.b32.xlu0 %v4524_v10, %s4675_s20 }
 0x8cd   : > { %v2880_v35 = vpop.permute.xlu0 %2879 }
 0x8ce   : > { %v2882_v19 = vmul.f32 %v4522_v44, %v2880_v35 }
 0x8d0   : > { %v2883_v63 = vpack.c.bf16 %v2882_v19, %v2882_v19 }
 0x8d2   : > { %v2885_v21 = vrot.slane %v2883_v63, 1 }
 0x8d4   : > { %2886 = vrot.lane.b32.xlu1 %v2885_v21, %s4676_s25 }
 0x946   : > { %v2887_v53 = vpop.permute.xlu1 %2886 }
 0x947   : > { %4164 = vmatmul.mubr.msk.bf16.vlgmr.msra.gmra.mrb[12].mxu1 %vm2736_vm4, %v2887_v53 }
 0x948   : > { %4176 = vmatpush3.bf16.msra.mxu1 %v5732_v12  ;;  %4179 = vmatprep.mubr.msk.bf16.mxu1 %vm4673_vm1, %v5909_v40 }
 0x949   : > { %4177 = vmatprep.subr.bf16.mxu1 %v5909_v40 }
 0x94c   : > { %4178 = vmatpush3.bf16.msra.mxu1 %v5739_v55 }
 0x94d   : > { %4191 = vmatprep.subr.bf16.mxu1 %v5909_v40 }
 0xa1a   : > { %v2925_v1 = vpop.f32.mrb[12].mxu1 }
 0xa1b   : > { %v2932_v42 = vrot.slane %v2925_v1, 4  ;;  %v4165_v11 = vpop.f32.mrb[13].mxu1 }
 0xa1c   : > { %v2928_v6 = vpop.f32.mrb[14].mxu1 }
 0xa1d   : > { %v2934_v31 = vadd.f32 %v2932_v42, %v5759_v28  ;;  %v4166_v20 = vpop.f32.mrb[15].mxu1 }
 0xa1f   : > { %4525 = vtanh.f32 %v2934_v31  ;;  %v3686_v33 = vmul.f32 -1.442695, %v2934_v31 }
 0xa21   : > { %4527 = vpow2.f32 %v3686_v33 }
 0xa29   : > { %v4526_v54 = vpop.eup %4525 }
 0xa2a   : > { %2947 = vrot.lane.b32.xlu0 %v4526_v54, %s4675_s20 }
 0xa2b   : > { %v4528_v56 = vpop.eup %4527 }
 0xa2c   : > { %v2938_v48 = vadd.f32 1.0, %v4528_v56 }
 0xa2e   : > { %4529 = vrcp.f32 %v2938_v48 }
 0xa38   : > { %v4530_v15 = vpop.eup %4529 }
 0xa39   : > { %v2945_v17 = vmul.f32 %v4530_v15, %v2943_v57 }
 0xa9c   : > { %v2948_v52 = vpop.permute.xlu0 %2947 }
 0xa9d   : > { %v2950_v22 = vmul.f32 %v4530_v15, %v2948_v52 }
 0xa9f   : > { %2952 = vrot.lane.b32.xlu1 %v2950_v22, %s4676_s25 }
 0xb11   : > { %v2953_v51 = vpop.permute.xlu1 %2952 }
 0xb12   : > { %v2955_v14 = vadd.f32 %v2953_v51, %v2945_v17 }
 0xb14   : > { %4531 = vtanh.f32 %v2955_v14  ;;  %v3022_v58 = vrot.slane %v2955_v14, 6 }
 0xb1e   : > { %v4532_v62 = vpop.eup %4531 }
 0xb1f   : > { %2958 = vrot.lane.b32.xlu0 %v4532_v62, %s4675_s20 }
 0xb91   : > { %v2959_v26 = vpop.permute.xlu0 %2958 }
 0xb92   : > { %v2961_v3 = vmul.f32 %v4530_v15, %v2959_v26 }
 0xb94   : > { %v2962_v8 = vpack.c.bf16 %v2961_v3, %v2961_v3 }
 0xb96   : > { %v2964_v29 = vrot.slane %v2962_v8, 2 }
 0xb98   : > { %2965 = vrot.lane.b32.xlu1 %v2964_v29, %s4676_s25 }
 0xc0a   : > { %v2966_v39 = vpop.permute.xlu1 %2965 }
 0xc0b   : > { %4172 = vmatmul.mubr.msk.bf16.vlgmr.msra.gmra.mrb[8].mxu0 %vm2736_vm4, %v2966_v39 }
 0xc0c   : > { %4184 = vmatpush3.bf16.msra.mxu0 %v5732_v12  ;;  %4187 = vmatprep.mubr.msk.bf16.mxu0 %vm4673_vm1, %v5909_v40 }
 0xc0d   : > { %4185 = vmatprep.subr.bf16.mxu0 %v5909_v40 }
 0xc10   : > { %4186 = vmatpush3.bf16.msra.mxu0 %v5739_v55 }
 0xc11   : > { %4199 = vmatprep.subr.bf16.mxu0 %v5909_v40 }
 0xcde   : > { %v3004_v0 = vpop.f32.mrb[8].mxu0 }
 0xcdf   : > { %v3011_v61 = vrot.slane %v3004_v0, 2  ;;  %v4173_v34 = vpop.f32.mrb[9].mxu0 }
 0xce0   : > { %v3007_v27 = vpop.f32.mrb[10].mxu0 }
 0xce1   : > { %v3013_v59 = vadd.f32 %v3011_v61, %v5759_v28  ;;  %v4174_v37 = vpop.f32.mrb[11].mxu0 }
 0xce3   : > { %4533 = vtanh.f32 %v3013_v59  ;;  %v3688_v2 = vmul.f32 -1.442695, %v3013_v59 }
 0xce5   : > { %4535 = vpow2.f32 %v3688_v2 }
 0xced   : > { %v4534_v13 = vpop.eup %4533 }
 0xcee   : > { %3026 = vrot.lane.b32.xlu0 %v4534_v13, %s4675_s20 }
 0xcef   : > { %v4536_v24 = vpop.eup %4535 }
 0xcf0   : > { %v3017_v5 = vadd.f32 1.0, %v4536_v24 }
 0xcf2   : > { %4537 = vrcp.f32 %v3017_v5 }
 0xcfc   : > { %v4538_v9 = vpop.eup %4537 }
 0xcfd   : > { %v3024_v18 = vmul.f32 %v4538_v9, %v3022_v58 }
 0xd60   : > { %v3027_v30 = vpop.permute.xlu0 %3026 }
 0xd61   : > { %v3029_v45 = vmul.f32 %v4538_v9, %v3027_v30 }
 0xd63   : > { %3031 = vrot.lane.b32.xlu1 %v3029_v45, %s4676_s25 }
 0xdd5   : > { %v3032_v41 = vpop.permute.xlu1 %3031 }
 0xdd6   : > { %v3034_v23 = vadd.f32 %v3032_v41, %v3024_v18 }
 0xdd8   : > { %4539 = vtanh.f32 %v3034_v23 }
 0xde2   : > { %v4540_v7 = vpop.eup %4539 }
 0xde3   : > { %3037 = vrot.lane.b32.xlu0 %v4540_v7, %s4675_s20 }
 0xe55   : > { %v3038_v25 = vpop.permute.xlu0 %3037 }
 0xe56   : > { %v3040_v43 = vmul.f32 %v4538_v9, %v3038_v25 }
 0xe58   : > { %v3041_v32 = vpack.c.bf16 %v3040_v43, %v3040_v43  ;;  %v3098_v36 = vrot.slane %v3040_v43, 6 }
 0xe5a   : > { %v3043_v46 = vrot.slane %v3041_v32, 3 }
 0xe5c   : > { %3044 = vrot.lane.b32.xlu1 %v3043_v46, %s4676_s25 }
 0xe60   : > { %3099 = vrot.lane.b32.xlu1 %v3098_v36, %s4675_s20 }
 0xece   : > { %v3045_v16 = vpop.permute.xlu1 %3044 }
 0xecf   : > { %4180 = vmatmul.mubr.msk.bf16.vlgmr.msra.gmra.mrb[16].mxu1 %vm2736_vm4, %v3045_v16 }
 0xed0   : > { %4192 = vmatpush3.bf16.msra.mxu1 %v5732_v12  ;;  %4195 = vmatprep.mubr.msk.bf16.mxu1 %vm4673_vm1, %v5909_v40 }
 0xed1   : > { %4193 = vmatprep.subr.bf16.mxu1 %v5909_v40 }
 0xed2   : > { %v3100_v53 = vpop.permute.xlu1 %3099 }
 0xed4   : > { %4194 = vmatpush3.bf16.msra.mxu1 %v5739_v55 }
 0xfa2   : > { %v3083_v44 = vpop.f32.mrb[16].mxu1 }
 0xfa3   : > { %v3089_v60 = vadd.f32 %v3083_v44, %v5759_v28  ;;  %v4181_v47 = vpop.f32.mrb[17].mxu1 }
 0xfa4   : > { %v3086_v4 = vpop.f32.mrb[18].mxu1 }
 0xfa5   : > { %4541 = vtanh.f32 %v3089_v60  ;;  %v4182_v49 = vpop.f32.mrb[19].mxu1  ;;  %v3690_v38 = vmul.f32 -1.442695, %v3089_v60 }
 0xfa7   : > { %4543 = vpow2.f32 %v3690_v38 }
 0xfaf   : > { %v4542_v50 = vpop.eup %4541 }
 0xfb0   : > { %3104 = vrot.lane.b32.xlu0 %v4542_v50, %s4675_s20 }
 0xfb1   : > { %v4544_v10 = vpop.eup %4543 }
 0xfb2   : > { %v3093_v35 = vadd.f32 1.0, %v4544_v10 }
 0xfb4   : > { %4545 = vrcp.f32 %v3093_v35 }
 0xfbe   : > { %v4546_v19 = vpop.eup %4545 }
 0xfbf   : > { %v3102_v1 = vmul.f32 %v4546_v19, %v3100_v53 }
0x1022   : > { %v3105_v63 = vpop.permute.xlu0 %3104 }
0x1023   : > { %v3107_v21 = vmul.f32 %v4546_v19, %v3105_v63 }
0x1025   : > { %3109 = vrot.lane.b32.xlu0 %v3107_v21, %s4676_s25 }
0x1097   : > { %v3110_v42 = vpop.permute.xlu0 %3109 }
0x1098   : > { %v3112_v11 = vadd.f32 %v3110_v42, %v3102_v1 }
0x109a   : > { %4547 = vtanh.f32 %v3112_v11 }
0x10a4   : > { %v4548_v6 = vpop.eup %4547 }
0x10a5   : > { %3115 = vrot.lane.b32.xlu1 %v4548_v6, %s4675_s20 }
0x1117   : > { %v3116_v31 = vpop.permute.xlu1 %3115 }
0x1118   : > { %v3118_v20 = vmul.f32 %v4546_v19, %v3116_v31 }
0x111a   : > { %v3119_v54 = vpack.c.bf16 %v3118_v20, %v3118_v20 }
0x111c   : > { %3121 = vrot.lane.b32.xlu0 %v3119_v54, %s4676_s25 }
0x118e   : > { %v3122_v33 = vpop.permute.xlu0 %3121 }
0x118f   : > { %4188 = vmatmul.mubr.msk.bf16.vlgmr.msra.gmra.mrb[12].mxu0 %vm2736_vm4, %v3122_v33 }
0x1190   : > { %4200 = vmatpush3.bf16.msra.mxu0 %v5732_v12  ;;  %4203 = vmatprep.mubr.msk.bf16.mxu0 %vm4673_vm1, %v5909_v40 }
0x1191   : > { %4201 = vmatprep.subr.bf16.mxu0 %v5909_v40 }
0x1194   : > { %4202 = vmatpush3.bf16.msra.mxu0 %v5739_v55  ;;  %v3178_v55 = vrot.slane %v3112_v11, 6 }
0x1262   : > { %v3160_v56 = vpop.f32.mrb[12].mxu0 }
0x1263   : > { %v3167_v48 = vrot.slane %v3160_v56, 6  ;;  %v4189_v15 = vpop.f32.mrb[13].mxu0  ;;  %v3356_v56 = vld [vmem:[%s5899_s8 + $0x8] sm:$0xff] }
0x1264   : > { %v3163_v52 = vpop.f32.mrb[14].mxu0  ;;  %v4677_v15 = vmov 0.0|0.0  }
0x1265   : > { %v3169_v22 = vadd.f32 %v3167_v48, %v5759_v28  ;;  %v4190_v57 = vpop.f32.mrb[15].mxu0  ;;  %v3357_v48 = vld [vmem:[%s5899_s8 + $0x10] sm:$0xff]  ;;  %4218 = vmatprep.subr.bf16.mxu1 %v4677_v15 }
0x1267   : > { %4549 = vtanh.f32 %v3169_v22  ;;  %v3692_v51 = vmul.f32 -1.442695, %v3169_v22  ;;  %v3358_v22 = vld [vmem:[%s5899_s8 + $0x18] sm:$0xff] }
0x1268   : > { %v4222_v57 = vpack.c.bf16 %v3358_v22, %v3357_v48 }
0x1269   : > { %4551 = vpow2.f32 %v3692_v51 }
0x1271   : > { %v4550_v17 = vpop.eup %4549 }
0x1272   : > { %3182 = vrot.lane.b32.xlu1 %v4550_v17, %s4675_s20 }
0x1273   : > { %v4552_v12 = vpop.eup %4551 }
0x1274   : > { %v3173_v14 = vadd.f32 1.0, %v4552_v12 }
0x1276   : > { %4553 = vrcp.f32 %v3173_v14 }
0x1280   : > { %v4554_v62 = vpop.eup %4553 }
0x1281   : > { %v3180_v8 = vmul.f32 %v4554_v62, %v3178_v55 }
0x12e4   : > { %v3183_v26 = vpop.permute.xlu1 %3182 }
0x12e5   : > { %v3185_v3 = vmul.f32 %v4554_v62, %v3183_v26  ;;  %v3697_v26 = vld [vmem:[%s5900_s9] ss:$0 sm:$0xff] }
0x12e7   : > { %3187 = vrot.lane.b32.xlu0 %v3185_v3, %s4676_s25 }
0x1359   : > { %v3188_v29 = vpop.permute.xlu0 %3187 }
0x135a   : > { %v3190_v39 = vadd.f32 %v3188_v29, %v3180_v8 }
0x135c   : > { %4555 = vtanh.f32 %v3190_v39 }
0x1366   : > { %v4556_v0 = vpop.eup %4555 }
0x1367   : > { %3193 = vrot.lane.b32.xlu1 %v4556_v0, %s4675_s20 }
0x13d9   : > { %v3194_v61 = vpop.permute.xlu1 %3193 }
0x13da   : > { %v3196_v34 = vmul.f32 %v4554_v62, %v3194_v61 }
0x13dc   : > { %v3197_v27 = vpack.c.bf16 %v3196_v34, %v3196_v34 }
0x13de   : > { %v3199_v59 = vrot.slane %v3197_v27, 1 }
0x13e0   : > { %3200 = vrot.lane.b32.xlu0 %v3199_v59, %s4676_s25 }
0x1452   : > { %v3201_v37 = vpop.permute.xlu0 %3200 }
0x1453   : > { %4196 = vmatmul.mubr.msk.bf16.vlgmr.msra.gmra.mrb[20].mxu1 %vm2736_vm4, %v3201_v37 }
0x1454   : > { %4215 = vmatprep.mubr.msk.f32.mxu1 %vm4673_vm1, %v5909_v40  ;;  %v3257_v40 = vrot.slane %v3190_v39, 6 }
0x1526   : > { %v3239_v13 = vpop.f32.mrb[20].mxu1 }
0x1527   : > { %v3246_v2 = vrot.slane %v3239_v13, 4  ;;  %v4197_v24 = vpop.f32.mrb[21].mxu1 }
0x1528   : > { %v3242_v5 = vpop.f32.mrb[22].mxu1 }
0x1529   : > { %v3248_v9 = vadd.f32 %v3246_v2, %v5759_v28  ;;  %v4198_v30 = vpop.f32.mrb[23].mxu1 }
0x152b   : > { %4557 = vtanh.f32 %v3248_v9  ;;  %v3694_v58 = vmul.f32 -1.442695, %v3248_v9 }
0x152d   : > { %4559 = vpow2.f32 %v3694_v58 }
0x1535   : > { %v4558_v45 = vpop.eup %4557 }
0x1536   : > { %3261 = vrot.lane.b32.xlu1 %v4558_v45, %s4675_s20 }
0x1537   : > { %v4560_v18 = vpop.eup %4559 }
0x1538   : > { %v3252_v41 = vadd.f32 1.0, %v4560_v18 }
0x153a   : > { %4561 = vrcp.f32 %v3252_v41 }
0x1544   : > { %v4562_v23 = vpop.eup %4561 }
0x1545   : > { %v3259_v43 = vmul.f32 %v4562_v23, %v3257_v40 }
0x15a8   : > { %v3262_v7 = vpop.permute.xlu1 %3261 }
0x15a9   : > { %v3264_v25 = vmul.f32 %v4562_v23, %v3262_v7 }
0x15ab   : > { %3266 = vrot.lane.b32.xlu0 %v3264_v25, %s4676_s25 }
0x161d   : > { %v3267_v32 = vpop.permute.xlu0 %3266 }
0x161e   : > { %v3269_v46 = vadd.f32 %v3267_v32, %v3259_v43 }
0x1620   : > { %4563 = vtanh.f32 %v3269_v46  ;;  %v3336_v31 = vrot.slane %v3269_v46, 6 }
0x162a   : > { %v4564_v36 = vpop.eup %4563 }
0x162b   : > { %3272 = vrot.lane.b32.xlu1 %v4564_v36, %s4675_s20 }
0x169d   : > { %v3273_v16 = vpop.permute.xlu1 %3272 }
0x169e   : > { %v3275_v44 = vmul.f32 %v4562_v23, %v3273_v16 }
0x16a0   : > { %v3276_v60 = vpack.c.bf16 %v3275_v44, %v3275_v44 }
0x16a2   : > { %v3278_v47 = vrot.slane %v3276_v60, 2 }
0x16a4   : > { %3279 = vrot.lane.b32.xlu0 %v3278_v47, %s4676_s25 }
0x1716   : > { %v3280_v4 = vpop.permute.xlu0 %3279 }
0x1717   : > { %4204 = vmatmul.mubr.msk.bf16.vlgmr.msra.gmra.mrb[16].mxu0 %vm2736_vm4, %v3280_v4 }
0x17ea   : > { %v3318_v49 = vpop.f32.mrb[16].mxu0 }
0x17eb   : > { %v3325_v50 = vrot.slane %v3318_v49, 2  ;;  %v4205_v38 = vpop.f32.mrb[17].mxu0 }
0x17ec   : > { %v3321_v10 = vpop.f32.mrb[18].mxu0 }
0x17ed   : > { %v3327_v35 = vadd.f32 %v3325_v50, %v5759_v28  ;;  %v4206_v19 = vpop.f32.mrb[19].mxu0  ;;  %v3355_v28 = vld [vmem:[%s5899_s8] sm:$0xff] }
0x17ee   : > { %v4219_v52 = vpack.c.bf16 %v3356_v56, %v3355_v28 }
0x17ef   : > { %4565 = vtanh.f32 %v3327_v35  ;;  %v3696_v21 = vmul.f32 -1.442695, %v3327_v35 }
0x17f0   : > { %4220 = vmatpush3.bf16.msra.mxu1 %v4219_v52 }
0x17f1   : > { %4567 = vpow2.f32 %v3696_v21  ;;  %4221 = vmatprep.subr.bf16.mxu1 %v4677_v15 }
0x17f4   : > { %4223 = vmatpush3.bf16.msra.mxu1 %v4222_v57 }
0x17f9   : > { %v4566_v63 = vpop.eup %4565 }
0x17fa   : > { %3340 = vrot.lane.b32.xlu1 %v4566_v63, %s4675_s20 }
0x17fb   : > { %v4568_v53 = vpop.eup %4567 }
0x17fc   : > { %v3331_v1 = vadd.f32 1.0, %v4568_v53 }
0x17fe   : > { %4569 = vrcp.f32 %v3331_v1 }
0x1808   : > { %v4570_v42 = vpop.eup %4569 }
0x1809   : > { %v3338_v20 = vmul.f32 %v4570_v42, %v3336_v31 }
0x186c   : > { %v3341_v11 = vpop.permute.xlu1 %3340 }
0x186d   : > { %v3343_v6 = vmul.f32 %v4570_v42, %v3341_v11 }
0x186f   : > { %3345 = vrot.lane.b32.xlu0 %v3343_v6, %s4676_s25 }
0x18e1   : > { %v3346_v54 = vpop.permute.xlu0 %3345 }
0x18e2   : > { %v3348_v33 = vadd.f32 %v3346_v54, %v3338_v20 }
0x18e4   : > { %4571 = vtanh.f32 %v3348_v33 }
0x18ee   : > { %v4572_v17 = vpop.eup %4571 }
0x18ef   : > { %3351 = vrot.lane.b32.xlu1 %v4572_v17, %s4675_s20 }
0x1961   : > { %v3352_v51 = vpop.permute.xlu1 %3351 }
0x1962   : > { %v3354_v12 = vmul.f32 %v4570_v42, %v3352_v51 }
0x1964   : > { %v3367_v14 = vrot.slane %v3354_v12, 6 }
0x1966   : > { %3368 = vrot.lane.b32.xlu0 %v3367_v14, %s4676_s25 }
0x19d8   : > { %v3369_v62 = vpop.permute.xlu0 %3368 }
0x19d9   : > { %4216 = vmatmul.mubr.msk.f32.vlgmr.msra.gmra.mrb[24].mxu1 %vm2736_vm4, %v3369_v62 }
0x1aac   : > { %v3438_v3 = vpop.f32.mrb[24].mxu1 }
0x1aad   : > { %v3439_v55 = vadd.f32 %v3697_v26, %v3438_v3  ;;  %v4217_v8 = vpop.f32.mrb[25].mxu1 }
0x1aaf   : > { %3443 = vst.msk [vmem:[#allocation6] sm:$0x3] %vm3442_vm5, %v3439_v55 }
0x1ab0 PF: > { %p4254_p8 = scmp.eq.s32.totalorder %s4753_s17, 1  ;;  %s4678_s19 = smov [#allocation6]  }
0x1ab1   : > { %s3451_s22 = sshll.u32 %s4678_s19, 4  ;;  %s3452_s22 = int_to_ptr.vmem [resolvable:$true] %s3451_s22 }
0x1ab2   : > { %s4603_s13 = scalar_lea.vmem %s3452_s22, 32  ;;  %p4610_p6 = scmp.lt.s32.totalorder %s3452_s22, %s3452_s22 }
0x1ab3   : > { %p4604_p9 = scmp.ne.s32.totalorder %s3452_s22, %s4603_s13  ;;  %p4611_p10 = scmp.lt.s32.totalorder %s4603_s13, %s4603_s13 }
0x1ab5   : > { %p4605_p4 = pnand %p4604_p9, %p4254_p8  ;;  %p4612_p12 = por %p4611_p10, %p4610_p6 }
0x1ab7   : > { %p4606_p5 = pneg %p4605_p4 }
0x1ab9   : > { %p4613_p0 = pnand %p4612_p12, %p4606_p5 }
0x1abb   : > { %4616 = shalt.err (!%p4613_p0)
}
0x1abc   : > { %s4617_s27 = scalar_lea.hbm %s5901_s10, 32 }
0x1abd   : > { %p4618_p1 = scmp.ne.s32.totalorder %s5901_s10, %s4617_s27  ;;  %p4623_p13 = scmp.lt.u32.totalorder %s4617_s27, %s5901_s10 }
0x1abf   : > { %p4619_p2 = pnand %p4618_p1, %p4254_p8 }
0x1ac1   : > { %p4620_p11 = pneg %p4619_p2 }
0x1ac3   : > { %p4625_p3 = pnand %p4623_p13, %p4620_p11 }
0x1ac5   : > { %4628 = shalt.err (!%p4625_p3)
}
0x1ac6   : > { %4246 = dma.vmem_to_hbm [thread:$0]  (%p4254_p8), %s3452_s22, 32, %s5901_s10, [#allocation5]  }
0x1ac7   : > { %4650 = dma.done.wait (%p4254_p8), [#allocation5], 32  }
0x1ac8   : > { %4652 = vsyncadd (%p4254_p8), [#allocation5], 4294967264 }
0x1ac9 PF: > { %p21_p7 = scmp.ge.s32.totalorder %s4756_s18, 4   ;;  %s5911_s13 = smov %s4659_s14 }
0x1aca   : > { %s5912_s14 = smov %s4663_s15  ;;  %s5913_s15 = smov %s4766_s21 }
0x1acb   : > { %s5914_s16 = smov %s4756_s18  ;;  %23 = sbr.rel (!%p21_p7) target bundleno = 4 (0x4), region = 102 }
0x1ad2   :  { %3464 = vsyncpa [#allocation4], 1 }
0x1ad3   :  { %3466 = vsyncpa [#allocation4 + $0x1], 1 }
0x1ad4   :  { %3467 = vsyncpa [#allocation5], 1 }
0x1ad5   :  { %3469 = vsyncpa [#allocation5 + $0x1], 1 }

</bundles_post_ra>
